<compile_context>
chip_gen: v5e
topology: v5e:2x2
jax: 0.10.0
libtpu: 0.0.40
codegen_flags: <defaults>
</compile_context>

<pallas_src>
import jax
import jax.numpy as jnp
from jax import lax
from jax.experimental import pallas as pl
from jax.experimental.pallas import tpu as pltpu


def _fcn_lstm_kernel(
    x_pad1_ref,                   # (Bt, T + K1 - 1, Din)  conv1 input, pre-padded (4 front, 3 back)
    x_tbd_ref,                    # (T, Bt, Din)           time-major raw sequence for the LSTM
    w1_ref, s1_ref, t1_ref,       # (K1, Din, C1), (1, C1), (1, C1)
    w2r_ref, s2_ref, t2_ref,      # (K2*C1, C2),   (1, C2), (1, C2)
    w3r_ref, s3_ref, t3_ref,      # (K3*C2, C1),   (1, C1), (1, C1)
    wih_ref, whh_ref, blstm_ref,  # (Din, 4H), (H, 4H), (1, 4H)   gate order (i, f, o, g)
    wlx_ref, wly_ref, blin_ref,   # (C1, NC), (H, NC), (1, NC)
    out_ref,                      # (Bt, NC)
    gx_ref,                       # scratch: (T, Bt, 4H) hoisted LSTM input projection
):
    f32 = jnp.float32
    K1, Din, C1 = w1_ref.shape
    C2 = s2_ref.shape[1]
    K2 = w2r_ref.shape[0] // C1
    K3 = w3r_ref.shape[0] // C2
    H = whh_ref.shape[0]
    T, Bt, _ = x_tbd_ref.shape

    # ---- layer1: Conv1d(Din, C1, k=8, pad=4)[:, :, :-1] + BN + ReLU ----
    x1 = x_pad1_ref[...]                                   # (Bt, T+K1-1, Din)
    acc1 = jnp.zeros((Bt, T, C1), f32)
    for k in range(K1):
        xk = x1[:, k:k + T, :]                             # (Bt, T, Din)
        if Din == 1:
            acc1 = acc1 + xk * w1_ref[k].reshape(1, 1, C1)  # rank-1 tap (VPU)
        else:
            acc1 = acc1 + jnp.dot(
                xk.reshape(Bt * T, Din), w1_ref[k],
                preferred_element_type=f32).reshape(Bt, T, C1)
    h1 = jnp.maximum(acc1 * s1_ref[...].reshape(1, 1, C1)
                     + t1_ref[...].reshape(1, 1, C1), 0.0)

    # ---- layer2 / layer3: im2col -> one MXU matmul + BN + ReLU each ----
    def conv_im2col(h3d, K, wr_ref, s_ref, t_ref):
        Cin = h3d.shape[-1]
        Cout = wr_ref.shape[-1]
        pad = (K - 1) // 2
        z = jnp.zeros((Bt, pad, Cin), f32)
        hp = jnp.concatenate([z, h3d, z], axis=1)          # (Bt, T+2*pad, Cin)
        slab = jnp.concatenate([hp[:, k:k + T, :] for k in range(K)],
                               axis=-1)                    # (Bt, T, K*Cin)
        acc = jnp.dot(slab.reshape(Bt * T, K * Cin), wr_ref[...],
                      preferred_element_type=f32).reshape(Bt, T, Cout)
        return jnp.maximum(acc * s_ref[...].reshape(1, 1, Cout)
                           + t_ref[...].reshape(1, 1, Cout), 0.0)

    h2 = conv_im2col(h1, K2, w2r_ref, s2_ref, t2_ref)      # (Bt, T, C2)
    h3 = conv_im2col(h2, K3, w3r_ref, s3_ref, t3_ref)      # (Bt, T, C1)
    x_mean = jnp.sum(h3, axis=1) * (1.0 / T)               # (Bt, C1) global average pool

    # ---- LSTM(Din, H): hoisted input projection into a time-major gate table ----
    xs = x_tbd_ref[...]                                    # (T, Bt, Din)
    if Din == 1:
        gx = xs * wih_ref[...].reshape(1, 1, 4 * H)
    else:
        gx = jnp.dot(xs.reshape(T * Bt, Din), wih_ref[...],
                     preferred_element_type=f32).reshape(T, Bt, 4 * H)
    gx_ref[...] = gx + blstm_ref[...].reshape(1, 1, 4 * H)

    def step(t, carry):
        h, c, ysum = carry
        gates = gx_ref[t] + jnp.dot(h, whh_ref[...],
                                    preferred_element_type=f32)     # (Bt, 4H)
        sio = jax.nn.sigmoid(gates[:, :3 * H])             # one wide sigmoid: i, f, o
        i = sio[:, :H]
        f = sio[:, H:2 * H]
        o = sio[:, 2 * H:3 * H]
        g = jnp.tanh(gates[:, 3 * H:])
        c = f * c + i * g
        h = o * jnp.tanh(c)
        return h, c, ysum + h

    z0 = jnp.zeros((Bt, H), f32)
    unroll = True if T <= 32 else 8
    _, _, ysum = lax.fori_loop(0, T, step, (z0, z0, z0), unroll=unroll)
    y_mean = ysum * (1.0 / T)                              # (Bt, H)

    # ---- cat([x, y], channels) -> avg pool -> Linear, as a split matmul ----
    logits = (jnp.dot(x_mean, wlx_ref[...], preferred_element_type=f32)
              + jnp.dot(y_mean, wly_ref[...], preferred_element_type=f32)
              + blin_ref[...])                             # (Bt, NC)
    out_ref[...] = logits.astype(out_ref.dtype)


def fcn_lstm_ts_forward(x, kp, *, b_tile=8):
    """x: (B, Din, T) in PyTorch NCW layout.  Returns (B, nb_classes)."""
    B, Din, T = x.shape
    K1, _, C1 = kp["w1"].shape
    NC = kp["wlx"].shape[1]
    H4 = kp["whh"].shape[1]

    # Batch-block: whole batch if small, else sublane-aligned tiles of 8.
    B_TILE = B if B <= b_tile else b_tile
    Bp = ((B + B_TILE - 1) // B_TILE) * B_TILE

    x_btd = jnp.transpose(x, (0, 2, 1)).astype(jnp.float32)          # (B, T, Din)
    if Bp != B:
        x_btd = jnp.pad(x_btd, ((0, Bp - B), (0, 0), (0, 0)))
    p1 = K1 // 2
    # Conv1d(k=8, pad=4) followed by [:, :, :-1] == asymmetric padding (4, 3).
    x_pad1 = jnp.pad(x_btd, ((0, 0), (p1, K1 - 1 - p1), (0, 0)))     # (Bp, T+K1-1, Din)
    x_tbd = jnp.transpose(x_btd, (1, 0, 2))                          # (T, Bp, Din)

    def full_spec(a):
        nd = a.ndim
        return pl.BlockSpec(a.shape, lambda b, _nd=nd: (0,) * _nd)

    in_specs = [
        pl.BlockSpec((B_TILE, T + K1 - 1, Din), lambda b: (b, 0, 0)),
        pl.BlockSpec((T, B_TILE, Din), lambda b: (0, b, 0)),
        full_spec(kp["w1"]), full_spec(kp["s1"]), full_spec(kp["t1"]),
        full_spec(kp["w2r"]), full_spec(kp["s2"]), full_spec(kp["t2"]),
        full_spec(kp["w3r"]), full_spec(kp["s3"]), full_spec(kp["t3"]),
        full_spec(kp["wih"]), full_spec(kp["whh"]), full_spec(kp["blstm"]),
        full_spec(kp["wlx"]), full_spec(kp["wly"]), full_spec(kp["blin"]),
    ]

    out = pl.pallas_call(
        _fcn_lstm_kernel,
        out_shape=jax.ShapeDtypeStruct((Bp, NC), jnp.float32),
        grid_spec=pltpu.PrefetchScalarGridSpec(
            num_scalar_prefetch=0,
            grid=(Bp // B_TILE,),
            in_specs=in_specs,
            out_specs=pl.BlockSpec((B_TILE, NC), lambda b: (b, 0)),
            scratch_shapes=[pltpu.VMEM((T, B_TILE, H4), jnp.float32)],
        ),
        compiler_params=pltpu.CompilerParams(
            dimension_semantics=("parallel",)),
    )(x_pad1, x_tbd,
      kp["w1"], kp["s1"], kp["t1"],
      kp["w2r"], kp["s2"], kp["t2"],
      kp["w3r"], kp["s3"], kp["t3"],
      kp["wih"], kp["whh"], kp["blstm"],
      kp["wlx"], kp["wly"], kp["blin"])
    return out[:B]


# ----------------------------- parameters ---------------------------------

def init_params(key, din=1, f=32, h=8, nc=2):
    ks = jax.random.split(key, 24)
    n = lambda k, shape, s=0.1: (s * jax.random.normal(k, shape)).astype(jnp.float32)
    return {
        # layer1: Conv1d(din, f, 8, padding=4) + BatchNorm1d(f)
        "w1": n(ks[0], (8, din, f)), "b1": n(ks[1], (f,)),
        "g1": 1.0 + n(ks[2], (f,)), "be1": n(ks[3], (f,)),
        "m1": n(ks[4], (f,)), "v1": 1.0 + 0.1 * jnp.abs(jax.random.normal(ks[5], (f,))),
        # layer2: Conv1d(f, 2f, 5, padding=2) + BatchNorm1d(2f)
        "w2": n(ks[6], (5, f, 2 * f)), "b2": n(ks[7], (2 * f,)),
        "g2": 1.0 + n(ks[8], (2 * f,)), "be2": n(ks[9], (2 * f,)),
        "m2": n(ks[10], (2 * f,)), "v2": 1.0 + 0.1 * jnp.abs(jax.random.normal(ks[11], (2 * f,))),
        # layer3: Conv1d(2f, f, 3, padding=1) + BatchNorm1d(f)
        "w3": n(ks[12], (3, 2 * f, f)), "b3": n(ks[13], (f,)),
        "g3": 1.0 + n(ks[14], (f,)), "be3": n(ks[15], (f,)),
        "m3": n(ks[16], (f,)), "v3": 1.0 + 0.1 * jnp.abs(jax.random.normal(ks[17], (f,))),
        # LSTM(din, h), gate order (i, f, g, o), weights stored pre-transposed
        "wih": n(ks[18], (din, 4 * h), 0.3), "whh": n(ks[19], (h, 4 * h), 0.3),
        "bih": n(ks[20], (4 * h,)), "bhh": n(ks[21], (4 * h,)),
        # Linear(f + h, nc), stored pre-transposed
        "wl": n(ks[22], (f + h, nc), 0.3), "bl": n(ks[23], (nc,)),
    }


def pack_kernel_params(P, eps=1e-5):
    """Fold conv bias + eval-mode BN into per-channel scale/shift, reshape conv2/3
    weights for im2col, and reorder LSTM gate columns (i,f,g,o) -> (i,f,o,g)."""
    def bn_affine(gamma, beta, mean, var, conv_bias):
        scale = gamma / jnp.sqrt(var + eps)
        shift = (conv_bias - mean) * scale + beta
        return scale.reshape(1, -1), shift.reshape(1, -1)

    s1, t1 = bn_affine(P["g1"], P["be1"], P["m1"], P["v1"], P["b1"])
    s2, t2 = bn_affine(P["g2"], P["be2"], P["m2"], P["v2"], P["b2"])
    s3, t3 = bn_affine(P["g3"], P["be3"], P["m3"], P["v3"], P["b3"])

    H = P["whh"].shape[0]

    def reorder_gates(a):   # last-axis columns (i, f, g, o) -> (i, f, o, g)
        return jnp.concatenate(
            [a[..., :2 * H], a[..., 3 * H:], a[..., 2 * H:3 * H]], axis=-1)

    f = P["w1"].shape[2]
    return {
        "w1": P["w1"], "s1": s1, "t1": t1,
        "w2r": P["w2"].reshape(-1, P["w2"].shape[-1]), "s2": s2, "t2": t2,
        "w3r": P["w3"].reshape(-1, P["w3"].shape[-1]), "s3": s3, "t3": t3,
        "wih": reorder_gates(P["wih"]),
        "whh": reorder_gates(P["whh"]),
        "blstm": reorder_gates(P["bih"] + P["bhh"]).reshape(1, -1),
        "wlx": P["wl"][:f], "wly": P["wl"][f:],
        "blin": P["bl"].reshape(1, -1),
    }


# --------------------------- pure-JAX reference ----------------------------

def reference_forward(x, P, eps=1e-5):
    B, Din, T = x.shape
    x_btd = jnp.transpose(x, (0, 2, 1)).astype(jnp.float32)

    def conv_bn_relu(hin, w, b, gamma, beta, mean, var, pad_front, pad_back):
        K, _, Cout = w.shape
        hp = jnp.pad(hin, ((0, 0), (pad_front, pad_back), (0, 0)))
        out = jnp.zeros((B, T, Cout), jnp.float32)
        for k in range(K):
            out = out + jnp.einsum("btc,cd->btd", hp[:, k:k + T, :], w[k])
        out = out + b
        out = (out - mean) / jnp.sqrt(var + eps) * gamma + beta
        return jnp.maximum(out, 0.0)

    h = conv_bn_relu(x_btd, P["w1"], P["b1"], P["g1"], P["be1"], P["m1"], P["v1"], 4, 3)
    h = conv_bn_relu(h, P["w2"], P["b2"], P["g2"], P["be2"], P["m2"], P["v2"], 2, 2)
    h = conv_bn_relu(h, P["w3"], P["b3"], P["g3"], P["be3"], P["m3"], P["v3"], 1, 1)

    Hh = P["whh"].shape[0]

    def cell(carry, x_t):
        hp, cp = carry
        gates = x_t @ P["wih"] + hp @ P["whh"] + P["bih"] + P["bhh"]
        i = jax.nn.sigmoid(gates[:, :Hh]); f = jax.nn.sigmoid(gates[:, Hh:2 * Hh])
        g = jnp.tanh(gates[:, 2 * Hh:3 * Hh]); o = jax.nn.sigmoid(gates[:, 3 * Hh:])
        c = f * cp + i * g
        hn = o * jnp.tanh(c)
        return (hn, c), hn

    xs = jnp.transpose(x_btd, (1, 0, 2))                       # (T, B, Din)
    (_, _), ys = lax.scan(cell, (jnp.zeros((B, Hh)), jnp.zeros((B, Hh))), xs)
    feat = jnp.concatenate([jnp.mean(h, axis=1), jnp.mean(ys, axis=0)], axis=-1)
    return feat @ P["wl"] + P["bl"]


if __name__ == "__main__":
    key = jax.random.PRNGKey(0)
    B, DIN, T = 2, 1, 16          # batch, input_features_d, sequence length
    F, H, NC = 32, 8, 2           # n_feature_maps, NUM_CELLS, nb_classes (small test sizes)

    p_key, x_key = jax.random.split(key)
    P = init_params(p_key, din=DIN, f=F, h=H, nc=NC)
    KP = pack_kernel_params(P)
    x = jax.random.normal(x_key, (B, DIN, T), dtype=jnp.float32)   # PyTorch NCW input

    out = jax.block_until_ready(fcn_lstm_ts_forward(x, KP))
    ref = jax.block_until_ready(reference_forward(x, P))

    assert out.shape == (B, NC)
    assert jnp.allclose(out, ref, atol=1e-2, rtol=1e-2), (out, ref)
    print("KERNEL_OK")
</pallas_src>

<mosaic_0001>
module attributes {stable_mosaic.version = 11 : i64} {
  func.func @_fcn_lstm_kernel(%arg0: i32, %arg1: memref<2x23x1xf32, #tpu.memory_space<vmem>>, %arg2: memref<16x2x1xf32, #tpu.memory_space<vmem>>, %arg3: memref<8x1x32xf32, #tpu.memory_space<vmem>>, %arg4: memref<1x32xf32, #tpu.memory_space<vmem>>, %arg5: memref<1x32xf32, #tpu.memory_space<vmem>>, %arg6: memref<160x64xf32, #tpu.memory_space<vmem>>, %arg7: memref<1x64xf32, #tpu.memory_space<vmem>>, %arg8: memref<1x64xf32, #tpu.memory_space<vmem>>, %arg9: memref<192x32xf32, #tpu.memory_space<vmem>>, %arg10: memref<1x32xf32, #tpu.memory_space<vmem>>, %arg11: memref<1x32xf32, #tpu.memory_space<vmem>>, %arg12: memref<1x32xf32, #tpu.memory_space<vmem>>, %arg13: memref<8x32xf32, #tpu.memory_space<vmem>>, %arg14: memref<1x32xf32, #tpu.memory_space<vmem>>, %arg15: memref<32x2xf32, #tpu.memory_space<vmem>>, %arg16: memref<8x2xf32, #tpu.memory_space<vmem>>, %arg17: memref<1x2xf32, #tpu.memory_space<vmem>>, %arg18: memref<2x2xf32, #tpu.memory_space<vmem>>, %arg19: memref<16x2x32xf32, #tpu.memory_space<vmem>>) attributes {dimension_semantics = [#tpu.dimension_semantics<parallel>], iteration_bounds = array<i64: 1>, scalar_prefetch = 0 : i64, scratch_operands = 1 : i64, tpu.core_type = #tpu.core_type<tc>, window_params = [{transform_indices = @transform_0, window_bounds = array<i64: 2, 23, 1>}, {transform_indices = @transform_1, window_bounds = array<i64: 16, 2, 1>}, {pipeline_mode = #tpu.pipeline_mode<synchronous>, transform_indices = @transform_2, window_bounds = array<i64: 8, 1, 32>}, {pipeline_mode = #tpu.pipeline_mode<synchronous>, transform_indices = @transform_3, window_bounds = array<i64: 1, 32>}, {pipeline_mode = #tpu.pipeline_mode<synchronous>, transform_indices = @transform_4, window_bounds = array<i64: 1, 32>}, {pipeline_mode = #tpu.pipeline_mode<synchronous>, transform_indices = @transform_5, window_bounds = array<i64: 160, 64>}, {pipeline_mode = #tpu.pipeline_mode<synchronous>, transform_indices = @transform_6, window_bounds = array<i64: 1, 64>}, {pipeline_mode = #tpu.pipeline_mode<synchronous>, transform_indices = @transform_7, window_bounds = array<i64: 1, 64>}, {pipeline_mode = #tpu.pipeline_mode<synchronous>, transform_indices = @transform_8, window_bounds = array<i64: 192, 32>}, {pipeline_mode = #tpu.pipeline_mode<synchronous>, transform_indices = @transform_9, window_bounds = array<i64: 1, 32>}, {pipeline_mode = #tpu.pipeline_mode<synchronous>, transform_indices = @transform_10, window_bounds = array<i64: 1, 32>}, {pipeline_mode = #tpu.pipeline_mode<synchronous>, transform_indices = @transform_11, window_bounds = array<i64: 1, 32>}, {pipeline_mode = #tpu.pipeline_mode<synchronous>, transform_indices = @transform_12, window_bounds = array<i64: 8, 32>}, {pipeline_mode = #tpu.pipeline_mode<synchronous>, transform_indices = @transform_13, window_bounds = array<i64: 1, 32>}, {pipeline_mode = #tpu.pipeline_mode<synchronous>, transform_indices = @transform_14, window_bounds = array<i64: 32, 2>}, {pipeline_mode = #tpu.pipeline_mode<synchronous>, transform_indices = @transform_15, window_bounds = array<i64: 8, 2>}, {pipeline_mode = #tpu.pipeline_mode<synchronous>, transform_indices = @transform_16, window_bounds = array<i64: 1, 2>}, {transform_indices = @transform_17, window_bounds = array<i64: 2, 2>}]} {
    %c0 = arith.constant 0 : index
    %c0_0 = arith.constant 0 : index
    %c0_1 = arith.constant 0 : index
    %0 = vector.load %arg1[%c0, %c0_0, %c0_1] : memref<2x23x1xf32, #tpu.memory_space<vmem>>, vector<2x23x1xf32>
    %cst = arith.constant 0.000000e+00 : f32
    %1 = vector.broadcast %cst : f32 to vector<2x16x32xf32>
    %2 = vector.extract_strided_slice %0 {offsets = [0, 0, 0], sizes = [2, 16, 1], strides = [1, 1, 1]} : vector<2x23x1xf32> to vector<2x16x1xf32>
    %c0_2 = arith.constant 0 : index
    %c0_3 = arith.constant 0 : index
    %c0_4 = arith.constant 0 : index
    %3 = vector.load %arg3[%c0_2, %c0_3, %c0_4] : memref<8x1x32xf32, #tpu.memory_space<vmem>>, vector<1x1x32xf32>
    %4 = vector.shape_cast %3 : vector<1x1x32xf32> to vector<1x32xf32>
    %5 = vector.shape_cast %4 : vector<1x32xf32> to vector<1x1x32xf32>
    %6 = vector.broadcast %2 : vector<2x16x1xf32> to vector<2x16x32xf32>
    %7 = vector.broadcast %5 : vector<1x1x32xf32> to vector<2x16x32xf32>
    %8 = arith.mulf %6, %7 : vector<2x16x32xf32>
    %9 = arith.addf %1, %8 : vector<2x16x32xf32>
    %10 = vector.extract_strided_slice %0 {offsets = [0, 1, 0], sizes = [2, 16, 1], strides = [1, 1, 1]} : vector<2x23x1xf32> to vector<2x16x1xf32>
    %c1 = arith.constant 1 : index
    %c0_5 = arith.constant 0 : index
    %c0_6 = arith.constant 0 : index
    %11 = vector.load %arg3[%c1, %c0_5, %c0_6] : memref<8x1x32xf32, #tpu.memory_space<vmem>>, vector<1x1x32xf32>
    %12 = vector.shape_cast %11 : vector<1x1x32xf32> to vector<1x32xf32>
    %13 = vector.shape_cast %12 : vector<1x32xf32> to vector<1x1x32xf32>
    %14 = vector.broadcast %10 : vector<2x16x1xf32> to vector<2x16x32xf32>
    %15 = vector.broadcast %13 : vector<1x1x32xf32> to vector<2x16x32xf32>
    %16 = arith.mulf %14, %15 : vector<2x16x32xf32>
    %17 = arith.addf %9, %16 : vector<2x16x32xf32>
    %18 = vector.extract_strided_slice %0 {offsets = [0, 2, 0], sizes = [2, 16, 1], strides = [1, 1, 1]} : vector<2x23x1xf32> to vector<2x16x1xf32>
    %c2 = arith.constant 2 : index
    %c0_7 = arith.constant 0 : index
    %c0_8 = arith.constant 0 : index
    %19 = vector.load %arg3[%c2, %c0_7, %c0_8] : memref<8x1x32xf32, #tpu.memory_space<vmem>>, vector<1x1x32xf32>
    %20 = vector.shape_cast %19 : vector<1x1x32xf32> to vector<1x32xf32>
    %21 = vector.shape_cast %20 : vector<1x32xf32> to vector<1x1x32xf32>
    %22 = vector.broadcast %18 : vector<2x16x1xf32> to vector<2x16x32xf32>
    %23 = vector.broadcast %21 : vector<1x1x32xf32> to vector<2x16x32xf32>
    %24 = arith.mulf %22, %23 : vector<2x16x32xf32>
    %25 = arith.addf %17, %24 : vector<2x16x32xf32>
    %26 = vector.extract_strided_slice %0 {offsets = [0, 3, 0], sizes = [2, 16, 1], strides = [1, 1, 1]} : vector<2x23x1xf32> to vector<2x16x1xf32>
    %c3 = arith.constant 3 : index
    %c0_9 = arith.constant 0 : index
    %c0_10 = arith.constant 0 : index
    %27 = vector.load %arg3[%c3, %c0_9, %c0_10] : memref<8x1x32xf32, #tpu.memory_space<vmem>>, vector<1x1x32xf32>
    %28 = vector.shape_cast %27 : vector<1x1x32xf32> to vector<1x32xf32>
    %29 = vector.shape_cast %28 : vector<1x32xf32> to vector<1x1x32xf32>
    %30 = vector.broadcast %26 : vector<2x16x1xf32> to vector<2x16x32xf32>
    %31 = vector.broadcast %29 : vector<1x1x32xf32> to vector<2x16x32xf32>
    %32 = arith.mulf %30, %31 : vector<2x16x32xf32>
    %33 = arith.addf %25, %32 : vector<2x16x32xf32>
    %34 = vector.extract_strided_slice %0 {offsets = [0, 4, 0], sizes = [2, 16, 1], strides = [1, 1, 1]} : vector<2x23x1xf32> to vector<2x16x1xf32>
    %c4 = arith.constant 4 : index
    %c0_11 = arith.constant 0 : index
    %c0_12 = arith.constant 0 : index
    %35 = vector.load %arg3[%c4, %c0_11, %c0_12] : memref<8x1x32xf32, #tpu.memory_space<vmem>>, vector<1x1x32xf32>
    %36 = vector.shape_cast %35 : vector<1x1x32xf32> to vector<1x32xf32>
    %37 = vector.shape_cast %36 : vector<1x32xf32> to vector<1x1x32xf32>
    %38 = vector.broadcast %34 : vector<2x16x1xf32> to vector<2x16x32xf32>
    %39 = vector.broadcast %37 : vector<1x1x32xf32> to vector<2x16x32xf32>
    %40 = arith.mulf %38, %39 : vector<2x16x32xf32>
    %41 = arith.addf %33, %40 : vector<2x16x32xf32>
    %42 = vector.extract_strided_slice %0 {offsets = [0, 5, 0], sizes = [2, 16, 1], strides = [1, 1, 1]} : vector<2x23x1xf32> to vector<2x16x1xf32>
    %c5 = arith.constant 5 : index
    %c0_13 = arith.constant 0 : index
    %c0_14 = arith.constant 0 : index
    %43 = vector.load %arg3[%c5, %c0_13, %c0_14] : memref<8x1x32xf32, #tpu.memory_space<vmem>>, vector<1x1x32xf32>
    %44 = vector.shape_cast %43 : vector<1x1x32xf32> to vector<1x32xf32>
    %45 = vector.shape_cast %44 : vector<1x32xf32> to vector<1x1x32xf32>
    %46 = vector.broadcast %42 : vector<2x16x1xf32> to vector<2x16x32xf32>
    %47 = vector.broadcast %45 : vector<1x1x32xf32> to vector<2x16x32xf32>
    %48 = arith.mulf %46, %47 : vector<2x16x32xf32>
    %49 = arith.addf %41, %48 : vector<2x16x32xf32>
    %50 = vector.extract_strided_slice %0 {offsets = [0, 6, 0], sizes = [2, 16, 1], strides = [1, 1, 1]} : vector<2x23x1xf32> to vector<2x16x1xf32>
    %c6 = arith.constant 6 : index
    %c0_15 = arith.constant 0 : index
    %c0_16 = arith.constant 0 : index
    %51 = vector.load %arg3[%c6, %c0_15, %c0_16] : memref<8x1x32xf32, #tpu.memory_space<vmem>>, vector<1x1x32xf32>
    %52 = vector.shape_cast %51 : vector<1x1x32xf32> to vector<1x32xf32>
    %53 = vector.shape_cast %52 : vector<1x32xf32> to vector<1x1x32xf32>
    %54 = vector.broadcast %50 : vector<2x16x1xf32> to vector<2x16x32xf32>
    %55 = vector.broadcast %53 : vector<1x1x32xf32> to vector<2x16x32xf32>
    %56 = arith.mulf %54, %55 : vector<2x16x32xf32>
    %57 = arith.addf %49, %56 : vector<2x16x32xf32>
    %58 = vector.extract_strided_slice %0 {offsets = [0, 7, 0], sizes = [2, 16, 1], strides = [1, 1, 1]} : vector<2x23x1xf32> to vector<2x16x1xf32>
    %c7 = arith.constant 7 : index
    %c0_17 = arith.constant 0 : index
    %c0_18 = arith.constant 0 : index
    %59 = vector.load %arg3[%c7, %c0_17, %c0_18] : memref<8x1x32xf32, #tpu.memory_space<vmem>>, vector<1x1x32xf32>
    %60 = vector.shape_cast %59 : vector<1x1x32xf32> to vector<1x32xf32>
    %61 = vector.shape_cast %60 : vector<1x32xf32> to vector<1x1x32xf32>
    %62 = vector.broadcast %58 : vector<2x16x1xf32> to vector<2x16x32xf32>
    %63 = vector.broadcast %61 : vector<1x1x32xf32> to vector<2x16x32xf32>
    %64 = arith.mulf %62, %63 : vector<2x16x32xf32>
    %65 = arith.addf %57, %64 : vector<2x16x32xf32>
    %c0_19 = arith.constant 0 : index
    %c0_20 = arith.constant 0 : index
    %66 = vector.load %arg4[%c0_19, %c0_20] : memref<1x32xf32, #tpu.memory_space<vmem>>, vector<1x32xf32>
    %67 = vector.shape_cast %66 : vector<1x32xf32> to vector<1x1x32xf32>
    %68 = vector.broadcast %67 : vector<1x1x32xf32> to vector<2x16x32xf32>
    %69 = arith.mulf %65, %68 : vector<2x16x32xf32>
    %c0_21 = arith.constant 0 : index
    %c0_22 = arith.constant 0 : index
    %70 = vector.load %arg5[%c0_21, %c0_22] : memref<1x32xf32, #tpu.memory_space<vmem>>, vector<1x32xf32>
    %71 = vector.shape_cast %70 : vector<1x32xf32> to vector<1x1x32xf32>
    %72 = vector.broadcast %71 : vector<1x1x32xf32> to vector<2x16x32xf32>
    %73 = arith.addf %69, %72 : vector<2x16x32xf32>
    %cst_23 = arith.constant 0.000000e+00 : f32
    %74 = vector.broadcast %cst_23 : f32 to vector<2x16x32xf32>
    %75 = arith.maximumf %73, %74 : vector<2x16x32xf32>
    %cst_24 = arith.constant 0.000000e+00 : f32
    %76 = vector.broadcast %cst_24 : f32 to vector<2x2x32xf32>
    %77 = tpu.concatenate %76, %75, %76 in 1 : vector<2x2x32xf32>, vector<2x16x32xf32>, vector<2x2x32xf32> -> vector<2x20x32xf32>
    %78 = vector.extract_strided_slice %77 {offsets = [0, 0, 0], sizes = [2, 16, 32], strides = [1, 1, 1]} : vector<2x20x32xf32> to vector<2x16x32xf32>
    %79 = vector.extract_strided_slice %77 {offsets = [0, 1, 0], sizes = [2, 16, 32], strides = [1, 1, 1]} : vector<2x20x32xf32> to vector<2x16x32xf32>
    %80 = vector.extract_strided_slice %77 {offsets = [0, 2, 0], sizes = [2, 16, 32], strides = [1, 1, 1]} : vector<2x20x32xf32> to vector<2x16x32xf32>
    %81 = vector.extract_strided_slice %77 {offsets = [0, 3, 0], sizes = [2, 16, 32], strides = [1, 1, 1]} : vector<2x20x32xf32> to vector<2x16x32xf32>
    %82 = vector.extract_strided_slice %77 {offsets = [0, 4, 0], sizes = [2, 16, 32], strides = [1, 1, 1]} : vector<2x20x32xf32> to vector<2x16x32xf32>
    %83 = tpu.concatenate %78, %79, %80, %81, %82 in 2 : vector<2x16x32xf32>, vector<2x16x32xf32>, vector<2x16x32xf32>, vector<2x16x32xf32>, vector<2x16x32xf32> -> vector<2x16x160xf32>
    %84 = vector.shape_cast %83 : vector<2x16x160xf32> to vector<32x160xf32>
    %c0_25 = arith.constant 0 : index
    %c0_26 = arith.constant 0 : index
    %85 = vector.load %arg6[%c0_25, %c0_26] : memref<160x64xf32, #tpu.memory_space<vmem>>, vector<160x64xf32>
    %cst_27 = arith.constant dense<0.000000e+00> : vector<32x64xf32>
    %86 = tpu.matmul %84, %85, %cst_27 {dimension_numbers = #tpu.dot_dimension_numbers<[1], [0], [0], [1], [0, 0, 1, 1], [], []>} : vector<32x160xf32>, vector<160x64xf32>, vector<32x64xf32> -> vector<32x64xf32>
    %87 = vector.shape_cast %86 : vector<32x64xf32> to vector<2x16x64xf32>
    %c0_28 = arith.constant 0 : index
    %c0_29 = arith.constant 0 : index
    %88 = vector.load %arg7[%c0_28, %c0_29] : memref<1x64xf32, #tpu.memory_space<vmem>>, vector<1x64xf32>
    %89 = vector.shape_cast %88 : vector<1x64xf32> to vector<1x1x64xf32>
    %90 = vector.broadcast %89 : vector<1x1x64xf32> to vector<2x16x64xf32>
    %91 = arith.mulf %87, %90 : vector<2x16x64xf32>
    %c0_30 = arith.constant 0 : index
    %c0_31 = arith.constant 0 : index
    %92 = vector.load %arg8[%c0_30, %c0_31] : memref<1x64xf32, #tpu.memory_space<vmem>>, vector<1x64xf32>
    %93 = vector.shape_cast %92 : vector<1x64xf32> to vector<1x1x64xf32>
    %94 = vector.broadcast %93 : vector<1x1x64xf32> to vector<2x16x64xf32>
    %95 = arith.addf %91, %94 : vector<2x16x64xf32>
    %cst_32 = arith.constant 0.000000e+00 : f32
    %96 = vector.broadcast %cst_32 : f32 to vector<2x16x64xf32>
    %97 = arith.maximumf %95, %96 : vector<2x16x64xf32>
    %cst_33 = arith.constant 0.000000e+00 : f32
    %98 = vector.broadcast %cst_33 : f32 to vector<2x1x64xf32>
    %99 = tpu.concatenate %98, %97, %98 in 1 : vector<2x1x64xf32>, vector<2x16x64xf32>, vector<2x1x64xf32> -> vector<2x18x64xf32>
    %100 = vector.extract_strided_slice %99 {offsets = [0, 0, 0], sizes = [2, 16, 64], strides = [1, 1, 1]} : vector<2x18x64xf32> to vector<2x16x64xf32>
    %101 = vector.extract_strided_slice %99 {offsets = [0, 1, 0], sizes = [2, 16, 64], strides = [1, 1, 1]} : vector<2x18x64xf32> to vector<2x16x64xf32>
    %102 = vector.extract_strided_slice %99 {offsets = [0, 2, 0], sizes = [2, 16, 64], strides = [1, 1, 1]} : vector<2x18x64xf32> to vector<2x16x64xf32>
    %103 = tpu.concatenate %100, %101, %102 in 2 : vector<2x16x64xf32>, vector<2x16x64xf32>, vector<2x16x64xf32> -> vector<2x16x192xf32>
    %104 = vector.shape_cast %103 : vector<2x16x192xf32> to vector<32x192xf32>
    %c0_34 = arith.constant 0 : index
    %c0_35 = arith.constant 0 : index
    %105 = vector.load %arg9[%c0_34, %c0_35] : memref<192x32xf32, #tpu.memory_space<vmem>>, vector<192x32xf32>
    %cst_36 = arith.constant dense<0.000000e+00> : vector<32x32xf32>
    %106 = tpu.matmul %104, %105, %cst_36 {dimension_numbers = #tpu.dot_dimension_numbers<[1], [0], [0], [1], [0, 0, 1, 1], [], []>} : vector<32x192xf32>, vector<192x32xf32>, vector<32x32xf32> -> vector<32x32xf32>
    %107 = vector.shape_cast %106 : vector<32x32xf32> to vector<2x16x32xf32>
    %c0_37 = arith.constant 0 : index
    %c0_38 = arith.constant 0 : index
    %108 = vector.load %arg10[%c0_37, %c0_38] : memref<1x32xf32, #tpu.memory_space<vmem>>, vector<1x32xf32>
    %109 = vector.shape_cast %108 : vector<1x32xf32> to vector<1x1x32xf32>
    %110 = vector.broadcast %109 : vector<1x1x32xf32> to vector<2x16x32xf32>
    %111 = arith.mulf %107, %110 : vector<2x16x32xf32>
    %c0_39 = arith.constant 0 : index
    %c0_40 = arith.constant 0 : index
    %112 = vector.load %arg11[%c0_39, %c0_40] : memref<1x32xf32, #tpu.memory_space<vmem>>, vector<1x32xf32>
    %113 = vector.shape_cast %112 : vector<1x32xf32> to vector<1x1x32xf32>
    %114 = vector.broadcast %113 : vector<1x1x32xf32> to vector<2x16x32xf32>
    %115 = arith.addf %111, %114 : vector<2x16x32xf32>
    %cst_41 = arith.constant 0.000000e+00 : f32
    %116 = vector.broadcast %cst_41 : f32 to vector<2x16x32xf32>
    %117 = arith.maximumf %115, %116 : vector<2x16x32xf32>
    %cst_42 = arith.constant dense<0.000000e+00> : vector<2x32xf32>
    %118 = vector.multi_reduction <add>, %117, %cst_42 [1] : vector<2x16x32xf32> to vector<2x32xf32>
    %cst_43 = arith.constant 6.250000e-02 : f32
    %119 = vector.broadcast %cst_43 : f32 to vector<2x32xf32>
    %120 = arith.mulf %118, %119 : vector<2x32xf32>
    %c0_44 = arith.constant 0 : index
    %c0_45 = arith.constant 0 : index
    %c0_46 = arith.constant 0 : index
    %121 = vector.load %arg2[%c0_44, %c0_45, %c0_46] : memref<16x2x1xf32, #tpu.memory_space<vmem>>, vector<16x2x1xf32>
    %c0_47 = arith.constant 0 : index
    %c0_48 = arith.constant 0 : index
    %122 = vector.load %arg12[%c0_47, %c0_48] : memref<1x32xf32, #tpu.memory_space<vmem>>, vector<1x32xf32>
    %123 = vector.shape_cast %122 : vector<1x32xf32> to vector<1x1x32xf32>
    %124 = vector.broadcast %121 : vector<16x2x1xf32> to vector<16x2x32xf32>
    %125 = vector.broadcast %123 : vector<1x1x32xf32> to vector<16x2x32xf32>
    %126 = arith.mulf %124, %125 : vector<16x2x32xf32>
    %c0_49 = arith.constant 0 : index
    %c0_50 = arith.constant 0 : index
    %127 = vector.load %arg14[%c0_49, %c0_50] : memref<1x32xf32, #tpu.memory_space<vmem>>, vector<1x32xf32>
    %128 = vector.shape_cast %127 : vector<1x32xf32> to vector<1x1x32xf32>
    %129 = vector.broadcast %128 : vector<1x1x32xf32> to vector<16x2x32xf32>
    %130 = arith.addf %126, %129 : vector<16x2x32xf32>
    %c0_51 = arith.constant 0 : index
    %c0_52 = arith.constant 0 : index
    %c0_53 = arith.constant 0 : index
    %131 = vector.load %arg19[%c0_51, %c0_52, %c0_53] : memref<16x2x32xf32, #tpu.memory_space<vmem>>, vector<16x2x32xf32>
    tpu.vector_store %arg19[%c0_51, %c0_52, %c0_53], %130 {strides = array<i32>} : memref<16x2x32xf32, #tpu.memory_space<vmem>>, vector<16x2x32xf32>,
    %cst_54 = arith.constant 0.000000e+00 : f32
    %132 = vector.broadcast %cst_54 : f32 to vector<2x8xf32>
    %c0_i32 = arith.constant 0 : i32
    %133 = arith.index_cast %c0_i32 : i32 to index
    %c0_55 = arith.constant 0 : index
    %c0_56 = arith.constant 0 : index
    %134 = vector.load %arg19[%133, %c0_55, %c0_56] : memref<16x2x32xf32, #tpu.memory_space<vmem>>, vector<1x2x32xf32>
    %135 = vector.shape_cast %134 : vector<1x2x32xf32> to vector<2x32xf32>
    %c0_57 = arith.constant 0 : index
    %c0_58 = arith.constant 0 : index
    %136 = vector.load %arg13[%c0_57, %c0_58] : memref<8x32xf32, #tpu.memory_space<vmem>>, vector<8x32xf32>
    %cst_59 = arith.constant dense<0.000000e+00> : vector<2x32xf32>
    %137 = tpu.matmul %132, %136, %cst_59 {dimension_numbers = #tpu.dot_dimension_numbers<[1], [0], [0], [1], [0, 0, 1, 1], [], []>} : vector<2x8xf32>, vector<8x32xf32>, vector<2x32xf32> -> vector<2x32xf32>
    %138 = arith.addf %135, %137 : vector<2x32xf32>
    %139 = vector.extract_strided_slice %138 {offsets = [0, 0], sizes = [2, 24], strides = [1, 1]} : vector<2x32xf32> to vector<2x24xf32>
    %140 = arith.negf %139 : vector<2x24xf32>
    %141 = math.exp %140 : vector<2x24xf32>
    %cst_60 = arith.constant 1.000000e+00 : f32
    %142 = vector.broadcast %cst_60 : f32 to vector<2x24xf32>
    %143 = arith.addf %142, %141 : vector<2x24xf32>
    %144 = arith.divf %142, %143 : vector<2x24xf32>
    %145 = vector.extract_strided_slice %144 {offsets = [0, 0], sizes = [2, 8], strides = [1, 1]} : vector<2x24xf32> to vector<2x8xf32>
    %146 = vector.extract_strided_slice %144 {offsets = [0, 8], sizes = [2, 8], strides = [1, 1]} : vector<2x24xf32> to vector<2x8xf32>
    %147 = vector.extract_strided_slice %144 {offsets = [0, 16], sizes = [2, 8], strides = [1, 1]} : vector<2x24xf32> to vector<2x8xf32>
    %148 = vector.extract_strided_slice %138 {offsets = [0, 24], sizes = [2, 8], strides = [1, 1]} : vector<2x32xf32> to vector<2x8xf32>
    %149 = math.tanh %148 : vector<2x8xf32>
    %150 = arith.mulf %146, %132 : vector<2x8xf32>
    %151 = arith.mulf %145, %149 : vector<2x8xf32>
    %152 = arith.addf %150, %151 : vector<2x8xf32>
    %153 = math.tanh %152 : vector<2x8xf32>
    %154 = arith.mulf %147, %153 : vector<2x8xf32>
    %155 = arith.addf %132, %154 : vector<2x8xf32>
    %c1_i32 = arith.constant 1 : i32
    %156 = arith.index_cast %c1_i32 : i32 to index
    %c0_61 = arith.constant 0 : index
    %c0_62 = arith.constant 0 : index
    %157 = vector.load %arg19[%156, %c0_61, %c0_62] : memref<16x2x32xf32, #tpu.memory_space<vmem>>, vector<1x2x32xf32>
    %158 = vector.shape_cast %157 : vector<1x2x32xf32> to vector<2x32xf32>
    %c0_63 = arith.constant 0 : index
    %c0_64 = arith.constant 0 : index
    %159 = vector.load %arg13[%c0_63, %c0_64] : memref<8x32xf32, #tpu.memory_space<vmem>>, vector<8x32xf32>
    %cst_65 = arith.constant dense<0.000000e+00> : vector<2x32xf32>
    %160 = tpu.matmul %154, %159, %cst_65 {dimension_numbers = #tpu.dot_dimension_numbers<[1], [0], [0], [1], [0, 0, 1, 1], [], []>} : vector<2x8xf32>, vector<8x32xf32>, vector<2x32xf32> -> vector<2x32xf32>
    %161 = arith.addf %158, %160 : vector<2x32xf32>
    %162 = vector.extract_strided_slice %161 {offsets = [0, 0], sizes = [2, 24], strides = [1, 1]} : vector<2x32xf32> to vector<2x24xf32>
    %163 = arith.negf %162 : vector<2x24xf32>
    %164 = math.exp %163 : vector<2x24xf32>
    %cst_66 = arith.constant 1.000000e+00 : f32
    %165 = vector.broadcast %cst_66 : f32 to vector<2x24xf32>
    %166 = arith.addf %165, %164 : vector<2x24xf32>
    %167 = arith.divf %165, %166 : vector<2x24xf32>
    %168 = vector.extract_strided_slice %167 {offsets = [0, 0], sizes = [2, 8], strides = [1, 1]} : vector<2x24xf32> to vector<2x8xf32>
    %169 = vector.extract_strided_slice %167 {offsets = [0, 8], sizes = [2, 8], strides = [1, 1]} : vector<2x24xf32> to vector<2x8xf32>
    %170 = vector.extract_strided_slice %167 {offsets = [0, 16], sizes = [2, 8], strides = [1, 1]} : vector<2x24xf32> to vector<2x8xf32>
    %171 = vector.extract_strided_slice %161 {offsets = [0, 24], sizes = [2, 8], strides = [1, 1]} : vector<2x32xf32> to vector<2x8xf32>
    %172 = math.tanh %171 : vector<2x8xf32>
    %173 = arith.mulf %169, %152 : vector<2x8xf32>
    %174 = arith.mulf %168, %172 : vector<2x8xf32>
    %175 = arith.addf %173, %174 : vector<2x8xf32>
    %176 = math.tanh %175 : vector<2x8xf32>
    %177 = arith.mulf %170, %176 : vector<2x8xf32>
    %178 = arith.addf %155, %177 : vector<2x8xf32>
    %c2_i32 = arith.constant 2 : i32
    %179 = arith.index_cast %c2_i32 : i32 to index
    %c0_67 = arith.constant 0 : index
    %c0_68 = arith.constant 0 : index
    %180 = vector.load %arg19[%179, %c0_67, %c0_68] : memref<16x2x32xf32, #tpu.memory_space<vmem>>, vector<1x2x32xf32>
    %181 = vector.shape_cast %180 : vector<1x2x32xf32> to vector<2x32xf32>
    %c0_69 = arith.constant 0 : index
    %c0_70 = arith.constant 0 : index
    %182 = vector.load %arg13[%c0_69, %c0_70] : memref<8x32xf32, #tpu.memory_space<vmem>>, vector<8x32xf32>
    %cst_71 = arith.constant dense<0.000000e+00> : vector<2x32xf32>
    %183 = tpu.matmul %177, %182, %cst_71 {dimension_numbers = #tpu.dot_dimension_numbers<[1], [0], [0], [1], [0, 0, 1, 1], [], []>} : vector<2x8xf32>, vector<8x32xf32>, vector<2x32xf32> -> vector<2x32xf32>
    %184 = arith.addf %181, %183 : vector<2x32xf32>
    %185 = vector.extract_strided_slice %184 {offsets = [0, 0], sizes = [2, 24], strides = [1, 1]} : vector<2x32xf32> to vector<2x24xf32>
    %186 = arith.negf %185 : vector<2x24xf32>
    %187 = math.exp %186 : vector<2x24xf32>
    %cst_72 = arith.constant 1.000000e+00 : f32
    %188 = vector.broadcast %cst_72 : f32 to vector<2x24xf32>
    %189 = arith.addf %188, %187 : vector<2x24xf32>
    %190 = arith.divf %188, %189 : vector<2x24xf32>
    %191 = vector.extract_strided_slice %190 {offsets = [0, 0], sizes = [2, 8], strides = [1, 1]} : vector<2x24xf32> to vector<2x8xf32>
    %192 = vector.extract_strided_slice %190 {offsets = [0, 8], sizes = [2, 8], strides = [1, 1]} : vector<2x24xf32> to vector<2x8xf32>
    %193 = vector.extract_strided_slice %190 {offsets = [0, 16], sizes = [2, 8], strides = [1, 1]} : vector<2x24xf32> to vector<2x8xf32>
    %194 = vector.extract_strided_slice %184 {offsets = [0, 24], sizes = [2, 8], strides = [1, 1]} : vector<2x32xf32> to vector<2x8xf32>
    %195 = math.tanh %194 : vector<2x8xf32>
    %196 = arith.mulf %192, %175 : vector<2x8xf32>
    %197 = arith.mulf %191, %195 : vector<2x8xf32>
    %198 = arith.addf %196, %197 : vector<2x8xf32>
    %199 = math.tanh %198 : vector<2x8xf32>
    %200 = arith.mulf %193, %199 : vector<2x8xf32>
    %201 = arith.addf %178, %200 : vector<2x8xf32>
    %c3_i32 = arith.constant 3 : i32
    %202 = arith.index_cast %c3_i32 : i32 to index
    %c0_73 = arith.constant 0 : index
    %c0_74 = arith.constant 0 : index
    %203 = vector.load %arg19[%202, %c0_73, %c0_74] : memref<16x2x32xf32, #tpu.memory_space<vmem>>, vector<1x2x32xf32>
    %204 = vector.shape_cast %203 : vector<1x2x32xf32> to vector<2x32xf32>
    %c0_75 = arith.constant 0 : index
    %c0_76 = arith.constant 0 : index
    %205 = vector.load %arg13[%c0_75, %c0_76] : memref<8x32xf32, #tpu.memory_space<vmem>>, vector<8x32xf32>
    %cst_77 = arith.constant dense<0.000000e+00> : vector<2x32xf32>
    %206 = tpu.matmul %200, %205, %cst_77 {dimension_numbers = #tpu.dot_dimension_numbers<[1], [0], [0], [1], [0, 0, 1, 1], [], []>} : vector<2x8xf32>, vector<8x32xf32>, vector<2x32xf32> -> vector<2x32xf32>
    %207 = arith.addf %204, %206 : vector<2x32xf32>
    %208 = vector.extract_strided_slice %207 {offsets = [0, 0], sizes = [2, 24], strides = [1, 1]} : vector<2x32xf32> to vector<2x24xf32>
    %209 = arith.negf %208 : vector<2x24xf32>
    %210 = math.exp %209 : vector<2x24xf32>
    %cst_78 = arith.constant 1.000000e+00 : f32
    %211 = vector.broadcast %cst_78 : f32 to vector<2x24xf32>
    %212 = arith.addf %211, %210 : vector<2x24xf32>
    %213 = arith.divf %211, %212 : vector<2x24xf32>
    %214 = vector.extract_strided_slice %213 {offsets = [0, 0], sizes = [2, 8], strides = [1, 1]} : vector<2x24xf32> to vector<2x8xf32>
    %215 = vector.extract_strided_slice %213 {offsets = [0, 8], sizes = [2, 8], strides = [1, 1]} : vector<2x24xf32> to vector<2x8xf32>
    %216 = vector.extract_strided_slice %213 {offsets = [0, 16], sizes = [2, 8], strides = [1, 1]} : vector<2x24xf32> to vector<2x8xf32>
    %217 = vector.extract_strided_slice %207 {offsets = [0, 24], sizes = [2, 8], strides = [1, 1]} : vector<2x32xf32> to vector<2x8xf32>
    %218 = math.tanh %217 : vector<2x8xf32>
    %219 = arith.mulf %215, %198 : vector<2x8xf32>
    %220 = arith.mulf %214, %218 : vector<2x8xf32>
    %221 = arith.addf %219, %220 : vector<2x8xf32>
    %222 = math.tanh %221 : vector<2x8xf32>
    %223 = arith.mulf %216, %222 : vector<2x8xf32>
    %224 = arith.addf %201, %223 : vector<2x8xf32>
    %c4_i32 = arith.constant 4 : i32
    %225 = arith.index_cast %c4_i32 : i32 to index
    %c0_79 = arith.constant 0 : index
    %c0_80 = arith.constant 0 : index
    %226 = vector.load %arg19[%225, %c0_79, %c0_80] : memref<16x2x32xf32, #tpu.memory_space<vmem>>, vector<1x2x32xf32>
    %227 = vector.shape_cast %226 : vector<1x2x32xf32> to vector<2x32xf32>
    %c0_81 = arith.constant 0 : index
    %c0_82 = arith.constant 0 : index
    %228 = vector.load %arg13[%c0_81, %c0_82] : memref<8x32xf32, #tpu.memory_space<vmem>>, vector<8x32xf32>
    %cst_83 = arith.constant dense<0.000000e+00> : vector<2x32xf32>
    %229 = tpu.matmul %223, %228, %cst_83 {dimension_numbers = #tpu.dot_dimension_numbers<[1], [0], [0], [1], [0, 0, 1, 1], [], []>} : vector<2x8xf32>, vector<8x32xf32>, vector<2x32xf32> -> vector<2x32xf32>
    %230 = arith.addf %227, %229 : vector<2x32xf32>
    %231 = vector.extract_strided_slice %230 {offsets = [0, 0], sizes = [2, 24], strides = [1, 1]} : vector<2x32xf32> to vector<2x24xf32>
    %232 = arith.negf %231 : vector<2x24xf32>
    %233 = math.exp %232 : vector<2x24xf32>
    %cst_84 = arith.constant 1.000000e+00 : f32
    %234 = vector.broadcast %cst_84 : f32 to vector<2x24xf32>
    %235 = arith.addf %234, %233 : vector<2x24xf32>
    %236 = arith.divf %234, %235 : vector<2x24xf32>
    %237 = vector.extract_strided_slice %236 {offsets = [0, 0], sizes = [2, 8], strides = [1, 1]} : vector<2x24xf32> to vector<2x8xf32>
    %238 = vector.extract_strided_slice %236 {offsets = [0, 8], sizes = [2, 8], strides = [1, 1]} : vector<2x24xf32> to vector<2x8xf32>
    %239 = vector.extract_strided_slice %236 {offsets = [0, 16], sizes = [2, 8], strides = [1, 1]} : vector<2x24xf32> to vector<2x8xf32>
    %240 = vector.extract_strided_slice %230 {offsets = [0, 24], sizes = [2, 8], strides = [1, 1]} : vector<2x32xf32> to vector<2x8xf32>
    %241 = math.tanh %240 : vector<2x8xf32>
    %242 = arith.mulf %238, %221 : vector<2x8xf32>
    %243 = arith.mulf %237, %241 : vector<2x8xf32>
    %244 = arith.addf %242, %243 : vector<2x8xf32>
    %245 = math.tanh %244 : vector<2x8xf32>
    %246 = arith.mulf %239, %245 : vector<2x8xf32>
    %247 = arith.addf %224, %246 : vector<2x8xf32>
    %c5_i32 = arith.constant 5 : i32
    %248 = arith.index_cast %c5_i32 : i32 to index
    %c0_85 = arith.constant 0 : index
    %c0_86 = arith.constant 0 : index
    %249 = vector.load %arg19[%248, %c0_85, %c0_86] : memref<16x2x32xf32, #tpu.memory_space<vmem>>, vector<1x2x32xf32>
    %250 = vector.shape_cast %249 : vector<1x2x32xf32> to vector<2x32xf32>
    %c0_87 = arith.constant 0 : index
    %c0_88 = arith.constant 0 : index
    %251 = vector.load %arg13[%c0_87, %c0_88] : memref<8x32xf32, #tpu.memory_space<vmem>>, vector<8x32xf32>
    %cst_89 = arith.constant dense<0.000000e+00> : vector<2x32xf32>
    %252 = tpu.matmul %246, %251, %cst_89 {dimension_numbers = #tpu.dot_dimension_numbers<[1], [0], [0], [1], [0, 0, 1, 1], [], []>} : vector<2x8xf32>, vector<8x32xf32>, vector<2x32xf32> -> vector<2x32xf32>
    %253 = arith.addf %250, %252 : vector<2x32xf32>
    %254 = vector.extract_strided_slice %253 {offsets = [0, 0], sizes = [2, 24], strides = [1, 1]} : vector<2x32xf32> to vector<2x24xf32>
    %255 = arith.negf %254 : vector<2x24xf32>
    %256 = math.exp %255 : vector<2x24xf32>
    %cst_90 = arith.constant 1.000000e+00 : f32
    %257 = vector.broadcast %cst_90 : f32 to vector<2x24xf32>
    %258 = arith.addf %257, %256 : vector<2x24xf32>
    %259 = arith.divf %257, %258 : vector<2x24xf32>
    %260 = vector.extract_strided_slice %259 {offsets = [0, 0], sizes = [2, 8], strides = [1, 1]} : vector<2x24xf32> to vector<2x8xf32>
    %261 = vector.extract_strided_slice %259 {offsets = [0, 8], sizes = [2, 8], strides = [1, 1]} : vector<2x24xf32> to vector<2x8xf32>
    %262 = vector.extract_strided_slice %259 {offsets = [0, 16], sizes = [2, 8], strides = [1, 1]} : vector<2x24xf32> to vector<2x8xf32>
    %263 = vector.extract_strided_slice %253 {offsets = [0, 24], sizes = [2, 8], strides = [1, 1]} : vector<2x32xf32> to vector<2x8xf32>
    %264 = math.tanh %263 : vector<2x8xf32>
    %265 = arith.mulf %261, %244 : vector<2x8xf32>
    %266 = arith.mulf %260, %264 : vector<2x8xf32>
    %267 = arith.addf %265, %266 : vector<2x8xf32>
    %268 = math.tanh %267 : vector<2x8xf32>
    %269 = arith.mulf %262, %268 : vector<2x8xf32>
    %270 = arith.addf %247, %269 : vector<2x8xf32>
    %c6_i32 = arith.constant 6 : i32
    %271 = arith.index_cast %c6_i32 : i32 to index
    %c0_91 = arith.constant 0 : index
    %c0_92 = arith.constant 0 : index
    %272 = vector.load %arg19[%271, %c0_91, %c0_92] : memref<16x2x32xf32, #tpu.memory_space<vmem>>, vector<1x2x32xf32>
    %273 = vector.shape_cast %272 : vector<1x2x32xf32> to vector<2x32xf32>
    %c0_93 = arith.constant 0 : index
    %c0_94 = arith.constant 0 : index
    %274 = vector.load %arg13[%c0_93, %c0_94] : memref<8x32xf32, #tpu.memory_space<vmem>>, vector<8x32xf32>
    %cst_95 = arith.constant dense<0.000000e+00> : vector<2x32xf32>
    %275 = tpu.matmul %269, %274, %cst_95 {dimension_numbers = #tpu.dot_dimension_numbers<[1], [0], [0], [1], [0, 0, 1, 1], [], []>} : vector<2x8xf32>, vector<8x32xf32>, vector<2x32xf32> -> vector<2x32xf32>
    %276 = arith.addf %273, %275 : vector<2x32xf32>
    %277 = vector.extract_strided_slice %276 {offsets = [0, 0], sizes = [2, 24], strides = [1, 1]} : vector<2x32xf32> to vector<2x24xf32>
    %278 = arith.negf %277 : vector<2x24xf32>
    %279 = math.exp %278 : vector<2x24xf32>
    %cst_96 = arith.constant 1.000000e+00 : f32
    %280 = vector.broadcast %cst_96 : f32 to vector<2x24xf32>
    %281 = arith.addf %280, %279 : vector<2x24xf32>
    %282 = arith.divf %280, %281 : vector<2x24xf32>
    %283 = vector.extract_strided_slice %282 {offsets = [0, 0], sizes = [2, 8], strides = [1, 1]} : vector<2x24xf32> to vector<2x8xf32>
    %284 = vector.extract_strided_slice %282 {offsets = [0, 8], sizes = [2, 8], strides = [1, 1]} : vector<2x24xf32> to vector<2x8xf32>
    %285 = vector.extract_strided_slice %282 {offsets = [0, 16], sizes = [2, 8], strides = [1, 1]} : vector<2x24xf32> to vector<2x8xf32>
    %286 = vector.extract_strided_slice %276 {offsets = [0, 24], sizes = [2, 8], strides = [1, 1]} : vector<2x32xf32> to vector<2x8xf32>
    %287 = math.tanh %286 : vector<2x8xf32>
    %288 = arith.mulf %284, %267 : vector<2x8xf32>
    %289 = arith.mulf %283, %287 : vector<2x8xf32>
    %290 = arith.addf %288, %289 : vector<2x8xf32>
    %291 = math.tanh %290 : vector<2x8xf32>
    %292 = arith.mulf %285, %291 : vector<2x8xf32>
    %293 = arith.addf %270, %292 : vector<2x8xf32>
    %c7_i32 = arith.constant 7 : i32
    %294 = arith.index_cast %c7_i32 : i32 to index
    %c0_97 = arith.constant 0 : index
    %c0_98 = arith.constant 0 : index
    %295 = vector.load %arg19[%294, %c0_97, %c0_98] : memref<16x2x32xf32, #tpu.memory_space<vmem>>, vector<1x2x32xf32>
    %296 = vector.shape_cast %295 : vector<1x2x32xf32> to vector<2x32xf32>
    %c0_99 = arith.constant 0 : index
    %c0_100 = arith.constant 0 : index
    %297 = vector.load %arg13[%c0_99, %c0_100] : memref<8x32xf32, #tpu.memory_space<vmem>>, vector<8x32xf32>
    %cst_101 = arith.constant dense<0.000000e+00> : vector<2x32xf32>
    %298 = tpu.matmul %292, %297, %cst_101 {dimension_numbers = #tpu.dot_dimension_numbers<[1], [0], [0], [1], [0, 0, 1, 1], [], []>} : vector<2x8xf32>, vector<8x32xf32>, vector<2x32xf32> -> vector<2x32xf32>
    %299 = arith.addf %296, %298 : vector<2x32xf32>
    %300 = vector.extract_strided_slice %299 {offsets = [0, 0], sizes = [2, 24], strides = [1, 1]} : vector<2x32xf32> to vector<2x24xf32>
    %301 = arith.negf %300 : vector<2x24xf32>
    %302 = math.exp %301 : vector<2x24xf32>
    %cst_102 = arith.constant 1.000000e+00 : f32
    %303 = vector.broadcast %cst_102 : f32 to vector<2x24xf32>
    %304 = arith.addf %303, %302 : vector<2x24xf32>
    %305 = arith.divf %303, %304 : vector<2x24xf32>
    %306 = vector.extract_strided_slice %305 {offsets = [0, 0], sizes = [2, 8], strides = [1, 1]} : vector<2x24xf32> to vector<2x8xf32>
    %307 = vector.extract_strided_slice %305 {offsets = [0, 8], sizes = [2, 8], strides = [1, 1]} : vector<2x24xf32> to vector<2x8xf32>
    %308 = vector.extract_strided_slice %305 {offsets = [0, 16], sizes = [2, 8], strides = [1, 1]} : vector<2x24xf32> to vector<2x8xf32>
    %309 = vector.extract_strided_slice %299 {offsets = [0, 24], sizes = [2, 8], strides = [1, 1]} : vector<2x32xf32> to vector<2x8xf32>
    %310 = math.tanh %309 : vector<2x8xf32>
    %311 = arith.mulf %307, %290 : vector<2x8xf32>
    %312 = arith.mulf %306, %310 : vector<2x8xf32>
    %313 = arith.addf %311, %312 : vector<2x8xf32>
    %314 = math.tanh %313 : vector<2x8xf32>
    %315 = arith.mulf %308, %314 : vector<2x8xf32>
    %316 = arith.addf %293, %315 : vector<2x8xf32>
    %c8_i32 = arith.constant 8 : i32
    %317 = arith.index_cast %c8_i32 : i32 to index
    %c0_103 = arith.constant 0 : index
    %c0_104 = arith.constant 0 : index
    %318 = vector.load %arg19[%317, %c0_103, %c0_104] : memref<16x2x32xf32, #tpu.memory_space<vmem>>, vector<1x2x32xf32>
    %319 = vector.shape_cast %318 : vector<1x2x32xf32> to vector<2x32xf32>
    %c0_105 = arith.constant 0 : index
    %c0_106 = arith.constant 0 : index
    %320 = vector.load %arg13[%c0_105, %c0_106] : memref<8x32xf32, #tpu.memory_space<vmem>>, vector<8x32xf32>
    %cst_107 = arith.constant dense<0.000000e+00> : vector<2x32xf32>
    %321 = tpu.matmul %315, %320, %cst_107 {dimension_numbers = #tpu.dot_dimension_numbers<[1], [0], [0], [1], [0, 0, 1, 1], [], []>} : vector<2x8xf32>, vector<8x32xf32>, vector<2x32xf32> -> vector<2x32xf32>
    %322 = arith.addf %319, %321 : vector<2x32xf32>
    %323 = vector.extract_strided_slice %322 {offsets = [0, 0], sizes = [2, 24], strides = [1, 1]} : vector<2x32xf32> to vector<2x24xf32>
    %324 = arith.negf %323 : vector<2x24xf32>
    %325 = math.exp %324 : vector<2x24xf32>
    %cst_108 = arith.constant 1.000000e+00 : f32
    %326 = vector.broadcast %cst_108 : f32 to vector<2x24xf32>
    %327 = arith.addf %326, %325 : vector<2x24xf32>
    %328 = arith.divf %326, %327 : vector<2x24xf32>
    %329 = vector.extract_strided_slice %328 {offsets = [0, 0], sizes = [2, 8], strides = [1, 1]} : vector<2x24xf32> to vector<2x8xf32>
    %330 = vector.extract_strided_slice %328 {offsets = [0, 8], sizes = [2, 8], strides = [1, 1]} : vector<2x24xf32> to vector<2x8xf32>
    %331 = vector.extract_strided_slice %328 {offsets = [0, 16], sizes = [2, 8], strides = [1, 1]} : vector<2x24xf32> to vector<2x8xf32>
    %332 = vector.extract_strided_slice %322 {offsets = [0, 24], sizes = [2, 8], strides = [1, 1]} : vector<2x32xf32> to vector<2x8xf32>
    %333 = math.tanh %332 : vector<2x8xf32>
    %334 = arith.mulf %330, %313 : vector<2x8xf32>
    %335 = arith.mulf %329, %333 : vector<2x8xf32>
    %336 = arith.addf %334, %335 : vector<2x8xf32>
    %337 = math.tanh %336 : vector<2x8xf32>
    %338 = arith.mulf %331, %337 : vector<2x8xf32>
    %339 = arith.addf %316, %338 : vector<2x8xf32>
    %c9_i32 = arith.constant 9 : i32
    %340 = arith.index_cast %c9_i32 : i32 to index
    %c0_109 = arith.constant 0 : index
    %c0_110 = arith.constant 0 : index
    %341 = vector.load %arg19[%340, %c0_109, %c0_110] : memref<16x2x32xf32, #tpu.memory_space<vmem>>, vector<1x2x32xf32>
    %342 = vector.shape_cast %341 : vector<1x2x32xf32> to vector<2x32xf32>
    %c0_111 = arith.constant 0 : index
    %c0_112 = arith.constant 0 : index
    %343 = vector.load %arg13[%c0_111, %c0_112] : memref<8x32xf32, #tpu.memory_space<vmem>>, vector<8x32xf32>
    %cst_113 = arith.constant dense<0.000000e+00> : vector<2x32xf32>
    %344 = tpu.matmul %338, %343, %cst_113 {dimension_numbers = #tpu.dot_dimension_numbers<[1], [0], [0], [1], [0, 0, 1, 1], [], []>} : vector<2x8xf32>, vector<8x32xf32>, vector<2x32xf32> -> vector<2x32xf32>
    %345 = arith.addf %342, %344 : vector<2x32xf32>
    %346 = vector.extract_strided_slice %345 {offsets = [0, 0], sizes = [2, 24], strides = [1, 1]} : vector<2x32xf32> to vector<2x24xf32>
    %347 = arith.negf %346 : vector<2x24xf32>
    %348 = math.exp %347 : vector<2x24xf32>
    %cst_114 = arith.constant 1.000000e+00 : f32
    %349 = vector.broadcast %cst_114 : f32 to vector<2x24xf32>
    %350 = arith.addf %349, %348 : vector<2x24xf32>
    %351 = arith.divf %349, %350 : vector<2x24xf32>
    %352 = vector.extract_strided_slice %351 {offsets = [0, 0], sizes = [2, 8], strides = [1, 1]} : vector<2x24xf32> to vector<2x8xf32>
    %353 = vector.extract_strided_slice %351 {offsets = [0, 8], sizes = [2, 8], strides = [1, 1]} : vector<2x24xf32> to vector<2x8xf32>
    %354 = vector.extract_strided_slice %351 {offsets = [0, 16], sizes = [2, 8], strides = [1, 1]} : vector<2x24xf32> to vector<2x8xf32>
    %355 = vector.extract_strided_slice %345 {offsets = [0, 24], sizes = [2, 8], strides = [1, 1]} : vector<2x32xf32> to vector<2x8xf32>
    %356 = math.tanh %355 : vector<2x8xf32>
    %357 = arith.mulf %353, %336 : vector<2x8xf32>
    %358 = arith.mulf %352, %356 : vector<2x8xf32>
    %359 = arith.addf %357, %358 : vector<2x8xf32>
    %360 = math.tanh %359 : vector<2x8xf32>
    %361 = arith.mulf %354, %360 : vector<2x8xf32>
    %362 = arith.addf %339, %361 : vector<2x8xf32>
    %c10_i32 = arith.constant 10 : i32
    %363 = arith.index_cast %c10_i32 : i32 to index
    %c0_115 = arith.constant 0 : index
    %c0_116 = arith.constant 0 : index
    %364 = vector.load %arg19[%363, %c0_115, %c0_116] : memref<16x2x32xf32, #tpu.memory_space<vmem>>, vector<1x2x32xf32>
    %365 = vector.shape_cast %364 : vector<1x2x32xf32> to vector<2x32xf32>
    %c0_117 = arith.constant 0 : index
    %c0_118 = arith.constant 0 : index
    %366 = vector.load %arg13[%c0_117, %c0_118] : memref<8x32xf32, #tpu.memory_space<vmem>>, vector<8x32xf32>
    %cst_119 = arith.constant dense<0.000000e+00> : vector<2x32xf32>
    %367 = tpu.matmul %361, %366, %cst_119 {dimension_numbers = #tpu.dot_dimension_numbers<[1], [0], [0], [1], [0, 0, 1, 1], [], []>} : vector<2x8xf32>, vector<8x32xf32>, vector<2x32xf32> -> vector<2x32xf32>
    %368 = arith.addf %365, %367 : vector<2x32xf32>
    %369 = vector.extract_strided_slice %368 {offsets = [0, 0], sizes = [2, 24], strides = [1, 1]} : vector<2x32xf32> to vector<2x24xf32>
    %370 = arith.negf %369 : vector<2x24xf32>
    %371 = math.exp %370 : vector<2x24xf32>
    %cst_120 = arith.constant 1.000000e+00 : f32
    %372 = vector.broadcast %cst_120 : f32 to vector<2x24xf32>
    %373 = arith.addf %372, %371 : vector<2x24xf32>
    %374 = arith.divf %372, %373 : vector<2x24xf32>
    %375 = vector.extract_strided_slice %374 {offsets = [0, 0], sizes = [2, 8], strides = [1, 1]} : vector<2x24xf32> to vector<2x8xf32>
    %376 = vector.extract_strided_slice %374 {offsets = [0, 8], sizes = [2, 8], strides = [1, 1]} : vector<2x24xf32> to vector<2x8xf32>
    %377 = vector.extract_strided_slice %374 {offsets = [0, 16], sizes = [2, 8], strides = [1, 1]} : vector<2x24xf32> to vector<2x8xf32>
    %378 = vector.extract_strided_slice %368 {offsets = [0, 24], sizes = [2, 8], strides = [1, 1]} : vector<2x32xf32> to vector<2x8xf32>
    %379 = math.tanh %378 : vector<2x8xf32>
    %380 = arith.mulf %376, %359 : vector<2x8xf32>
    %381 = arith.mulf %375, %379 : vector<2x8xf32>
    %382 = arith.addf %380, %381 : vector<2x8xf32>
    %383 = math.tanh %382 : vector<2x8xf32>
    %384 = arith.mulf %377, %383 : vector<2x8xf32>
    %385 = arith.addf %362, %384 : vector<2x8xf32>
    %c11_i32 = arith.constant 11 : i32
    %386 = arith.index_cast %c11_i32 : i32 to index
    %c0_121 = arith.constant 0 : index
    %c0_122 = arith.constant 0 : index
    %387 = vector.load %arg19[%386, %c0_121, %c0_122] : memref<16x2x32xf32, #tpu.memory_space<vmem>>, vector<1x2x32xf32>
    %388 = vector.shape_cast %387 : vector<1x2x32xf32> to vector<2x32xf32>
    %c0_123 = arith.constant 0 : index
    %c0_124 = arith.constant 0 : index
    %389 = vector.load %arg13[%c0_123, %c0_124] : memref<8x32xf32, #tpu.memory_space<vmem>>, vector<8x32xf32>
    %cst_125 = arith.constant dense<0.000000e+00> : vector<2x32xf32>
    %390 = tpu.matmul %384, %389, %cst_125 {dimension_numbers = #tpu.dot_dimension_numbers<[1], [0], [0], [1], [0, 0, 1, 1], [], []>} : vector<2x8xf32>, vector<8x32xf32>, vector<2x32xf32> -> vector<2x32xf32>
    %391 = arith.addf %388, %390 : vector<2x32xf32>
    %392 = vector.extract_strided_slice %391 {offsets = [0, 0], sizes = [2, 24], strides = [1, 1]} : vector<2x32xf32> to vector<2x24xf32>
    %393 = arith.negf %392 : vector<2x24xf32>
    %394 = math.exp %393 : vector<2x24xf32>
    %cst_126 = arith.constant 1.000000e+00 : f32
    %395 = vector.broadcast %cst_126 : f32 to vector<2x24xf32>
    %396 = arith.addf %395, %394 : vector<2x24xf32>
    %397 = arith.divf %395, %396 : vector<2x24xf32>
    %398 = vector.extract_strided_slice %397 {offsets = [0, 0], sizes = [2, 8], strides = [1, 1]} : vector<2x24xf32> to vector<2x8xf32>
    %399 = vector.extract_strided_slice %397 {offsets = [0, 8], sizes = [2, 8], strides = [1, 1]} : vector<2x24xf32> to vector<2x8xf32>
    %400 = vector.extract_strided_slice %397 {offsets = [0, 16], sizes = [2, 8], strides = [1, 1]} : vector<2x24xf32> to vector<2x8xf32>
    %401 = vector.extract_strided_slice %391 {offsets = [0, 24], sizes = [2, 8], strides = [1, 1]} : vector<2x32xf32> to vector<2x8xf32>
    %402 = math.tanh %401 : vector<2x8xf32>
    %403 = arith.mulf %399, %382 : vector<2x8xf32>
    %404 = arith.mulf %398, %402 : vector<2x8xf32>
    %405 = arith.addf %403, %404 : vector<2x8xf32>
    %406 = math.tanh %405 : vector<2x8xf32>
    %407 = arith.mulf %400, %406 : vector<2x8xf32>
    %408 = arith.addf %385, %407 : vector<2x8xf32>
    %c12_i32 = arith.constant 12 : i32
    %409 = arith.index_cast %c12_i32 : i32 to index
    %c0_127 = arith.constant 0 : index
    %c0_128 = arith.constant 0 : index
    %410 = vector.load %arg19[%409, %c0_127, %c0_128] : memref<16x2x32xf32, #tpu.memory_space<vmem>>, vector<1x2x32xf32>
    %411 = vector.shape_cast %410 : vector<1x2x32xf32> to vector<2x32xf32>
    %c0_129 = arith.constant 0 : index
    %c0_130 = arith.constant 0 : index
    %412 = vector.load %arg13[%c0_129, %c0_130] : memref<8x32xf32, #tpu.memory_space<vmem>>, vector<8x32xf32>
    %cst_131 = arith.constant dense<0.000000e+00> : vector<2x32xf32>
    %413 = tpu.matmul %407, %412, %cst_131 {dimension_numbers = #tpu.dot_dimension_numbers<[1], [0], [0], [1], [0, 0, 1, 1], [], []>} : vector<2x8xf32>, vector<8x32xf32>, vector<2x32xf32> -> vector<2x32xf32>
    %414 = arith.addf %411, %413 : vector<2x32xf32>
    %415 = vector.extract_strided_slice %414 {offsets = [0, 0], sizes = [2, 24], strides = [1, 1]} : vector<2x32xf32> to vector<2x24xf32>
    %416 = arith.negf %415 : vector<2x24xf32>
    %417 = math.exp %416 : vector<2x24xf32>
    %cst_132 = arith.constant 1.000000e+00 : f32
    %418 = vector.broadcast %cst_132 : f32 to vector<2x24xf32>
    %419 = arith.addf %418, %417 : vector<2x24xf32>
    %420 = arith.divf %418, %419 : vector<2x24xf32>
    %421 = vector.extract_strided_slice %420 {offsets = [0, 0], sizes = [2, 8], strides = [1, 1]} : vector<2x24xf32> to vector<2x8xf32>
    %422 = vector.extract_strided_slice %420 {offsets = [0, 8], sizes = [2, 8], strides = [1, 1]} : vector<2x24xf32> to vector<2x8xf32>
    %423 = vector.extract_strided_slice %420 {offsets = [0, 16], sizes = [2, 8], strides = [1, 1]} : vector<2x24xf32> to vector<2x8xf32>
    %424 = vector.extract_strided_slice %414 {offsets = [0, 24], sizes = [2, 8], strides = [1, 1]} : vector<2x32xf32> to vector<2x8xf32>
    %425 = math.tanh %424 : vector<2x8xf32>
    %426 = arith.mulf %422, %405 : vector<2x8xf32>
    %427 = arith.mulf %421, %425 : vector<2x8xf32>
    %428 = arith.addf %426, %427 : vector<2x8xf32>
    %429 = math.tanh %428 : vector<2x8xf32>
    %430 = arith.mulf %423, %429 : vector<2x8xf32>
    %431 = arith.addf %408, %430 : vector<2x8xf32>
    %c13_i32 = arith.constant 13 : i32
    %432 = arith.index_cast %c13_i32 : i32 to index
    %c0_133 = arith.constant 0 : index
    %c0_134 = arith.constant 0 : index
    %433 = vector.load %arg19[%432, %c0_133, %c0_134] : memref<16x2x32xf32, #tpu.memory_space<vmem>>, vector<1x2x32xf32>
    %434 = vector.shape_cast %433 : vector<1x2x32xf32> to vector<2x32xf32>
    %c0_135 = arith.constant 0 : index
    %c0_136 = arith.constant 0 : index
    %435 = vector.load %arg13[%c0_135, %c0_136] : memref<8x32xf32, #tpu.memory_space<vmem>>, vector<8x32xf32>
    %cst_137 = arith.constant dense<0.000000e+00> : vector<2x32xf32>
    %436 = tpu.matmul %430, %435, %cst_137 {dimension_numbers = #tpu.dot_dimension_numbers<[1], [0], [0], [1], [0, 0, 1, 1], [], []>} : vector<2x8xf32>, vector<8x32xf32>, vector<2x32xf32> -> vector<2x32xf32>
    %437 = arith.addf %434, %436 : vector<2x32xf32>
    %438 = vector.extract_strided_slice %437 {offsets = [0, 0], sizes = [2, 24], strides = [1, 1]} : vector<2x32xf32> to vector<2x24xf32>
    %439 = arith.negf %438 : vector<2x24xf32>
    %440 = math.exp %439 : vector<2x24xf32>
    %cst_138 = arith.constant 1.000000e+00 : f32
    %441 = vector.broadcast %cst_138 : f32 to vector<2x24xf32>
    %442 = arith.addf %441, %440 : vector<2x24xf32>
    %443 = arith.divf %441, %442 : vector<2x24xf32>
    %444 = vector.extract_strided_slice %443 {offsets = [0, 0], sizes = [2, 8], strides = [1, 1]} : vector<2x24xf32> to vector<2x8xf32>
    %445 = vector.extract_strided_slice %443 {offsets = [0, 8], sizes = [2, 8], strides = [1, 1]} : vector<2x24xf32> to vector<2x8xf32>
    %446 = vector.extract_strided_slice %443 {offsets = [0, 16], sizes = [2, 8], strides = [1, 1]} : vector<2x24xf32> to vector<2x8xf32>
    %447 = vector.extract_strided_slice %437 {offsets = [0, 24], sizes = [2, 8], strides = [1, 1]} : vector<2x32xf32> to vector<2x8xf32>
    %448 = math.tanh %447 : vector<2x8xf32>
    %449 = arith.mulf %445, %428 : vector<2x8xf32>
    %450 = arith.mulf %444, %448 : vector<2x8xf32>
    %451 = arith.addf %449, %450 : vector<2x8xf32>
    %452 = math.tanh %451 : vector<2x8xf32>
    %453 = arith.mulf %446, %452 : vector<2x8xf32>
    %454 = arith.addf %431, %453 : vector<2x8xf32>
    %c14_i32 = arith.constant 14 : i32
    %455 = arith.index_cast %c14_i32 : i32 to index
    %c0_139 = arith.constant 0 : index
    %c0_140 = arith.constant 0 : index
    %456 = vector.load %arg19[%455, %c0_139, %c0_140] : memref<16x2x32xf32, #tpu.memory_space<vmem>>, vector<1x2x32xf32>
    %457 = vector.shape_cast %456 : vector<1x2x32xf32> to vector<2x32xf32>
    %c0_141 = arith.constant 0 : index
    %c0_142 = arith.constant 0 : index
    %458 = vector.load %arg13[%c0_141, %c0_142] : memref<8x32xf32, #tpu.memory_space<vmem>>, vector<8x32xf32>
    %cst_143 = arith.constant dense<0.000000e+00> : vector<2x32xf32>
    %459 = tpu.matmul %453, %458, %cst_143 {dimension_numbers = #tpu.dot_dimension_numbers<[1], [0], [0], [1], [0, 0, 1, 1], [], []>} : vector<2x8xf32>, vector<8x32xf32>, vector<2x32xf32> -> vector<2x32xf32>
    %460 = arith.addf %457, %459 : vector<2x32xf32>
    %461 = vector.extract_strided_slice %460 {offsets = [0, 0], sizes = [2, 24], strides = [1, 1]} : vector<2x32xf32> to vector<2x24xf32>
    %462 = arith.negf %461 : vector<2x24xf32>
    %463 = math.exp %462 : vector<2x24xf32>
    %cst_144 = arith.constant 1.000000e+00 : f32
    %464 = vector.broadcast %cst_144 : f32 to vector<2x24xf32>
    %465 = arith.addf %464, %463 : vector<2x24xf32>
    %466 = arith.divf %464, %465 : vector<2x24xf32>
    %467 = vector.extract_strided_slice %466 {offsets = [0, 0], sizes = [2, 8], strides = [1, 1]} : vector<2x24xf32> to vector<2x8xf32>
    %468 = vector.extract_strided_slice %466 {offsets = [0, 8], sizes = [2, 8], strides = [1, 1]} : vector<2x24xf32> to vector<2x8xf32>
    %469 = vector.extract_strided_slice %466 {offsets = [0, 16], sizes = [2, 8], strides = [1, 1]} : vector<2x24xf32> to vector<2x8xf32>
    %470 = vector.extract_strided_slice %460 {offsets = [0, 24], sizes = [2, 8], strides = [1, 1]} : vector<2x32xf32> to vector<2x8xf32>
    %471 = math.tanh %470 : vector<2x8xf32>
    %472 = arith.mulf %468, %451 : vector<2x8xf32>
    %473 = arith.mulf %467, %471 : vector<2x8xf32>
    %474 = arith.addf %472, %473 : vector<2x8xf32>
    %475 = math.tanh %474 : vector<2x8xf32>
    %476 = arith.mulf %469, %475 : vector<2x8xf32>
    %477 = arith.addf %454, %476 : vector<2x8xf32>
    %c15_i32 = arith.constant 15 : i32
    %478 = arith.index_cast %c15_i32 : i32 to index
    %c0_145 = arith.constant 0 : index
    %c0_146 = arith.constant 0 : index
    %479 = vector.load %arg19[%478, %c0_145, %c0_146] : memref<16x2x32xf32, #tpu.memory_space<vmem>>, vector<1x2x32xf32>
    %480 = vector.shape_cast %479 : vector<1x2x32xf32> to vector<2x32xf32>
    %c0_147 = arith.constant 0 : index
    %c0_148 = arith.constant 0 : index
    %481 = vector.load %arg13[%c0_147, %c0_148] : memref<8x32xf32, #tpu.memory_space<vmem>>, vector<8x32xf32>
    %cst_149 = arith.constant dense<0.000000e+00> : vector<2x32xf32>
    %482 = tpu.matmul %476, %481, %cst_149 {dimension_numbers = #tpu.dot_dimension_numbers<[1], [0], [0], [1], [0, 0, 1, 1], [], []>} : vector<2x8xf32>, vector<8x32xf32>, vector<2x32xf32> -> vector<2x32xf32>
    %483 = arith.addf %480, %482 : vector<2x32xf32>
    %484 = vector.extract_strided_slice %483 {offsets = [0, 0], sizes = [2, 24], strides = [1, 1]} : vector<2x32xf32> to vector<2x24xf32>
    %485 = arith.negf %484 : vector<2x24xf32>
    %486 = math.exp %485 : vector<2x24xf32>
    %cst_150 = arith.constant 1.000000e+00 : f32
    %487 = vector.broadcast %cst_150 : f32 to vector<2x24xf32>
    %488 = arith.addf %487, %486 : vector<2x24xf32>
    %489 = arith.divf %487, %488 : vector<2x24xf32>
    %490 = vector.extract_strided_slice %489 {offsets = [0, 0], sizes = [2, 8], strides = [1, 1]} : vector<2x24xf32> to vector<2x8xf32>
    %491 = vector.extract_strided_slice %489 {offsets = [0, 8], sizes = [2, 8], strides = [1, 1]} : vector<2x24xf32> to vector<2x8xf32>
    %492 = vector.extract_strided_slice %489 {offsets = [0, 16], sizes = [2, 8], strides = [1, 1]} : vector<2x24xf32> to vector<2x8xf32>
    %493 = vector.extract_strided_slice %483 {offsets = [0, 24], sizes = [2, 8], strides = [1, 1]} : vector<2x32xf32> to vector<2x8xf32>
    %494 = math.tanh %493 : vector<2x8xf32>
    %495 = arith.mulf %491, %474 : vector<2x8xf32>
    %496 = arith.mulf %490, %494 : vector<2x8xf32>
    %497 = arith.addf %495, %496 : vector<2x8xf32>
    %498 = math.tanh %497 : vector<2x8xf32>
    %499 = arith.mulf %492, %498 : vector<2x8xf32>
    %500 = arith.addf %477, %499 : vector<2x8xf32>
    %c16_i32 = arith.constant 16 : i32
    %cst_151 = arith.constant 6.250000e-02 : f32
    %501 = vector.broadcast %cst_151 : f32 to vector<2x8xf32>
    %502 = arith.mulf %500, %501 : vector<2x8xf32>
    %c0_152 = arith.constant 0 : index
    %c0_153 = arith.constant 0 : index
    %503 = vector.load %arg15[%c0_152, %c0_153] : memref<32x2xf32, #tpu.memory_space<vmem>>, vector<32x2xf32>
    %cst_154 = arith.constant dense<0.000000e+00> : vector<2x2xf32>
    %504 = tpu.matmul %120, %503, %cst_154 {dimension_numbers = #tpu.dot_dimension_numbers<[1], [0], [0], [1], [0, 0, 1, 1], [], []>} : vector<2x32xf32>, vector<32x2xf32>, vector<2x2xf32> -> vector<2x2xf32>
    %c0_155 = arith.constant 0 : index
    %c0_156 = arith.constant 0 : index
    %505 = vector.load %arg16[%c0_155, %c0_156] : memref<8x2xf32, #tpu.memory_space<vmem>>, vector<8x2xf32>
    %cst_157 = arith.constant dense<0.000000e+00> : vector<2x2xf32>
    %506 = tpu.matmul %502, %505, %cst_157 {dimension_numbers = #tpu.dot_dimension_numbers<[1], [0], [0], [1], [0, 0, 1, 1], [], []>} : vector<2x8xf32>, vector<8x2xf32>, vector<2x2xf32> -> vector<2x2xf32>
    %507 = arith.addf %504, %506 : vector<2x2xf32>
    %c0_158 = arith.constant 0 : index
    %c0_159 = arith.constant 0 : index
    %508 = vector.load %arg17[%c0_158, %c0_159] : memref<1x2xf32, #tpu.memory_space<vmem>>, vector<1x2xf32>
    %509 = vector.broadcast %508 : vector<1x2xf32> to vector<2x2xf32>
    %510 = arith.addf %507, %509 : vector<2x2xf32>
    %c0_160 = arith.constant 0 : index
    %c0_161 = arith.constant 0 : index
    %511 = vector.load %arg18[%c0_160, %c0_161] : memref<2x2xf32, #tpu.memory_space<vmem>>, vector<2x2xf32>
    tpu.vector_store %arg18[%c0_160, %c0_161], %510 {strides = array<i32>} : memref<2x2xf32, #tpu.memory_space<vmem>>, vector<2x2xf32>,
    return
  }
  func.func @transform_0(%arg0: i32) -> (i32, i32, i32) {
    %c0_i32 = arith.constant 0 : i32
    %c0_i32_0 = arith.constant 0 : i32
    %c0_i32_1 = arith.constant 0 : i32
    return %arg0, %c0_i32, %c0_i32_0 : i32, i32, i32
  }
  func.func @transform_1(%arg0: i32) -> (i32, i32, i32) {
    %c0_i32 = arith.constant 0 : i32
    %c0_i32_0 = arith.constant 0 : i32
    %c0_i32_1 = arith.constant 0 : i32
    return %c0_i32, %arg0, %c0_i32_0 : i32, i32, i32
  }
  func.func @transform_2(%arg0: i32) -> (i32, i32, i32) {
    %c0_i32 = arith.constant 0 : i32
    %c0_i32_0 = arith.constant 0 : i32
    %c0_i32_1 = arith.constant 0 : i32
    %c0_i32_2 = arith.constant 0 : i32
    return %c0_i32, %c0_i32_0, %c0_i32_1 : i32, i32, i32
  }
  func.func @transform_3(%arg0: i32) -> (i32, i32) {
    %c0_i32 = arith.constant 0 : i32
    %c0_i32_0 = arith.constant 0 : i32
    %c0_i32_1 = arith.constant 0 : i32
    return %c0_i32, %c0_i32_0 : i32, i32
  }
  func.func @transform_4(%arg0: i32) -> (i32, i32) {
    %c0_i32 = arith.constant 0 : i32
    %c0_i32_0 = arith.constant 0 : i32
    %c0_i32_1 = arith.constant 0 : i32
    return %c0_i32, %c0_i32_0 : i32, i32
  }
  func.func @transform_5(%arg0: i32) -> (i32, i32) {
    %c0_i32 = arith.constant 0 : i32
    %c0_i32_0 = arith.constant 0 : i32
    %c0_i32_1 = arith.constant 0 : i32
    return %c0_i32, %c0_i32_0 : i32, i32
  }
  func.func @transform_6(%arg0: i32) -> (i32, i32) {
    %c0_i32 = arith.constant 0 : i32
    %c0_i32_0 = arith.constant 0 : i32
    %c0_i32_1 = arith.constant 0 : i32
    return %c0_i32, %c0_i32_0 : i32, i32
  }
  func.func @transform_7(%arg0: i32) -> (i32, i32) {
    %c0_i32 = arith.constant 0 : i32
    %c0_i32_0 = arith.constant 0 : i32
    %c0_i32_1 = arith.constant 0 : i32
    return %c0_i32, %c0_i32_0 : i32, i32
  }
  func.func @transform_8(%arg0: i32) -> (i32, i32) {
    %c0_i32 = arith.constant 0 : i32
    %c0_i32_0 = arith.constant 0 : i32
    %c0_i32_1 = arith.constant 0 : i32
    return %c0_i32, %c0_i32_0 : i32, i32
  }
  func.func @transform_9(%arg0: i32) -> (i32, i32) {
    %c0_i32 = arith.constant 0 : i32
    %c0_i32_0 = arith.constant 0 : i32
    %c0_i32_1 = arith.constant 0 : i32
    return %c0_i32, %c0_i32_0 : i32, i32
  }
  func.func @transform_10(%arg0: i32) -> (i32, i32) {
    %c0_i32 = arith.constant 0 : i32
    %c0_i32_0 = arith.constant 0 : i32
    %c0_i32_1 = arith.constant 0 : i32
    return %c0_i32, %c0_i32_0 : i32, i32
  }
  func.func @transform_11(%arg0: i32) -> (i32, i32) {
    %c0_i32 = arith.constant 0 : i32
    %c0_i32_0 = arith.constant 0 : i32
    %c0_i32_1 = arith.constant 0 : i32
    return %c0_i32, %c0_i32_0 : i32, i32
  }
  func.func @transform_12(%arg0: i32) -> (i32, i32) {
    %c0_i32 = arith.constant 0 : i32
    %c0_i32_0 = arith.constant 0 : i32
    %c0_i32_1 = arith.constant 0 : i32
    return %c0_i32, %c0_i32_0 : i32, i32
  }
  func.func @transform_13(%arg0: i32) -> (i32, i32) {
    %c0_i32 = arith.constant 0 : i32
    %c0_i32_0 = arith.constant 0 : i32
    %c0_i32_1 = arith.constant 0 : i32
    return %c0_i32, %c0_i32_0 : i32, i32
  }
  func.func @transform_14(%arg0: i32) -> (i32, i32) {
    %c0_i32 = arith.constant 0 : i32
    %c0_i32_0 = arith.constant 0 : i32
    %c0_i32_1 = arith.constant 0 : i32
    return %c0_i32, %c0_i32_0 : i32, i32
  }
  func.func @transform_15(%arg0: i32) -> (i32, i32) {
    %c0_i32 = arith.constant 0 : i32
    %c0_i32_0 = arith.constant 0 : i32
    %c0_i32_1 = arith.constant 0 : i32
    return %c0_i32, %c0_i32_0 : i32, i32
  }
  func.func @transform_16(%arg0: i32) -> (i32, i32) {
    %c0_i32 = arith.constant 0 : i32
    %c0_i32_0 = arith.constant 0 : i32
    %c0_i32_1 = arith.constant 0 : i32
    return %c0_i32, %c0_i32_0 : i32, i32
  }
  func.func @transform_17(%arg0: i32) -> (i32, i32) {
    %c0_i32 = arith.constant 0 : i32
    %c0_i32_0 = arith.constant 0 : i32
    return %arg0, %c0_i32 : i32, i32
  }
}

</mosaic_0001>

<bundles_post_ra>
// kernel: tpu_custom_call.1
= control target key start
LH: loop header
LB: loop body
LE: loop exit
PB: predicated region body
PF: predicated region fallthrough
CT: control target
= control target key end

     0   :  { %s3274_s0 = inlined_call_operand.vmem [shape: f32[2,23,1], index: 0, kind: input, shape index: {}]   ;;  %s3275_s1 = inlined_call_operand.vmem [shape: f32[16,2,1], index: 1, kind: input, shape index: {}]   ;;  %s3276_s2 = inlined_call_operand.vmem [shape: f32[8,1,32], index: 2, kind: input, shape index: {}]   ;;  %s3277_s3 = inlined_call_operand.vmem [shape: f32[1,32], index: 3, kind: input, shape index: {}]   ;;  %s3278_s4 = inlined_call_operand.vmem [shape: f32[1,32], index: 4, kind: input, shape index: {}]   ;;  %s3279_s5 = inlined_call_operand.vmem [shape: f32[160,64], index: 5, kind: input, shape index: {}]   ;;  %s3280_s6 = inlined_call_operand.vmem [shape: f32[1,64], index: 6, kind: input, shape index: {}]   ;;  %s3281_s7 = inlined_call_operand.vmem [shape: f32[1,64], index: 7, kind: input, shape index: {}]   ;;  %s3282_s8 = inlined_call_operand.vmem [shape: f32[192,32], index: 8, kind: input, shape index: {}]   ;;  %s3283_s9 = inlined_call_operand.vmem [shape: f32[1,32], index: 9, kind: input, shape index: {}]   ;;  %s3284_s10 = inlined_call_operand.vmem [shape: f32[1,32], index: 10, kind: input, shape index: {}]   ;;  %s3285_s11 = inlined_call_operand.vmem [shape: f32[1,32], index: 11, kind: input, shape index: {}]   ;;  %s3286_s12 = inlined_call_operand.vmem [shape: f32[8,32], index: 12, kind: input, shape index: {}]   ;;  %s3287_s13 = inlined_call_operand.vmem [shape: f32[1,32], index: 13, kind: input, shape index: {}]   ;;  %s3288_s14 = inlined_call_operand.vmem [shape: f32[32,2], index: 14, kind: input, shape index: {}]   ;;  %s3289_s15 = inlined_call_operand.vmem [shape: f32[8,2], index: 15, kind: input, shape index: {}]   ;;  %s3290_s16 = inlined_call_operand.vmem [shape: f32[1,2], index: 16, kind: input, shape index: {}]   ;;  %s3291_s17 = inlined_call_operand.hbm [shape: f32[2,2], index: 17, kind: output, shape index: {}]  }
   0x1   :  { %3294 = sst [smem:[#allocation6_spill]] %s3274_s0 }
   0x2   :  { %3295 = sst [smem:[#allocation7_spill]] %s3275_s1 }
   0x3   :  { %s3296_s26 = sld [smem:[#allocation6_spill]]  ;;  %v2317_v2 = vmov 0  }
   0x4   :  { %2134 = vset.pattern.permute.xlu1 %v2317_v2  ;;  %2133 = vset.pattern.permute.xlu0 %v2317_v2 }
   0x5   :  { %2135 = vset.pattern.permute.xlu2 %v2317_v2 }
   0x9   :  { %v59_v0 = vld [vmem:[%s3296_s26 + $0x10] sm:$0x7f]  ;;  %v57_v1 = vld [vmem:[%s3296_s26] sm:$0xff]  ;;  %v60_v4 = vld [vmem:[%s3296_s26 + $0x18] sm:$0xff] }
   0xa   :  { %v61_v3 = vld [vmem:[%s3296_s26 + $0x20] sm:$0xff]  ;;  %99 = vperm.xlu1 %2134, %v59_v0   ;;  %66 = vperm.xlu0 %2133, %v57_v1   ;;  %v58_v5 = vld [vmem:[%s3296_s26 + $0x8] sm:$0xff] }
   0xb   :  { %81 = vperm.xlu2 %2135, %v61_v3   ;;  %v62_v6 = vld [vmem:[%s3296_s26 + $0x28] sm:$0x7f] }
  0x12   :  { %76 = vperm.xlu1 %2134, %v60_v4   ;;  %71 = vperm.xlu0 %2133, %v58_v5  }
  0x13   :  { %22 = vsyncpa [#allocation4], 0  ;;  %104 = vperm.xlu2 %2135, %v62_v6   ;;  %s3297_s24 = sld [smem:[#allocation7_spill]]  ;;  %v2440_v9 = vld [vmem:[%s3276_s2 + $0x1] ss:$0 sm:$0xff]  ;;  %vm122_vm0 = vcmask 1046528  }
  0x14   :  { %v2445_v10 = vld [vmem:[%s3276_s2 + $0x2] ss:$0 sm:$0xff]  ;;  %v2456_v13 = vld [vmem:[%s3276_s2 + $0x3] ss:$0 sm:$0xff]  ;;  %v2461_v14 = vld [vmem:[%s3276_s2] ss:$0 sm:$0xff] }
  0x15   :  { %v2474_v22 = vld [vmem:[%s3276_s2 + $0x4] ss:$0 sm:$0xff]  ;;  %vm158_vm1 = vcmask 1045504   ;;  %vm194_vm2 = vcmask 1044480   ;;  %v2488_v31 = vld [vmem:[%s3276_s2 + $0x5] ss:$0 sm:$0xff] }
  0x16   :  { %v511_v34 = vld [vmem:[%s3279_s5 + $0x98] sm:$0xff]  ;;  %v510_v35 = vld [vmem:[%s3279_s5 + $0x90] sm:$0xff]  ;;  %v2502_v36 = vld [vmem:[%s3276_s2 + $0x6] ss:$0 sm:$0xff]  ;;  %vm230_vm3 = vcmask 1043456   ;;  %vm266_vm4 = vcmask 1042432  }
  0x17   :  { %561 = vmatpush.msra.mxu1 %v511_v34  ;;  %v2511_v41 = vld [vmem:[%s3276_s2 + $0x7] ss:$0 sm:$0xff]  ;;  %v509_v42 = vld [vmem:[%s3279_s5 + $0x88] sm:$0xff]  ;;  %vm302_vm5 = vcmask 1041408   ;;  %vm338_vm6 = vcmask 1040384   ;;  %vm924_vm7 = vcmask 254976  }
  0x18   :  { %v508_v48 = vld [vmem:[%s3279_s5 + $0x80] sm:$0xff]  ;;  %vm477_vm8 = vcmask 261120   ;;  %s2320_s26 = smov 8   ;;  %s2321_s18 = smov 96   ;;  %vm943_vm13 = vcmask 64512   ;;  %vm487_vm14 = vcmask 785408  }
  0x19   :  { %v788_v7 = vld [vmem:[%s3297_s24] sm:$0x3]  ;;  %562 = vmatpush.msra.mxu1 %v510_v35  ;;  %s2322_s19 = smov 32   ;;  %s2323_s1 = smov 64   ;;  %vm482_vm15 = vcmask 523264  }
  0x1a   :  { %807 = vperm.xlu0 %2133, %v788_v7   ;;  %s2324_s2 = smov 112   ;;  %s2067_s28 = sshll.u32 %s3291_s17, 4  ;;  %s2068_s28 = int_to_ptr.hbm [resolvable:$true] %s2067_s28 }
  0x1b   :  { %563 = vmatpush.msra.mxu1 %v509_v42 }
  0x1d   :  { %564 = vmatpush.msra.mxu1 %v508_v48 }
  0x65   :  { %v82_v8 = vpop.permute.xlu2 %81 }
  0x66   :  { %v2448_v11 = vmul.f32 %v2440_v9, %v82_v8  ;;  %v2451_v12 = vmul.f32 %v2445_v10, %v82_v8  ;;  %v2465_v16 = vmul.f32 %v2456_v13, %v82_v8  ;;  %v90_v23 = vmul.f32 %v2461_v14, %v82_v8 }
  0x67   :  { %v2491_v32 = vmul.f32 %v2474_v22, %v82_v8  ;;  %v2518_v44 = vmul.f32 %v2488_v31, %v82_v8  ;;  %v2526_v49 = vmul.f32 %v2502_v36, %v82_v8  ;;  %v2532_v52 = vmul.f32 %v2511_v41, %v82_v8 }
  0x68   :  { %v129_v15 = vrot.slane %v2448_v11, 1  ;;  %v165_v18 = vrot.slane %v2451_v12, 2  ;;  %v201_v26 = vrot.slane %v2465_v16, 3  ;;  %v2635_v12 = vld [vmem:[%s3285_s11] ss:$0 sm:$0xff] }
  0x69   :  { %v237_v43 = vrot.slane %v2491_v32, 4  ;;  %v273_v53 = vrot.slane %v2518_v44, 5  ;;  %v309_v59 = vrot.slane %v2526_v49, 6  ;;  %v345_v62 = vrot.slane %v2532_v52, 7  ;;  %v2152_v49 = vld [vmem:[%s3278_s4] ss:$0 sm:$0xff] }
  0x6a   :  { %s2319_s4 = smov 104  }
  0x6d   :  { %v105_v17 = vpop.permute.xlu2 %104 }
  0x6e   :  { %v115_v19 = vmul.f32 %v2440_v9, %v105_v17  ;;  %v151_v20 = vmul.f32 %v2445_v10, %v105_v17  ;;  %v187_v21 = vmul.f32 %v2456_v13, %v105_v17  ;;  %v223_v28 = vmul.f32 %v2474_v22, %v105_v17 }
  0x6f   :  { %v259_v40 = vmul.f32 %v2488_v31, %v105_v17  ;;  %v295_v45 = vmul.f32 %v2502_v36, %v105_v17  ;;  %v331_v47 = vmul.f32 %v2511_v41, %v105_v17 }
  0x70   :  { %v131_v24 = vrot.slane %v115_v19, 1  ;;  %v167_v25 = vrot.slane %v151_v20, 2  ;;  %v203_v27 = vrot.slane %v187_v21, 3  ;;  %v239_v39 = vrot.slane %v223_v28, 4 }
  0x71   :  { %v275_v50 = vrot.slane %v259_v40, 5  ;;  %v311_v56 = vrot.slane %v295_v45, 6  ;;  %v347_v57 = vrot.slane %v331_v47, 7 }
  0x72   :  { %v132_v29 = vsel %vm122_vm0, %v129_v15, %v131_v24  ;;  %v168_v30 = vsel %vm158_vm1, %v165_v18, %v167_v25  ;;  %v204_v38 = vsel %vm194_vm2, %v201_v26, %v203_v27  ;;  %v240_v51 = vsel %vm230_vm3, %v237_v43, %v239_v39 }
  0x73   :  { %v140_v33 = vadd.f32 %v132_v29, %v90_v23  ;;  %v276_v61 = vsel %vm266_vm4, %v273_v53, %v275_v50  ;;  %v312_v4 = vsel %vm302_vm5, %v309_v59, %v311_v56  ;;  %v2568_v7 = vsel %vm338_vm6, %v345_v62, %v347_v57 }
  0x75   :  { %v176_v37 = vadd.f32 %v168_v30, %v140_v33 }
  0x77   :  { %v212_v46 = vadd.f32 %v204_v38, %v176_v37 }
  0x79   :  { %v248_v58 = vadd.f32 %v240_v51, %v212_v46 }
  0x7b   :  { %v284_v8 = vadd.f32 %v276_v61, %v248_v58 }
  0x7c   :  { %v100_v54 = vpop.permute.xlu1 %99  ;;  %v67_v55 = vpop.permute.xlu0 %66 }
  0x7d   :  { %v2537_v60 = vmul.f32 %v2440_v9, %v100_v54  ;;  %v2544_v63 = vmul.f32 %v2445_v10, %v100_v54  ;;  %v2547_v0 = vmul.f32 %v2456_v13, %v100_v54  ;;  %v2550_v1 = vmul.f32 %v2474_v22, %v100_v54 }
  0x7e   :  { %v2553_v2 = vmul.f32 %v2488_v31, %v100_v54  ;;  %v2556_v3 = vmul.f32 %v2502_v36, %v100_v54  ;;  %v2562_v5 = vmul.f32 %v2511_v41, %v100_v54  ;;  %v110_v6 = vmul.f32 %v2440_v9, %v67_v55 }
  0x7f   :  { %v126_v17 = vrot.slane %v2537_v60, 1  ;;  %v87_v19 = vmul.f32 %v2461_v14, %v67_v55  ;;  %v146_v20 = vmul.f32 %v2445_v10, %v67_v55  ;;  %v2574_v21 = vmul.f32 %v2456_v13, %v67_v55 }
  0x80   :  { %v162_v23 = vrot.slane %v2544_v63, 2  ;;  %v198_v24 = vrot.slane %v2547_v0, 3  ;;  %v234_v25 = vrot.slane %v2550_v1, 4  ;;  %v2580_v27 = vmul.f32 %v2474_v22, %v67_v55 }
  0x81   :  { %v270_v28 = vrot.slane %v2553_v2, 5  ;;  %v306_v29 = vrot.slane %v2556_v3, 6  ;;  %v2585_v30 = vmul.f32 %v2488_v31, %v67_v55  ;;  %v2588_v33 = vmul.f32 %v2502_v36, %v67_v55 }
  0x82   :  { %v342_v37 = vrot.slane %v2562_v5, 7  ;;  %v123_v38 = vrot.slane %v110_v6, 1  ;;  %v159_v42 = vrot.slane %v146_v20, 2  ;;  %v195_v45 = vrot.slane %v2574_v21, 3 }
  0x83   :  { %v2595_v46 = vmul.f32 %v2511_v41, %v67_v55  ;;  %v2597_v47 = vadd.f32 %v312_v4, %v284_v8  ;;  %v231_v48 = vrot.slane %v2580_v27, 4  ;;  %v267_v56 = vrot.slane %v2585_v30, 5  ;;  %v2608_v55 = vld [vmem:[%s3286_s12] sm:$0xff] }
  0x84   :  { %v77_v34 = vpop.permute.xlu1 %76  ;;  %v72_v35 = vpop.permute.xlu0 %71  ;;  %v303_v57 = vrot.slane %v2588_v33, 6  ;;  %962 = vmatpush.msrb.mxu1 %v2608_v55 }
  0x85   :  { %v113_v39 = vmul.f32 %v2440_v9, %v77_v34  ;;  %v149_v40 = vmul.f32 %v2445_v10, %v77_v34  ;;  %v185_v54 = vmul.f32 %v2456_v13, %v77_v34  ;;  %v89_v58 = vmul.f32 %v2461_v14, %v77_v34 }
  0x86   :  { %v221_v60 = vmul.f32 %v2474_v22, %v77_v34  ;;  %v257_v63 = vmul.f32 %v2488_v31, %v77_v34  ;;  %v2615_v4 = vmul.f32 %v2502_v36, %v77_v34  ;;  %v111_v6 = vmul.f32 %v2440_v9, %v72_v35 }
  0x87   :  { %v128_v50 = vrot.slane %v113_v39, 1  ;;  %v164_v51 = vrot.slane %v149_v40, 2  ;;  %v2620_v20 = vmul.f32 %v2511_v41, %v77_v34  ;;  %v147_v21 = vmul.f32 %v2445_v10, %v72_v35 }
  0x88   :  { %v183_v27 = vmul.f32 %v2456_v13, %v72_v35  ;;  %v124_v30 = vrot.slane %v111_v6, 1  ;;  %v219_v39 = vmul.f32 %v2474_v22, %v72_v35  ;;  %v236_v40 = vrot.slane %v221_v60, 4  ;;  %v2646_v6 = vld [vmem:[%s3287_s13] ss:$0 sm:$0xff] }
  0x89   :  { %v130_v61 = vsel %vm122_vm0, %v128_v50, %v129_v15  ;;  %v166_v11 = vsel %vm158_vm1, %v164_v51, %v165_v18  ;;  %v200_v15 = vrot.slane %v185_v54, 3  ;;  %v88_v50 = vmul.f32 %v2461_v14, %v72_v35 }
  0x8a   :  { %v139_v8 = vadd.f32 %v130_v61, %v89_v58  ;;  %v160_v58 = vrot.slane %v147_v21, 2  ;;  %v125_v34 = vsel %vm122_vm0, %v123_v38, %v124_v30  ;;  %v127_v10 = vsel %vm122_vm0, %v124_v30, %v126_v17 }
  0x8b   :  { %v196_v61 = vrot.slane %v183_v27, 3  ;;  %v255_v13 = vmul.f32 %v2488_v31, %v72_v35  ;;  %v272_v18 = vrot.slane %v257_v63, 5  ;;  %v137_v51 = vadd.f32 %v125_v34, %v87_v19 }
  0x8c   :  { %v175_v9 = vadd.f32 %v166_v11, %v139_v8  ;;  %v138_v22 = vadd.f32 %v127_v10, %v88_v50  ;;  %v291_v54 = vmul.f32 %v2502_v36, %v72_v35  ;;  %v808_v60 = vpop.permute.xlu0 %807  ;;  %v202_v14 = vsel %vm194_vm2, %v200_v15, %v201_v26 }
  0x8d   :  { %v161_v17 = vsel %vm158_vm1, %v159_v42, %v160_v58  ;;  %v163_v38 = vsel %vm158_vm1, %v160_v58, %v162_v23  ;;  %v232_v31 = vrot.slane %v219_v39, 4  ;;  %v327_v36 = vmul.f32 %v2511_v41, %v72_v35 }
  0x8e   :  { %v211_v63 = vadd.f32 %v202_v14, %v175_v9  ;;  %v173_v19 = vadd.f32 %v161_v17, %v137_v51  ;;  %v174_v8 = vadd.f32 %v163_v38, %v138_v22  ;;  %v197_v21 = vsel %vm194_vm2, %v195_v45, %v196_v61 }
  0x8f   :  { %v199_v16 = vsel %vm194_vm2, %v196_v61, %v198_v24  ;;  %v268_v26 = vrot.slane %v255_v13, 5  ;;  %v888_v23 = vmul.f32 %v2635_v12, %v808_v60  ;;  %v308_v42 = vrot.slane %v2615_v4, 6 }
  0x90   :  { %v209_v27 = vadd.f32 %v197_v21, %v173_v19  ;;  %v210_v11 = vadd.f32 %v199_v16, %v174_v8  ;;  %v304_v15 = vrot.slane %v291_v54, 6  ;;  %v233_v39 = vsel %vm230_vm3, %v231_v48, %v232_v31  ;;  %v2151_v48 = vld [vmem:[%s3277_s3] ss:$0 sm:$0xff] }
  0x91   :  { %v908_v30 = vadd.f32 %v2646_v6, %v888_v23  ;;  %v235_v41 = vsel %vm230_vm3, %v232_v31, %v234_v25  ;;  %v238_v0 = vsel %vm230_vm3, %v236_v40, %v237_v43  ;;  %v344_v24 = vrot.slane %v2620_v20, 7 }
  0x92   :  { %v245_v35 = vadd.f32 %v233_v39, %v209_v27  ;;  %v246_v45 = vadd.f32 %v235_v41, %v210_v11  ;;  %v247_v4 = vadd.f32 %v238_v0, %v211_v63  ;;  %v271_v9 = vsel %vm266_vm4, %v268_v26, %v270_v28 }
  0x93   :  { %v340_v50 = vrot.slane %v327_v36, 7  ;;  %925 = vst.msk [vmem:[#allocation2] sm:$0x3] %vm924_vm7, %v908_v30  ;;  %v269_v1 = vsel %vm266_vm4, %v267_v56, %v268_v26  ;;  %v274_v32 = vsel %vm266_vm4, %v272_v18, %v273_v53  ;;  %v356_v2 = vadd.f32 %v2568_v7, %v2597_v47 }
  0x94   :  { %v281_v25 = vadd.f32 %v269_v1, %v245_v35  ;;  %v282_v43 = vadd.f32 %v271_v9, %v246_v45  ;;  %v283_v20 = vadd.f32 %v274_v32, %v247_v4  ;;  %v339_v28 = vrot.slane %v2595_v46, 7 }
  0x95   :  { %v307_v56 = vsel %vm302_vm5, %v304_v15, %v306_v29  ;;  %v305_v44 = vsel %vm302_vm5, %v303_v57, %v304_v15  ;;  %v310_v53 = vsel %vm302_vm5, %v308_v42, %v309_v59  ;;  %v343_v7 = vsel %vm338_vm6, %v340_v50, %v342_v37 }
  0x96   :  { %v317_v40 = vadd.f32 %v305_v44, %v281_v25  ;;  %v318_v58 = vadd.f32 %v307_v56, %v282_v43  ;;  %v319_v34 = vadd.f32 %v310_v53, %v283_v20  ;;  %v341_v10 = vsel %vm338_vm6, %v339_v28, %v340_v50 }
  0x97   :  { %v346_v3 = vsel %vm338_vm6, %v344_v24, %v345_v62  ;;  %v364_v46 = vmul.f32 %v2151_v48, %v356_v2  ;;  %v2318_v9 = vmov 0.0  }
  0x98   :  { %v353_v29 = vadd.f32 %v341_v10, %v317_v40  ;;  %v354_v33 = vadd.f32 %v343_v7, %v318_v58  ;;  %v355_v59 = vadd.f32 %v346_v3, %v319_v34 }
  0x99   :  { %v372_v51 = vadd.f32 %v2152_v49, %v364_v46 }
  0x9a   :  { %v361_v47 = vmul.f32 %v2151_v48, %v353_v29  ;;  %v362_v57 = vmul.f32 %v2151_v48, %v354_v33  ;;  %v363_v61 = vmul.f32 %v2151_v48, %v355_v59  ;;  %v941_v43 = vld [vmem:[#allocation2] sm:$0x3] }
  0x9b   :  { %v376_v60 = vmax.f32 %v372_v51, 0.0 }
  0x9c   :  { %v369_v13 = vadd.f32 %v2152_v49, %v361_v47  ;;  %v370_v18 = vadd.f32 %v2152_v49, %v362_v57  ;;  %v371_v5 = vadd.f32 %v2152_v49, %v363_v61  ;;  %v789_v47 = vld [vmem:[%s3297_s24 + $0x2] sm:$0x3] }
  0x9d   :  { %v385_v19 = vrot.slane %v376_v60, 6 }
  0x9e   :  { %v373_v37 = vmax.f32 %v369_v13, 0.0  ;;  %v374_v22 = vmax.f32 %v370_v18, 0.0  ;;  %v375_v62 = vmax.f32 %v371_v5, 0.0 }
  0x9f   :  { %v2716_v26 = vsel %vm302_vm5, %v385_v19, 0.0 }
  0xa0   :  { %v381_v52 = vrot.slane %v373_v37, 6  ;;  %v382_v54 = vrot.slane %v374_v22, 6  ;;  %v384_v63 = vrot.slane %v375_v62, 6  ;;  %v453_v15 = vrot.slane %v2716_v26, 3 }
  0xa1   :  { %v475_v45 = vrot.slane %v2716_v26, 4  ;;  %v409_v51 = vrot.slane %v2716_v26, 1 }
  0xa2   :  { %v2698_v14 = vsel %vm302_vm5, %v381_v52, %v382_v54  ;;  %v2701_v17 = vsel %vm302_vm5, 0.0, %v381_v52  ;;  %v2708_v36 = vsel %vm302_vm5, %v382_v54, 0.0  ;;  %v2713_v16 = vsel %vm302_vm5, %v384_v63, %v385_v19 }
  0xa3   :  { %v467_v38 = vrot.slane %v2701_v17, 4  ;;  %v468_v31 = vrot.slane %v2698_v14, 4  ;;  %v446_v21 = vrot.slane %v2698_v14, 3  ;;  %v470_v23 = vrot.slane %v2708_v36, 4 }
  0xa4   :  { %v448_v42 = vrot.slane %v2708_v36, 3  ;;  %v451_v11 = vrot.slane %v2713_v16, 3  ;;  %v2733_v41 = vsel %vm302_vm5, 0.0, %v384_v63  ;;  %v473_v24 = vrot.slane %v2713_v16, 4 }
  0xa5   :  { %v469_v8 = vsel %vm230_vm3, %v467_v38, %v468_v31  ;;  %v471_v30 = vsel %vm230_vm3, %v468_v31, %v470_v23  ;;  %v472_v0 = vrot.slane %v2733_v41, 4  ;;  %v445_v57 = vrot.slane %v2701_v17, 3 }
  0xa6   :  { %2083 = vmatmul.msk.f32.vlgmr.msra.gmra.mxu1 %vm477_vm8, %v469_v8  ;;  %v2721_v27 = vsel %vm194_vm2, %v446_v21, %v448_v42  ;;  %v2729_v39 = vsel %vm194_vm2, %v451_v11, %v453_v15  ;;  %v476_v4 = vsel %vm230_vm3, %v473_v24, %v475_v45  ;;  %v406_v13 = vrot.slane %v2733_v41, 1 }
  0xa7   :  { %1028 = vmatpush.msra.mxu1 %v2608_v55  ;;  %v474_v35 = vsel %vm230_vm3, %v472_v0, %v473_v24  ;;  %v447_v61 = vsel %vm194_vm2, %v445_v57, %v446_v21  ;;  %v407_v18 = vrot.slane %v2713_v16, 1  ;;  %v401_v31 = vrot.slane %v2701_v17, 1 }
  0xa8   :  { %v402_v63 = vrot.slane %v2698_v14, 1  ;;  %v404_v19 = vrot.slane %v2708_v36, 1  ;;  %v424_v15 = vrot.slane %v2698_v14, 2  ;;  %v428_v24 = vrot.slane %v2733_v41, 2 }
  0xa9   :  { %v408_v5 = vsel %vm122_vm0, %v406_v13, %v407_v18  ;;  %v410_v37 = vsel %vm122_vm0, %v407_v18, %v409_v51 }
  0xaa   :  { %v403_v21 = vsel %vm122_vm0, %v401_v31, %v402_v63  ;;  %v405_v23 = vsel %vm122_vm0, %v402_v63, %v404_v19 }
  0xab   :  { %v2136_v42 = vpack.i.bf16 %v405_v23, %v403_v21 }
  0xae   :  { %2084 = vmatmul.msk.f32.gmra.mxu1 %vm477_vm8, %v471_v30  ;;  %v426_v30 = vrot.slane %v2708_v36, 2 }
  0xb0   :  { %v427_v0 = vsel %vm158_vm1, %v424_v15, %v426_v30 }
  0xb6   :  { %2085 = vmatmul.msk.f32.gmra.mxu1 %vm477_vm8, %v474_v35  ;;  %v429_v35 = vrot.slane %v2713_v16, 2 }
  0xb8   :  { %v430_v45 = vsel %vm158_vm1, %v428_v24, %v429_v35  ;;  %v679_v24 = vld [vmem:[%s3282_s8 + $0xa8] sm:$0xff] }
  0xbe   :  { %2086 = vmatmul.msk.f32.gmra.mxu1 %vm477_vm8, %v476_v4  ;;  %v431_v4 = vrot.slane %v2716_v26, 2  ;;  %v505_v26 = vld [vmem:[%s3279_s5 + $0x68] sm:$0xff] }
  0xc6   :  { %963 = vmatmul.f32.vlgmr.msrb.gmra.mxu1 %v2318_v9  ;;  %v432_v9 = vsel %vm158_vm1, %v429_v35, %v431_v4 }
  0xc7   :  { %1160 = vmatpush.msrb.mxu1 %v2608_v55 }
 0x123   :  { %v2743_v50 = vpop.f32.mrf.mxu1 }
 0x12b   :  { %v2745_v1 = vpop.f32.mrf.mxu1 }
 0x133   :  { %v2747_v32 = vpop.f32.mrf.mxu1 }
 0x13b   :  { %v2749_v25 = vpop.f32.mrf.mxu1 }
 0x143   :  { %v964_v48 = vpop.f32.mrf.mxu1 }
 0x144   :  { %v967_v20 = vadd.f32 %v964_v48, %v941_v43  ;;  %v507_v48 = vld [vmem:[%s3279_s5 + $0x78] sm:$0xff] }
 0x145   :  { %520 = vmatpush.msra.mxu0 %v507_v48  ;;  %v675_v48 = vld [vmem:[%s3282_s8 + $0x88] sm:$0xff] }
 0x146   :  { %2158 = vtanh.f32 %v967_v20  ;;  %v2091_v28 = vmul.f32 -1.442695, %v967_v20  ;;  %v506_v20 = vld [vmem:[%s3279_s5 + $0x70] sm:$0xff] }
 0x147   :  { %521 = vmatpush.msra.mxu0 %v506_v20  ;;  %v674_v20 = vld [vmem:[%s3282_s8 + $0x80] sm:$0xff] }
 0x148   :  { %2160 = vpow2.f32 %v2091_v28  ;;  %v504_v28 = vld [vmem:[%s3279_s5 + $0x60] sm:$0xff] }
 0x149   :  { %522 = vmatpush.msra.mxu0 %v505_v26 }
 0x14b   :  { %523 = vmatpush.msra.mxu0 %v504_v28 }
 0x14c   :  { %v2159_v2 = vpop.eup %2158 }
 0x14d   :  { %990 = vrot.lane.b32.xlu1 %v2159_v2, %s2319_s4  ;;  %v423_v2 = vrot.slane %v2701_v17, 2 }
 0x14e   :  { %v2161_v56 = vpop.eup %2160 }
 0x14f   :  { %v971_v44 = vadd.f32 1.0, %v2161_v56  ;;  %v503_v56 = vld [vmem:[%s3279_s5 + $0x58] sm:$0xff] }
 0x150   :  { %524 = vmatpush.msra.mxu0 %v503_v56 }
 0x151   :  { %2162 = vrcp.f32 %v971_v44  ;;  %v983_v7 = vand.u32 2147483648, %v971_v44  ;;  %vm977_vm10 = vweird.f32 %v971_v44  ;;  %v981_v3 = vand.u32 2147483647, %v971_v44 }
 0x153   :  { %v984_v33 = vor.u32 1.1754944e-38, %v983_v7  ;;  %vm982_vm12 = vcmp.eq.f32.partialorder %v981_v3, 8.507059e+37  ;;  %v497_v7 = vld [vmem:[%s3279_s5 + $0x28] sm:$0xff]  ;;  %v450_v3 = vrot.slane %v2733_v41, 3 }
 0x157   :  { %v2163_v53 = vpop.eup %2162 }
 0x158   :  { %v973_v40 = vmul.f32 %v2163_v53, %v971_v44  ;;  %vm978_vm9 = vweird.f32 %v2163_v53  ;;  %v425_v44 = vsel %vm158_vm1, %v423_v2, %v424_v15  ;;  %v2153_v2 = vld [vmem:[%s3280_s6] ss:$0 sm:$0xff] }
 0x159   :  { %vm979_vm11 = vmor %vm977_vm10, %vm978_vm9 }
 0x15a   :  { %v974_v58 = vsub.f32 1.0, %v973_v40  ;;  %v501_v40 = vld [vmem:[%s3279_s5 + $0x48] sm:$0xff] }
 0x15c   :  { %v975_v34 = vmul.f32 %v2163_v53, %v974_v58  ;;  %v500_v58 = vld [vmem:[%s3279_s5 + $0x40] sm:$0xff] }
 0x15e   :  { %v976_v10 = vadd.f32 %v2163_v53, %v975_v34  ;;  %v499_v34 = vld [vmem:[%s3279_s5 + $0x38] sm:$0xff] }
 0x160   :  { %v980_v29 = vsel %vm979_vm11, %v2163_v53, %v976_v10  ;;  %v502_v53 = vld [vmem:[%s3279_s5 + $0x50] sm:$0xff] }
 0x161   :  { %v985_v59 = vsel %vm982_vm12, %v984_v33, %v980_v29  ;;  %525 = vmatpush.msra.mxu0 %v502_v53  ;;  %v498_v10 = vld [vmem:[%s3279_s5 + $0x30] sm:$0xff]  ;;  %v452_v29 = vsel %vm194_vm2, %v450_v3, %v451_v11  ;;  %v495_v33 = vld [vmem:[%s3279_s5 + $0x18] sm:$0xff]  ;;  %v493_v11 = vld [vmem:[%s3279_s5 + $0x8] sm:$0xff] }
 0x162   :  { %v988_v22 = vmul.f32 0.0, %v985_v59 }
 0x163   :  { %526 = vmatpush.msra.mxu0 %v501_v40 }
 0x165   :  { %527 = vmatpush.msra.mxu0 %v500_v58 }
 0x167   :  { %528 = vmatpush.msra.mxu0 %v499_v34 }
 0x169   :  { %529 = vmatpush.msra.mxu0 %v498_v10 }
 0x16b   :  { %530 = vmatpush.msra.mxu0 %v497_v7 }
 0x1bf   :  { %v991_v49 = vpop.permute.xlu1 %990 }
 0x1c0   :  { %v993_v46 = vmul.f32 %v991_v49, %v985_v59  ;;  %v494_v49 = vld [vmem:[%s3279_s5 + $0x10] sm:$0xff] }
 0x1c2   :  { %995 = vrot.lane.b32.xlu2 %v993_v46, %s2320_s26 }
 0x1ca   :  { %812 = vperm.xlu2 %2135, %v789_v47  }
 0x1d2   :  { %455 = vrot.lane.b32.xlu2 %v447_v61, %s2321_s18 }
 0x1da   :  { %415 = vrot.lane.b32.xlu2 %v408_v5, %s2322_s19 }
 0x1e2   :  { %417 = vrot.lane.b32.xlu2 %v410_v37, %s2322_s19 }
 0x21c   :  { %v996_v52 = vpop.permute.xlu2 %995 }
 0x21d   :  { %v2764_v54 = vadd.f32 %v996_v52, %v988_v22 }
 0x21f   :  { %2164 = vtanh.f32 %v2764_v54 }
 0x224   :  { %v813_v62 = vpop.permute.xlu2 %812 }
 0x225   :  { %v2165_v60 = vpop.eup %2164  ;;  %v889_v38 = vmul.f32 %v2635_v12, %v813_v62 }
 0x226   :  { %1001 = vrot.lane.b32.xlu0 %v2165_v60, %s2320_s26 }
 0x227   :  { %v909_v8 = vadd.f32 %v2646_v6, %v889_v38 }
 0x229   :  { %926 = vst.msk [vmem:[#allocation2 + $0x2] sm:$0x3] %vm924_vm7, %v909_v8 }
 0x22c   :  { %v456_v57 = vpop.permute.xlu2 %455 }
 0x22e   :  { %2137 = vrot.lane.b32.xlu0 %v2136_v42, %s2322_s19 }
 0x230   :  { %v1007_v35 = vld [vmem:[#allocation2 + $0x2] sm:$0x3] }
 0x234   :  { %v416_v38 = vpop.permute.xlu2 %415 }
 0x236   :  { %435 = vrot.lane.b32.xlu0 %v427_v0, %s2323_s1  ;;  %v680_v0 = vld [vmem:[%s3282_s8 + $0xb0] sm:$0xff] }
 0x23c   :  { %v418_v21 = vpop.permute.xlu2 %417 }
 0x23e   :  { %437 = vrot.lane.b32.xlu0 %v430_v45, %s2323_s1 }
 0x246   :  { %439 = vrot.lane.b32.xlu0 %v432_v9, %s2323_s1  ;;  %v677_v9 = vld [vmem:[%s3282_s8 + $0x98] sm:$0xff] }
 0x298   :  { %v1002_v36 = vpop.permute.xlu0 %1001 }
 0x299   :  { %v2787_v43 = vmul.f32 %v1002_v36, %v985_v59  ;;  %v676_v36 = vld [vmem:[%s3282_s8 + $0x90] sm:$0xff] }
 0x29b   :  { %1009 = vrot.lane.b32.xlu1 %v2787_v43, %s2324_s2 }
 0x2a0   :  { %v2138_v59 = vpop.permute.xlu0 %2137 }
 0x2a1   :  { %v2139_v47 = vunpack.i.l.bf16 %v2138_v59  ;;  %v2140_v37 = vunpack.i.h.bf16 %v2138_v59 }
 0x2a3   :  { %433 = vrot.lane.b32.xlu1 %v425_v44, %s2323_s1  ;;  %v478_v13 = vsel %vm477_vm8, %v2701_v17, %v2139_v47  ;;  %v479_v22 = vsel %vm477_vm8, %v2698_v14, %v2140_v37  ;;  %v480_v17 = vsel %vm477_vm8, %v2733_v41, %v416_v38  ;;  %v481_v14 = vsel %vm477_vm8, %v2713_v16, %v418_v21  ;;  %v681_v41 = vld [vmem:[%s3282_s8 + $0xb8] sm:$0xff]  ;;  %v678_v16 = vld [vmem:[%s3282_s8 + $0xa0] sm:$0xff] }
 0x2a4   :  { %727 = vmatpush.msra.mxu3 %v681_v41  ;;  %v2154_v44 = vld [vmem:[%s3281_s7] ss:$0 sm:$0xff] }
 0x2a6   :  { %728 = vmatpush.msra.mxu3 %v680_v0 }
 0x2a8   :  { %v436_v18 = vpop.permute.xlu0 %435  ;;  %729 = vmatpush.msra.mxu3 %v679_v24 }
 0x2a9   :  { %v484_v52 = vsel %vm482_vm15, %v479_v22, %v436_v18 }
 0x2aa   :  { %730 = vmatpush.msra.mxu3 %v678_v16 }
 0x2ab   :  { %457 = vrot.lane.b32.xlu1 %v2721_v27, %s2321_s18  ;;  %v496_v27 = vld [vmem:[%s3279_s5 + $0x20] sm:$0xff] }
 0x2ac   :  { %531 = vmatpush.msra.mxu0 %v496_v27  ;;  %731 = vmatpush.msra.mxu3 %v677_v9 }
 0x2ae   :  { %532 = vmatpush.msra.mxu0 %v495_v33  ;;  %732 = vmatpush.msra.mxu3 %v676_v36 }
 0x2b0   :  { %533 = vmatpush.msra.mxu0 %v494_v49  ;;  %v438_v31 = vpop.permute.xlu0 %437  ;;  %733 = vmatpush.msra.mxu3 %v675_v48 }
 0x2b1   :  { %v485_v63 = vsel %vm482_vm15, %v480_v17, %v438_v31 }
 0x2b2   :  { %534 = vmatpush.msra.mxu0 %v493_v11  ;;  %734 = vmatpush.msra.mxu3 %v674_v20 }
 0x2b3   :  { %459 = vrot.lane.b32.xlu1 %v452_v29, %s2321_s18 }
 0x2b4   :  { %1094 = vmatpush.msrb.mxu3 %v2608_v55 }
 0x2b8   :  { %v440_v23 = vpop.permute.xlu0 %439 }
 0x2b9   :  { %v486_v42 = vsel %vm482_vm15, %v481_v14, %v440_v23 }
 0x2bb   :  { %461 = vrot.lane.b32.xlu1 %v2729_v39, %s2321_s18  ;;  %v492_v39 = vld [vmem:[%s3279_s5] sm:$0xff] }
 0x2bc   :  { %535 = vmatpush.msra.mxu0 %v492_v39 }
 0x2be   :  { %1292 = vmatpush.msrb.mxu0 %v2608_v55 }
 0x30d   :  { %v1010_v46 = vpop.permute.xlu1 %1009 }
 0x30e   :  { %2092 = vmatmul.msk.f32.vlgmr.msra.gmra.mxu1 %vm943_vm13, %v1010_v46 }
 0x30f   :  { %1358 = vmatpush.msra.mxu1 %v2608_v55 }
 0x315   :  { %v434_v61 = vpop.permute.xlu1 %433 }
 0x316   :  { %v483_v5 = vsel %vm482_vm15, %v478_v13, %v434_v61 }
 0x317   :  { %v488_v51 = vsel %vm487_vm14, %v483_v5, %v456_v57 }
 0x318   :  { %536 = vmatmul.f32.vlgmr.msra.gmra.mxu0 %v488_v51 }
 0x319   :  { %1556 = vmatpush.msra.mxu0 %v2608_v55 }
 0x31d   :  { %v458_v62 = vpop.permute.xlu1 %457 }
 0x31e   :  { %v489_v60 = vsel %vm487_vm14, %v484_v52, %v458_v62 }
 0x320   :  { %539 = vmatmul.f32.gmra.mxu0 %v489_v60 }
 0x325   :  { %v460_v19 = vpop.permute.xlu1 %459 }
 0x326   :  { %v490_v8 = vsel %vm487_vm14, %v485_v63, %v460_v19 }
 0x328   :  { %542 = vmatmul.f32.gmra.mxu0 %v490_v8 }
 0x32d   :  { %v462_v15 = vpop.permute.xlu1 %461 }
 0x32e   :  { %v491_v30 = vsel %vm487_vm14, %v486_v42, %v462_v15 }
 0x330   :  { %545 = vmatmul.f32.gmra.mxu0 %v491_v30 }
 0x38b   :  { %v1030_v45 = vpop.f32.mrf.mxu1 }
 0x38c   :  { %v1033_v4 = vadd.f32 %v1030_v45, %v1007_v35 }
 0x38e   :  { %2166 = vtanh.f32 %v1033_v4  ;;  %v2093_v42 = vmul.f32 -1.442695, %v1033_v4 }
 0x390   :  { %2168 = vpow2.f32 %v2093_v42 }
 0x394   :  { %v2167_v26 = vpop.eup %2166 }
 0x395   :  { %1056 = vrot.lane.b32.xlu2 %v2167_v26, %s2319_s4  ;;  %v537_v28 = vpop.f32.mrf.mxu0 }
 0x396   :  { %v567_v56 = vadd.f32 %v2743_v50, %v537_v28  ;;  %v2169_v30 = vpop.eup %2168  ;;  %v790_v28 = vld [vmem:[%s3297_s24 + $0x4] sm:$0x3] }
 0x397   :  { %v1037_v41 = vadd.f32 1.0, %v2169_v30 }
 0x398   :  { %v582_v53 = vmul.f32 %v2153_v2, %v567_v56 }
 0x399   :  { %2170 = vrcp.f32 %v1037_v41  ;;  %v1049_v9 = vand.u32 2147483648, %v1037_v41  ;;  %vm1043_vm3 = vweird.f32 %v1037_v41  ;;  %v1047_v36 = vand.u32 2147483647, %v1037_v41 }
 0x39a   :  { %v590_v40 = vadd.f32 %v2154_v44, %v582_v53 }
 0x39b   :  { %v1050_v4 = vor.u32 1.1754944e-38, %v1049_v9  ;;  %vm1048_vm5 = vcmp.eq.f32.partialorder %v1047_v36, 8.507059e+37 }
 0x39c   :  { %v594_v34 = vmax.f32 %v590_v40, 0.0 }
 0x39d   :  { %v540_v58 = vpop.f32.mrf.mxu0 }
 0x39e   :  { %v570_v10 = vadd.f32 %v2745_v1, %v540_v58  ;;  %v602_v3 = vrot.slane %v594_v34, 7 }
 0x39f   :  { %v2171_v0 = vpop.eup %2170 }
 0x3a0   :  { %v583_v7 = vmul.f32 %v2153_v2, %v570_v10  ;;  %v2906_v49 = vsel %vm338_vm6, 0.0, %v602_v3  ;;  %v1039_v24 = vmul.f32 %v2171_v0, %v1037_v41  ;;  %vm1044_vm2 = vweird.f32 %v2171_v0 }
 0x3a1   :  { %v644_v47 = vrot.slane %v2906_v49, 2  ;;  %vm1045_vm4 = vmor %vm1043_vm3, %vm1044_vm2 }
 0x3a2   :  { %v591_v29 = vadd.f32 %v2154_v44, %v583_v7  ;;  %v1040_v16 = vsub.f32 1.0, %v1039_v24 }
 0x3a4   :  { %v595_v27 = vmax.f32 %v591_v29, 0.0  ;;  %v1041_v35 = vmul.f32 %v2171_v0, %v1040_v16 }
 0x3a5   :  { %v543_v33 = vpop.f32.mrf.mxu0 }
 0x3a6   :  { %v603_v11 = vrot.slane %v595_v27, 7  ;;  %v573_v50 = vadd.f32 %v2747_v32, %v543_v33  ;;  %v1042_v45 = vadd.f32 %v2171_v0, %v1041_v35 }
 0x3a8   :  { %v584_v39 = vmul.f32 %v2153_v2, %v573_v50  ;;  %v2910_v59 = vsel %vm338_vm6, %v602_v3, %v603_v11  ;;  %v616_v46 = vsel %vm338_vm6, %v603_v11, 0.0  ;;  %v1046_v48 = vsel %vm1045_vm4, %v2171_v0, %v1042_v45 }
 0x3a9   :  { %v645_v1 = vrot.slane %v2910_v59, 2  ;;  %v623_v57 = vrot.slane %v2910_v59, 1  ;;  %v625_v13 = vrot.slane %v616_v46, 1  ;;  %v647_v22 = vrot.slane %v616_v46, 2 }
 0x3aa   :  { %v592_v61 = vadd.f32 %v2154_v44, %v584_v39  ;;  %v1051_v26 = vsel %vm1048_vm5, %v1050_v4, %v1046_v48 }
 0x3ab   :  { %v646_v18 = vsel %vm158_vm1, %v644_v47, %v645_v1  ;;  %v2921_v32 = vsel %vm122_vm0, %v623_v57, %v625_v13  ;;  %v648_v38 = vsel %vm158_vm1, %v645_v1, %v647_v22  ;;  %v1054_v56 = vmul.f32 %v1051_v26, %v2764_v54 }
 0x3ac   :  { %2087 = vmatmul.msk.f32.vlgmr.msra.gmra.mxu3 %vm482_vm15, %v646_v18  ;;  %v596_v51 = vmax.f32 %v592_v61, 0.0 }
 0x3ad   :  { %v546_v5 = vpop.f32.mrf.mxu0  ;;  %1226 = vmatpush.msra.mxu3 %v2608_v55 }
 0x3ae   :  { %v576_v37 = vadd.f32 %v2749_v25, %v546_v5  ;;  %v605_v62 = vrot.slane %v596_v51, 7 }
 0x3b0   :  { %v585_v52 = vmul.f32 %v2153_v2, %v576_v37  ;;  %v2928_v17 = vsel %vm338_vm6, 0.0, %v605_v62 }
 0x3b1   :  { %v649_v8 = vrot.slane %v2928_v17, 2 }
 0x3b2   :  { %v593_v60 = vadd.f32 %v2154_v44, %v585_v52 }
 0x3b4   :  { %v597_v31 = vmax.f32 %v593_v60, 0.0  ;;  %2088 = vmatmul.msk.f32.gmra.mxu3 %vm482_vm15, %v648_v38 }
 0x3b6   :  { %v606_v63 = vrot.slane %v597_v31, 7 }
 0x3b8   :  { %v2931_v19 = vsel %vm338_vm6, %v605_v62, %v606_v63  ;;  %v2938_v23 = vsel %vm338_vm6, %v606_v63, 0.0 }
 0x3b9   :  { %v650_v25 = vrot.slane %v2931_v19, 2  ;;  %v652_v14 = vrot.slane %v2938_v23, 2 }
 0x3bb   :  { %v651_v21 = vsel %vm158_vm1, %v649_v8, %v650_v25  ;;  %v653_v15 = vsel %vm158_vm1, %v650_v25, %v652_v14  ;;  %v791_v25 = vld [vmem:[%s3297_s24 + $0x6] sm:$0x3] }
 0x3bc   :  { %2089 = vmatmul.msk.f32.gmra.mxu3 %vm482_vm15, %v651_v21 }
 0x3c4   :  { %2090 = vmatmul.msk.f32.gmra.mxu3 %vm482_vm15, %v653_v15 }
 0x3ef   :  { %v1057_v20 = vpop.permute.xlu2 %1056 }
 0x3f0   :  { %v1059_v2 = vmul.f32 %v1057_v20, %v1051_v26 }
 0x3f2   :  { %1061 = vrot.lane.b32.xlu0 %v1059_v2, %s2320_s26 }
 0x3fa   :  { %817 = vperm.xlu0 %2133, %v790_v28  }
 0x42f   :  { %v2955_v54 = vpop.f32.mrf.mxu3 }
 0x437   :  { %v2957_v27 = vpop.f32.mrf.mxu3 }
 0x43f   :  { %v2959_v33 = vpop.f32.mrf.mxu3 }
 0x447   :  { %v2961_v11 = vpop.f32.mrf.mxu3 }
 0x464   :  { %v1062_v44 = vpop.permute.xlu0 %1061 }
 0x465   :  { %v1064_v53 = vadd.f32 %v1062_v44, %v1054_v56 }
 0x467   :  { %2172 = vtanh.f32 %v1064_v53 }
 0x46c   :  { %v818_v40 = vpop.permute.xlu0 %817 }
 0x46d   :  { %v2173_v58 = vpop.eup %2172  ;;  %v890_v34 = vmul.f32 %v2635_v12, %v818_v40 }
 0x46e   :  { %1067 = vrot.lane.b32.xlu1 %v2173_v58, %s2320_s26 }
 0x46f   :  { %v910_v10 = vadd.f32 %v2646_v6, %v890_v34 }
 0x471   :  { %927 = vst.msk [vmem:[#allocation2 + $0x4] sm:$0x3] %vm924_vm7, %v910_v10 }
 0x478   :  { %v1073_v50 = vld [vmem:[#allocation2 + $0x4] sm:$0x3] }
 0x4e0   :  { %v1068_v7 = vpop.permute.xlu1 %1067 }
 0x4e1   :  { %v1070_v3 = vmul.f32 %v1068_v7, %v1051_v26 }
 0x4e3   :  { %1075 = vrot.lane.b32.xlu2 %v1070_v3, %s2324_s2  ;;  %v1071_v16 = vadd.f32 %v1070_v3, %v2787_v43 }
 0x53d   :  { %v1076_v29 = vpop.permute.xlu2 %1075 }
 0x53e   :  { %2094 = vmatmul.msk.f32.vlgmr.msrb.gmra.mxu3 %vm943_vm13, %v1076_v29 }
 0x53f   :  { %1490 = vmatpush.msrb.mxu3 %v2608_v55 }
 0x5c1   :  { %v1096_v39 = vpop.f32.mrf.mxu3 }
 0x5c2   :  { %v1099_v46 = vadd.f32 %v1096_v39, %v1073_v50  ;;  %v792_v39 = vld [vmem:[%s3297_s24 + $0x8] sm:$0x3] }
 0x5c4   :  { %2174 = vtanh.f32 %v1099_v46  ;;  %v2095_v1 = vmul.f32 -1.442695, %v1099_v46 }
 0x5c6   :  { %2176 = vpow2.f32 %v2095_v1 }
 0x5ca   :  { %v2175_v47 = vpop.eup %2174 }
 0x5cb   :  { %1122 = vrot.lane.b32.xlu1 %v2175_v47, %s2319_s4 }
 0x5cc   :  { %v2177_v61 = vpop.eup %2176 }
 0x5cd   :  { %v1103_v13 = vadd.f32 1.0, %v2177_v61 }
 0x5cf   :  { %2178 = vrcp.f32 %v1103_v13  ;;  %v1115_v52 = vand.u32 2147483648, %v1103_v13  ;;  %vm1109_vm6 = vweird.f32 %v1103_v13  ;;  %v1113_v62 = vand.u32 2147483647, %v1103_v13 }
 0x5d1   :  { %v1116_v38 = vor.u32 1.1754944e-38, %v1115_v52  ;;  %vm1114_vm10 = vcmp.eq.f32.partialorder %v1113_v62, 8.507059e+37 }
 0x5d5   :  { %v2179_v18 = vpop.eup %2178 }
 0x5d6   :  { %v1105_v5 = vmul.f32 %v2179_v18, %v1103_v13  ;;  %vm1110_vm1 = vweird.f32 %v2179_v18 }
 0x5d7   :  { %vm1111_vm9 = vmor %vm1109_vm6, %vm1110_vm1 }
 0x5d8   :  { %v1106_v51 = vsub.f32 1.0, %v1105_v5 }
 0x5da   :  { %v1107_v37 = vmul.f32 %v2179_v18, %v1106_v51 }
 0x5dc   :  { %v1108_v22 = vadd.f32 %v2179_v18, %v1107_v37 }
 0x5de   :  { %v1112_v60 = vsel %vm1111_vm9, %v2179_v18, %v1108_v22 }
 0x5df   :  { %v1117_v63 = vsel %vm1114_vm10, %v1116_v38, %v1112_v60 }
 0x5e0   :  { %v1120_v21 = vmul.f32 %v1117_v63, %v1064_v53 }
 0x63d   :  { %v1123_v31 = vpop.permute.xlu1 %1122 }
 0x63e   :  { %v1125_v8 = vmul.f32 %v1123_v31, %v1117_v63 }
 0x640   :  { %1127 = vrot.lane.b32.xlu2 %v1125_v8, %s2320_s26 }
 0x648   :  { %822 = vperm.xlu2 %2135, %v791_v25  }
 0x69a   :  { %v1128_v14 = vpop.permute.xlu2 %1127 }
 0x69b   :  { %v1130_v42 = vadd.f32 %v1128_v14, %v1120_v21 }
 0x69d   :  { %2180 = vtanh.f32 %v1130_v42 }
 0x6a2   :  { %v823_v15 = vpop.permute.xlu2 %822 }
 0x6a3   :  { %v2181_v30 = vpop.eup %2180  ;;  %v891_v41 = vmul.f32 %v2635_v12, %v823_v15 }
 0x6a4   :  { %1133 = vrot.lane.b32.xlu0 %v2181_v30, %s2320_s26 }
 0x6a5   :  { %v911_v0 = vadd.f32 %v2646_v6, %v891_v41 }
 0x6a7   :  { %928 = vst.msk [vmem:[#allocation2 + $0x6] sm:$0x3] %vm924_vm7, %v911_v0 }
 0x6ae   :  { %v1139_v36 = vld [vmem:[#allocation2 + $0x6] sm:$0x3] }
 0x716   :  { %v1134_v24 = vpop.permute.xlu0 %1133 }
 0x717   :  { %v1136_v35 = vmul.f32 %v1134_v24, %v1117_v63 }
 0x719   :  { %v1137_v45 = vadd.f32 %v1136_v35, %v1071_v16  ;;  %1141 = vrot.lane.b32.xlu1 %v1136_v35, %s2324_s2 }
 0x78b   :  { %v1142_v9 = vpop.permute.xlu1 %1141 }
 0x78c   :  { %2096 = vmatmul.msk.f32.vlgmr.msrb.gmra.mxu1 %vm943_vm13, %v1142_v9  ;;  %v793_v9 = vld [vmem:[%s3297_s24 + $0xa] sm:$0x3] }
 0x78d   :  { %1622 = vmatpush.msrb.mxu1 %v2608_v55 }
 0x809   :  { %v1162_v48 = vpop.f32.mrf.mxu1 }
 0x80a   :  { %v1165_v4 = vadd.f32 %v1162_v48, %v1139_v36 }
 0x80c   :  { %2182 = vtanh.f32 %v1165_v4  ;;  %v2097_v26 = vmul.f32 -1.442695, %v1165_v4 }
 0x80e   :  { %2184 = vpow2.f32 %v2097_v26 }
 0x812   :  { %v2183_v20 = vpop.eup %2182 }
 0x813   :  { %1188 = vrot.lane.b32.xlu0 %v2183_v20, %s2319_s4 }
 0x814   :  { %v2185_v2 = vpop.eup %2184 }
 0x815   :  { %v1169_v43 = vadd.f32 1.0, %v2185_v2 }
 0x817   :  { %2186 = vrcp.f32 %v1169_v43  ;;  %v1181_v58 = vand.u32 2147483648, %v1169_v43  ;;  %vm1175_vm12 = vweird.f32 %v1169_v43  ;;  %v1179_v34 = vand.u32 2147483647, %v1169_v43 }
 0x819   :  { %v1182_v7 = vor.u32 1.1754944e-38, %v1181_v58  ;;  %vm1180_vm2 = vcmp.eq.f32.partialorder %v1179_v34, 8.507059e+37 }
 0x81d   :  { %v2187_v28 = vpop.eup %2186 }
 0x81e   :  { %v1171_v56 = vmul.f32 %v2187_v28, %v1169_v43  ;;  %vm1176_vm11 = vweird.f32 %v2187_v28 }
 0x81f   :  { %vm1177_vm14 = vmor %vm1175_vm12, %vm1176_vm11 }
 0x820   :  { %v1172_v44 = vsub.f32 1.0, %v1171_v56 }
 0x822   :  { %v1173_v53 = vmul.f32 %v2187_v28, %v1172_v44 }
 0x824   :  { %v1174_v40 = vadd.f32 %v2187_v28, %v1173_v53 }
 0x826   :  { %v1178_v10 = vsel %vm1177_vm14, %v2187_v28, %v1174_v40  ;;  %v3002_v40 = vld [vmem:[%s3286_s12] sm:$0xff] }
 0x827   :  { %v1183_v29 = vsel %vm1180_vm2, %v1182_v7, %v1178_v10 }
 0x828   :  { %v1186_v46 = vmul.f32 %v1183_v29, %v1130_v42 }
 0x885   :  { %v1189_v3 = vpop.permute.xlu0 %1188 }
 0x886   :  { %v1191_v50 = vmul.f32 %v1189_v3, %v1183_v29 }
 0x888   :  { %1193 = vrot.lane.b32.xlu1 %v1191_v50, %s2320_s26 }
 0x890   :  { %827 = vperm.xlu1 %2134, %v792_v39  }
 0x8fa   :  { %v1194_v47 = vpop.permute.xlu1 %1193 }
 0x8fb   :  { %v1196_v1 = vadd.f32 %v1194_v47, %v1186_v46 }
 0x8fd   :  { %2188 = vtanh.f32 %v1196_v1 }
 0x902   :  { %v828_v61 = vpop.permute.xlu1 %827 }
 0x903   :  { %v2189_v13 = vpop.eup %2188  ;;  %v892_v18 = vmul.f32 %v2635_v12, %v828_v61 }
 0x904   :  { %1199 = vrot.lane.b32.xlu2 %v2189_v13, %s2320_s26 }
 0x905   :  { %v912_v5 = vadd.f32 %v2646_v6, %v892_v18 }
 0x907   :  { %929 = vst.msk [vmem:[#allocation2 + $0x8] sm:$0x3] %vm924_vm7, %v912_v5 }
 0x90e   :  { %v1205_v62 = vld [vmem:[#allocation2 + $0x8] sm:$0x3] }
 0x95e   :  { %v1200_v51 = vpop.permute.xlu2 %1199 }
 0x95f   :  { %v1202_v37 = vmul.f32 %v1200_v51, %v1183_v29 }
 0x961   :  { %v1203_v22 = vadd.f32 %v1202_v37, %v1137_v45  ;;  %1207 = vrot.lane.b32.xlu0 %v1202_v37, %s2324_s2 }
 0x9d3   :  { %v1208_v52 = vpop.permute.xlu0 %1207 }
 0x9d4   :  { %2098 = vmatmul.msk.f32.vlgmr.msra.gmra.mxu3 %vm943_vm13, %v1208_v52 }
 0x9d5   :  { %1754 = vmatpush.msra.mxu3 %v2608_v55 }
 0xa57   :  { %v1228_v60 = vpop.f32.mrf.mxu3 }
 0xa58   :  { %v1231_v38 = vadd.f32 %v1228_v60, %v1205_v62 }
 0xa5a   :  { %2190 = vtanh.f32 %v1231_v38  ;;  %v2099_v63 = vmul.f32 -1.442695, %v1231_v38 }
 0xa5c   :  { %2192 = vpow2.f32 %v2099_v63  ;;  %v3016_v63 = vld [vmem:[%s3285_s11] ss:$0 sm:$0xff] }
 0xa60   :  { %v2191_v31 = vpop.eup %2190 }
 0xa61   :  { %1254 = vrot.lane.b32.xlu2 %v2191_v31, %s2319_s4 }
 0xa62   :  { %v2193_v8 = vpop.eup %2192 }
 0xa63   :  { %v1235_v25 = vadd.f32 1.0, %v2193_v8 }
 0xa65   :  { %2194 = vrcp.f32 %v1235_v25  ;;  %v1247_v41 = vand.u32 2147483648, %v1235_v25  ;;  %vm1241_vm4 = vweird.f32 %v1235_v25  ;;  %v1245_v55 = vand.u32 2147483647, %v1235_v25 }
 0xa67   :  { %v1248_v24 = vor.u32 1.1754944e-38, %v1247_v41  ;;  %vm1246_vm1 = vcmp.eq.f32.partialorder %v1245_v55, 8.507059e+37  ;;  %v673_v41 = vld [vmem:[%s3282_s8 + $0x78] sm:$0xff]  ;;  %v672_v55 = vld [vmem:[%s3282_s8 + $0x70] sm:$0xff] }
 0xa68   :  { %690 = vmatpush.msra.mxu2 %v673_v41 }
 0xa6a   :  { %691 = vmatpush.msra.mxu2 %v672_v55 }
 0xa6b   :  { %v2195_v21 = vpop.eup %2194 }
 0xa6c   :  { %v1237_v14 = vmul.f32 %v2195_v21, %v1235_v25  ;;  %vm1242_vm3 = vweird.f32 %v2195_v21  ;;  %v3023_v25 = vld [vmem:[%s3287_s13] ss:$0 sm:$0xff] }
 0xa6d   :  { %vm1243_vm5 = vmor %vm1241_vm4, %vm1242_vm3 }
 0xa6e   :  { %v1238_v42 = vsub.f32 1.0, %v1237_v14 }
 0xa70   :  { %v1239_v15 = vmul.f32 %v2195_v21, %v1238_v42 }
 0xa72   :  { %v1240_v30 = vadd.f32 %v2195_v21, %v1239_v15 }
 0xa74   :  { %v1244_v0 = vsel %vm1243_vm5, %v2195_v21, %v1240_v30 }
 0xa75   :  { %v1249_v35 = vsel %vm1246_vm1, %v1248_v24, %v1244_v0  ;;  %v671_v0 = vld [vmem:[%s3282_s8 + $0x68] sm:$0xff]  ;;  %v670_v24 = vld [vmem:[%s3282_s8 + $0x60] sm:$0xff] }
 0xa76   :  { %v1252_v36 = vmul.f32 %v1249_v35, %v1196_v1  ;;  %692 = vmatpush.msra.mxu2 %v671_v0 }
 0xa78   :  { %693 = vmatpush.msra.mxu2 %v670_v24 }
 0xabb   :  { %v1255_v16 = vpop.permute.xlu2 %1254 }
 0xabc   :  { %v1257_v45 = vmul.f32 %v1255_v16, %v1249_v35 }
 0xabe   :  { %1259 = vrot.lane.b32.xlu0 %v1257_v45, %s2320_s26  ;;  %v669_v45 = vld [vmem:[%s3282_s8 + $0x58] sm:$0xff] }
 0xabf   :  { %694 = vmatpush.msra.mxu2 %v669_v45 }
 0xac6   :  { %832 = vperm.xlu0 %2133, %v793_v9  }
 0xb30   :  { %v1260_v48 = vpop.permute.xlu0 %1259 }
 0xb31   :  { %v1262_v4 = vadd.f32 %v1260_v48, %v1252_v36  ;;  %v668_v36 = vld [vmem:[%s3282_s8 + $0x50] sm:$0xff]  ;;  %v667_v48 = vld [vmem:[%s3282_s8 + $0x48] sm:$0xff] }
 0xb32   :  { %695 = vmatpush.msra.mxu2 %v668_v36 }
 0xb33   :  { %2196 = vtanh.f32 %v1262_v4 }
 0xb34   :  { %696 = vmatpush.msra.mxu2 %v667_v48 }
 0xb38   :  { %v833_v20 = vpop.permute.xlu0 %832 }
 0xb39   :  { %v2197_v26 = vpop.eup %2196  ;;  %v893_v2 = vmul.f32 %v2635_v12, %v833_v20  ;;  %v665_v20 = vld [vmem:[%s3282_s8 + $0x38] sm:$0xff] }
 0xb3a   :  { %1265 = vrot.lane.b32.xlu1 %v2197_v26, %s2320_s26 }
 0xb3b   :  { %v913_v43 = vadd.f32 %v2646_v6, %v893_v2  ;;  %v664_v2 = vld [vmem:[%s3282_s8 + $0x30] sm:$0xff] }
 0xb3d   :  { %930 = vst.msk [vmem:[#allocation2 + $0xa] sm:$0x3] %vm924_vm7, %v913_v43  ;;  %v663_v43 = vld [vmem:[%s3282_s8 + $0x28] sm:$0xff] }
 0xb44   :  { %v1271_v12 = vld [vmem:[#allocation2 + $0xa] sm:$0x3] }
 0xbac   :  { %v1266_v28 = vpop.permute.xlu1 %1265 }
 0xbad   :  { %v1268_v56 = vmul.f32 %v1266_v28, %v1249_v35  ;;  %v622_v28 = vrot.slane %v2906_v49, 1 }
 0xbaf   :  { %v1269_v44 = vadd.f32 %v1268_v56, %v1203_v22  ;;  %1273 = vrot.lane.b32.xlu2 %v1268_v56, %s2324_s2  ;;  %v794_v22 = vld [vmem:[%s3297_s24 + $0xc] sm:$0x3]  ;;  %v624_v56 = vsel %vm122_vm0, %v622_v28, %v623_v57  ;;  %v661_v57 = vld [vmem:[%s3282_s8 + $0x18] sm:$0xff] }
 0xc09   :  { %v1274_v53 = vpop.permute.xlu2 %1273 }
 0xc0a   :  { %2100 = vmatmul.msk.f32.vlgmr.msrb.gmra.mxu0 %vm943_vm13, %v1274_v53  ;;  %v630_v53 = vrot.slane %v2938_v23, 1  ;;  %v660_v23 = vld [vmem:[%s3282_s8 + $0x10] sm:$0xff] }
 0xc0b   :  { %1820 = vmatpush.msrb.mxu0 %v3002_v40 }
 0xc87   :  { %v1294_v58 = vpop.f32.mrf.mxu0 }
 0xc88   :  { %v1297_v6 = vadd.f32 %v1294_v58, %v1271_v12 }
 0xc8a   :  { %2198 = vtanh.f32 %v1297_v6  ;;  %v2101_v10 = vmul.f32 -1.442695, %v1297_v6 }
 0xc8c   :  { %2200 = vpow2.f32 %v2101_v10  ;;  %v662_v10 = vld [vmem:[%s3282_s8 + $0x20] sm:$0xff] }
 0xc90   :  { %v2199_v34 = vpop.eup %2198 }
 0xc91   :  { %1320 = vrot.lane.b32.xlu1 %v2199_v34, %s2319_s4 }
 0xc92   :  { %v2201_v7 = vpop.eup %2200 }
 0xc93   :  { %v1301_v3 = vadd.f32 1.0, %v2201_v7  ;;  %v659_v7 = vld [vmem:[%s3282_s8 + $0x8] sm:$0xff] }
 0xc95   :  { %2202 = vrcp.f32 %v1301_v3  ;;  %v1313_v1 = vand.u32 2147483648, %v1301_v3  ;;  %vm1307_vm9 = vweird.f32 %v1301_v3  ;;  %v1311_v61 = vand.u32 2147483647, %v1301_v3 }
 0xc97   :  { %v1314_v18 = vor.u32 1.1754944e-38, %v1313_v1  ;;  %vm1312_vm11 = vcmp.eq.f32.partialorder %v1311_v61, 8.507059e+37 }
 0xc9b   :  { %v2203_v29 = vpop.eup %2202 }
 0xc9c   :  { %v1303_v50 = vmul.f32 %v2203_v29, %v1301_v3  ;;  %vm1308_vm6 = vweird.f32 %v2203_v29  ;;  %v658_v3 = vld [vmem:[%s3282_s8] sm:$0xff] }
 0xc9d   :  { %vm1309_vm10 = vmor %vm1307_vm9, %vm1308_vm6 }
 0xc9e   :  { %v1304_v39 = vsub.f32 1.0, %v1303_v50 }
 0xca0   :  { %v1305_v46 = vmul.f32 %v2203_v29, %v1304_v39 }
 0xca2   :  { %v1306_v47 = vadd.f32 %v2203_v29, %v1305_v46 }
 0xca4   :  { %v1310_v13 = vsel %vm1309_vm10, %v2203_v29, %v1306_v47 }
 0xca5   :  { %v1315_v51 = vsel %vm1312_vm11, %v1314_v18, %v1310_v13 }
 0xca6   :  { %v1318_v52 = vmul.f32 %v1315_v51, %v1262_v4  ;;  %v666_v4 = vld [vmem:[%s3282_s8 + $0x40] sm:$0xff] }
 0xca7   :  { %697 = vmatpush.msra.mxu2 %v666_v4 }
 0xca9   :  { %698 = vmatpush.msra.mxu2 %v665_v20 }
 0xcab   :  { %699 = vmatpush.msra.mxu2 %v664_v2 }
 0xcad   :  { %700 = vmatpush.msra.mxu2 %v663_v43 }
 0xcaf   :  { %701 = vmatpush.msra.mxu2 %v662_v10 }
 0xcb1   :  { %702 = vmatpush.msra.mxu2 %v661_v57 }
 0xcb3   :  { %703 = vmatpush.msra.mxu2 %v660_v23 }
 0xcb5   :  { %704 = vmatpush.msra.mxu2 %v659_v7 }
 0xcb7   :  { %705 = vmatpush.msra.mxu2 %v658_v3  ;;  %v796_v3 = vld [vmem:[%s3297_s24 + $0x10] sm:$0x3] }
 0xcb9   :  { %1424 = vmatpush.msrb.mxu2 %v3002_v40 }
 0xd03   :  { %v1321_v5 = vpop.permute.xlu1 %1320 }
 0xd04   :  { %v1323_v37 = vmul.f32 %v1321_v5, %v1315_v51 }
 0xd06   :  { %1325 = vrot.lane.b32.xlu2 %v1323_v37, %s2320_s26 }
 0xd0e   :  { %837 = vperm.xlu2 %2135, %v794_v22  }
 0xd60   :  { %v1326_v62 = vpop.permute.xlu2 %1325 }
 0xd61   :  { %v3010_v60 = vadd.f32 %v1326_v62, %v1318_v52 }
 0xd63   :  { %2204 = vtanh.f32 %v3010_v60 }
 0xd68   :  { %v838_v38 = vpop.permute.xlu2 %837 }
 0xd69   :  { %v2205_v31 = vpop.eup %2204  ;;  %v894_v8 = vmul.f32 %v3016_v63, %v838_v38 }
 0xd6a   :  { %1331 = vrot.lane.b32.xlu0 %v2205_v31, %s2320_s26 }
 0xd6b   :  { %v914_v21 = vadd.f32 %v3023_v25, %v894_v8 }
 0xd6d   :  { %931 = vst.msk [vmem:[#allocation2 + $0xc] sm:$0x3] %vm924_vm7, %v914_v21 }
 0xd74   :  { %v1337_v16 = vld [vmem:[#allocation2 + $0xc] sm:$0x3] }
 0xddc   :  { %v1332_v14 = vpop.permute.xlu0 %1331 }
 0xddd   :  { %v1334_v42 = vmul.f32 %v1332_v14, %v1315_v51 }
 0xddf   :  { %v3027_v15 = vadd.f32 %v1334_v42, %v1269_v44  ;;  %1339 = vrot.lane.b32.xlu1 %v1334_v42, %s2324_s2  ;;  %v628_v44 = vrot.slane %v2931_v19, 1 }
 0xde1   :  { %v631_v12 = vsel %vm122_vm0, %v628_v44, %v630_v53 }
 0xe51   :  { %v1340_v30 = vpop.permute.xlu1 %1339 }
 0xe52   :  { %2102 = vmatmul.msk.f32.vlgmr.msra.gmra.mxu1 %vm943_vm13, %v1340_v30 }
 0xe53   :  { %1886 = vmatpush.msra.mxu1 %v3002_v40 }
 0xecf   :  { %v1360_v35 = vpop.f32.mrf.mxu1 }
 0xed0   :  { %v1363_v9 = vadd.f32 %v1360_v35, %v1337_v16 }
 0xed2   :  { %2206 = vtanh.f32 %v1363_v9  ;;  %v2103_v58 = vmul.f32 -1.442695, %v1363_v9 }
 0xed4   :  { %2208 = vpow2.f32 %v2103_v58 }
 0xed8   :  { %v2207_v26 = vpop.eup %2206 }
 0xed9   :  { %1386 = vrot.lane.b32.xlu0 %v2207_v26, %s2319_s4 }
 0xeda   :  { %v2209_v6 = vpop.eup %2208 }
 0xedb   :  { %v1367_v34 = vadd.f32 1.0, %v2209_v6 }
 0xedd   :  { %2210 = vrcp.f32 %v1367_v34  ;;  %v1379_v1 = vand.u32 2147483648, %v1367_v34  ;;  %vm1373_vm14 = vweird.f32 %v1367_v34  ;;  %v1377_v61 = vand.u32 2147483647, %v1367_v34 }
 0xedf   :  { %v1380_v18 = vor.u32 1.1754944e-38, %v1379_v1  ;;  %vm1378_vm3 = vcmp.eq.f32.partialorder %v1377_v61, 8.507059e+37 }
 0xee1   :  { %632 = vrot.lane.b32.xlu0 %v624_v56, %s2323_s1 }
 0xee3   :  { %v2211_v29 = vpop.eup %2210 }
 0xee4   :  { %v1369_v50 = vmul.f32 %v2211_v29, %v1367_v34  ;;  %vm1374_vm12 = vweird.f32 %v2211_v29 }
 0xee5   :  { %vm1375_vm2 = vmor %vm1373_vm14, %vm1374_vm12 }
 0xee6   :  { %v1370_v39 = vsub.f32 1.0, %v1369_v50 }
 0xee8   :  { %v1371_v46 = vmul.f32 %v2211_v29, %v1370_v39 }
 0xee9   :  { %638 = vrot.lane.b32.xlu0 %v631_v12, %s2323_s1 }
 0xeea   :  { %v1372_v47 = vadd.f32 %v2211_v29, %v1371_v46 }
 0xeec   :  { %v1376_v13 = vsel %vm1375_vm2, %v2211_v29, %v1372_v47 }
 0xeed   :  { %v1381_v51 = vsel %vm1378_vm3, %v1380_v18, %v1376_v13 }
 0xeee   :  { %v1384_v62 = vmul.f32 %v1381_v51, %v3010_v60  ;;  %v795_v60 = vld [vmem:[%s3297_s24 + $0xe] sm:$0x3] }
 0xf4b   :  { %v1387_v5 = vpop.permute.xlu0 %1386 }
 0xf4c   :  { %v1389_v37 = vmul.f32 %v1387_v5, %v1381_v51 }
 0xf4e   :  { %1391 = vrot.lane.b32.xlu1 %v1389_v37, %s2320_s26 }
 0xf53   :  { %v633_v22 = vpop.permute.xlu0 %632 }
 0xf54   :  { %v654_v52 = vsel %vm482_vm15, %v2906_v49, %v633_v22  ;;  %v627_v49 = vrot.slane %v2928_v17, 1 }
 0xf55   :  { %706 = vmatmul.f32.vlgmr.msra.gmra.mxu2 %v654_v52 }
 0xf56   :  { %634 = vrot.lane.b32.xlu1 %v2921_v32, %s2323_s1  ;;  %1688 = vmatpush.msra.mxu2 %v3002_v40  ;;  %v629_v32 = vsel %vm122_vm0, %v627_v49, %v628_v44 }
 0xf5b   :  { %v639_v0 = vpop.permute.xlu0 %638 }
 0xf5c   :  { %v657_v35 = vsel %vm482_vm15, %v2931_v19, %v639_v0 }
 0xfc0   :  { %v1392_v38 = vpop.permute.xlu1 %1391 }
 0xfc1   :  { %v3098_v31 = vadd.f32 %v1392_v38, %v1384_v62 }
 0xfc3   :  { %2212 = vtanh.f32 %v3098_v31 }
 0xfc8   :  { %v635_v8 = vpop.permute.xlu1 %634 }
 0xfc9   :  { %v2213_v21 = vpop.eup %2212  ;;  %v655_v14 = vsel %vm482_vm15, %v2910_v59, %v635_v8 }
 0xfca   :  { %709 = vmatmul.f32.gmra.mxu2 %v655_v14  ;;  %1397 = vrot.lane.b32.xlu2 %v2213_v21, %s2320_s26 }
 0xfd2   :  { %636 = vrot.lane.b32.xlu2 %v629_v32, %s2323_s1 }
 0xfd8   :  { %v3121_v9 = vpop.f32.mrf.mxu2 }
 0xfda   :  { %842 = vperm.xlu2 %2135, %v795_v60  }
0x1024   :  { %v1398_v42 = vpop.permute.xlu2 %1397 }
0x1025   :  { %v1400_v30 = vmul.f32 %v1398_v42, %v1381_v51 }
0x1027   :  { %v1401_v41 = vadd.f32 %v1400_v30, %v3027_v15  ;;  %1405 = vrot.lane.b32.xlu1 %v1400_v30, %s2324_s2 }
0x102c   :  { %v637_v59 = vpop.permute.xlu2 %636 }
0x102d   :  { %v656_v55 = vsel %vm482_vm15, %v2928_v17, %v637_v59 }
0x102e   :  { %712 = vmatmul.f32.gmra.mxu2 %v656_v55 }
0x1034   :  { %v843_v24 = vpop.permute.xlu2 %842 }
0x1035   :  { %v895_v16 = vmul.f32 %v3016_v63, %v843_v24 }
0x1036   :  { %715 = vmatmul.f32.gmra.mxu2 %v657_v35 }
0x1037   :  { %v915_v45 = vadd.f32 %v3023_v25, %v895_v16  ;;  %v797_v16 = vld [vmem:[%s3297_s24 + $0x12] sm:$0x3] }
0x1039   :  { %932 = vst.msk [vmem:[#allocation2 + $0xe] sm:$0x3] %vm924_vm7, %v915_v45 }
0x1040   :  { %v1403_v4 = vld [vmem:[#allocation2 + $0xe] sm:$0x3] }
0x104d   :  { %v3123_v17 = vpop.f32.mrf.mxu2 }
0x1099   :  { %v1406_v15 = vpop.permute.xlu1 %1405 }
0x109a   :  { %2104 = vmatmul.msk.f32.vlgmr.msrb.gmra.mxu2 %vm943_vm13, %v1406_v15 }
0x109b   :  { %1952 = vmatpush.msrb.mxu2 %v3002_v40 }
0x10b1   :  { %v3125_v36 = vpop.f32.mrf.mxu2 }
0x10b9   :  { %v3127_v48 = vpop.f32.mrf.mxu2 }
0x111d   :  { %v1426_v19 = vpop.f32.mrf.mxu2 }
0x111e   :  { %v1429_v20 = vadd.f32 %v1426_v19, %v1403_v4 }
0x1120   :  { %2214 = vtanh.f32 %v1429_v20  ;;  %v2105_v2 = vmul.f32 -1.442695, %v1429_v20 }
0x1122   :  { %2216 = vpow2.f32 %v2105_v2 }
0x1126   :  { %v2215_v26 = vpop.eup %2214 }
0x1127   :  { %1452 = vrot.lane.b32.xlu0 %v2215_v26, %s2319_s4 }
0x1128   :  { %v2217_v43 = vpop.eup %2216 }
0x1129   :  { %v1433_v28 = vadd.f32 1.0, %v2217_v43 }
0x112b   :  { %2218 = vrcp.f32 %v1433_v28  ;;  %v1445_v58 = vand.u32 2147483648, %v1433_v28  ;;  %vm1439_vm15 = vweird.f32 %v1433_v28  ;;  %v1443_v6 = vand.u32 2147483647, %v1433_v28 }
0x112d   :  { %v1446_v10 = vor.u32 1.1754944e-38, %v1445_v58  ;;  %vm1444_vm5 = vcmp.eq.f32.partialorder %v1443_v6, 8.507059e+37 }
0x1131   :  { %v2219_v40 = vpop.eup %2218 }
0x1132   :  { %v1435_v56 = vmul.f32 %v2219_v40, %v1433_v28  ;;  %vm1440_vm0 = vweird.f32 %v2219_v40 }
0x1133   :  { %vm1441_vm4 = vmor %vm1439_vm15, %vm1440_vm0 }
0x1134   :  { %v1436_v44 = vsub.f32 1.0, %v1435_v56 }
0x1136   :  { %v1437_v53 = vmul.f32 %v2219_v40, %v1436_v44 }
0x1138   :  { %v1438_v12 = vadd.f32 %v2219_v40, %v1437_v53 }
0x113a   :  { %v1442_v34 = vsel %vm1441_vm4, %v2219_v40, %v1438_v12 }
0x113b   :  { %v1447_v23 = vsel %vm1444_vm5, %v1446_v10, %v1442_v34 }
0x113c   :  { %v1450_v29 = vmul.f32 %v1447_v23, %v3098_v31 }
0x1199   :  { %v1453_v57 = vpop.permute.xlu0 %1452 }
0x119a   :  { %v1455_v7 = vmul.f32 %v1453_v57, %v1447_v23 }
0x119c   :  { %1457 = vrot.lane.b32.xlu1 %v1455_v7, %s2320_s26 }
0x11a4   :  { %847 = vperm.xlu1 %2134, %v796_v3  }
0x120e   :  { %v1458_v50 = vpop.permute.xlu1 %1457 }
0x120f   :  { %v1460_v39 = vadd.f32 %v1458_v50, %v1450_v29 }
0x1211   :  { %2220 = vtanh.f32 %v1460_v39 }
0x1216   :  { %v848_v46 = vpop.permute.xlu1 %847 }
0x1217   :  { %v2221_v47 = vpop.eup %2220  ;;  %v896_v1 = vmul.f32 %v3016_v63, %v848_v46 }
0x1218   :  { %1463 = vrot.lane.b32.xlu2 %v2221_v47, %s2320_s26 }
0x1219   :  { %v916_v61 = vadd.f32 %v3023_v25, %v896_v1 }
0x121b   :  { %933 = vst.msk [vmem:[#allocation2 + $0x10] sm:$0x3] %vm924_vm7, %v916_v61 }
0x1222   :  { %v1469_v37 = vld [vmem:[#allocation2 + $0x10] sm:$0x3] }
0x1272   :  { %v1464_v13 = vpop.permute.xlu2 %1463 }
0x1273   :  { %v1466_v18 = vmul.f32 %v1464_v13, %v1447_v23  ;;  %v798_v13 = vld [vmem:[%s3297_s24 + $0x14] sm:$0x3] }
0x1275   :  { %v1467_v5 = vadd.f32 %v1466_v18, %v1401_v41  ;;  %1471 = vrot.lane.b32.xlu0 %v1466_v18, %s2324_s2 }
0x12e7   :  { %v1472_v51 = vpop.permute.xlu0 %1471 }
0x12e8   :  { %2106 = vmatmul.msk.f32.vlgmr.msrb.gmra.mxu3 %vm943_vm13, %v1472_v51 }
0x136b   :  { %v1492_v22 = vpop.f32.mrf.mxu3 }
0x136c   :  { %v1495_v52 = vadd.f32 %v1492_v22, %v1469_v37 }
0x136e   :  { %2222 = vtanh.f32 %v1495_v52  ;;  %v2107_v38 = vmul.f32 -1.442695, %v1495_v52 }
0x1370   :  { %2224 = vpow2.f32 %v2107_v38 }
0x1374   :  { %v2223_v62 = vpop.eup %2222 }
0x1375   :  { %1518 = vrot.lane.b32.xlu2 %v2223_v62, %s2319_s4 }
0x1376   :  { %v2225_v31 = vpop.eup %2224 }
0x1377   :  { %v1499_v8 = vadd.f32 1.0, %v2225_v31 }
0x1379   :  { %2226 = vrcp.f32 %v1499_v8  ;;  %v1511_v42 = vand.u32 2147483648, %v1499_v8  ;;  %vm1505_vm6 = vweird.f32 %v1499_v8  ;;  %v1509_v30 = vand.u32 2147483647, %v1499_v8 }
0x137b   :  { %v1512_v59 = vor.u32 1.1754944e-38, %v1511_v42  ;;  %vm1510_vm10 = vcmp.eq.f32.partialorder %v1509_v30, 8.507059e+37 }
0x137f   :  { %v2227_v21 = vpop.eup %2226 }
0x1380   :  { %v1501_v14 = vmul.f32 %v2227_v21, %v1499_v8  ;;  %vm1506_vm1 = vweird.f32 %v2227_v21 }
0x1381   :  { %vm1507_vm9 = vmor %vm1505_vm6, %vm1506_vm1 }
0x1382   :  { %v1502_v49 = vsub.f32 1.0, %v1501_v14 }
0x1384   :  { %v1503_v32 = vmul.f32 %v2227_v21, %v1502_v49 }
0x1386   :  { %v1504_v60 = vadd.f32 %v2227_v21, %v1503_v32 }
0x1388   :  { %v1508_v41 = vsel %vm1507_vm9, %v2227_v21, %v1504_v60 }
0x1389   :  { %v1513_v0 = vsel %vm1510_vm10, %v1512_v59, %v1508_v41 }
0x138a   :  { %v1516_v35 = vmul.f32 %v1513_v0, %v1460_v39 }
0x13cf   :  { %v1519_v55 = vpop.permute.xlu2 %1518 }
0x13d0   :  { %v1521_v24 = vmul.f32 %v1519_v55, %v1513_v0 }
0x13d2   :  { %1523 = vrot.lane.b32.xlu0 %v1521_v24, %s2320_s26 }
0x13da   :  { %852 = vperm.xlu0 %2133, %v797_v16  }
0x1444   :  { %v1524_v45 = vpop.permute.xlu0 %1523 }
0x1445   :  { %v1526_v15 = vadd.f32 %v1524_v45, %v1516_v35 }
0x1447   :  { %2228 = vtanh.f32 %v1526_v15 }
0x144c   :  { %v853_v4 = vpop.permute.xlu0 %852 }
0x144d   :  { %v2229_v19 = vpop.eup %2228  ;;  %v897_v20 = vmul.f32 %v3016_v63, %v853_v4 }
0x144e   :  { %1529 = vrot.lane.b32.xlu1 %v2229_v19, %s2320_s26 }
0x144f   :  { %v917_v26 = vadd.f32 %v3023_v25, %v897_v20 }
0x1451   :  { %934 = vst.msk [vmem:[#allocation2 + $0x12] sm:$0x3] %vm924_vm7, %v917_v26 }
0x1458   :  { %v1535_v56 = vld [vmem:[#allocation2 + $0x12] sm:$0x3] }
0x14c0   :  { %v1530_v2 = vpop.permute.xlu1 %1529 }
0x14c1   :  { %v1532_v43 = vmul.f32 %v1530_v2, %v1513_v0  ;;  %v799_v2 = vld [vmem:[%s3297_s24 + $0x16] sm:$0x3] }
0x14c3   :  { %v1533_v28 = vadd.f32 %v1532_v43, %v1467_v5  ;;  %1537 = vrot.lane.b32.xlu2 %v1532_v43, %s2324_s2 }
0x151d   :  { %v1538_v40 = vpop.permute.xlu2 %1537 }
0x151e   :  { %2108 = vmatmul.msk.f32.vlgmr.msra.gmra.mxu0 %vm943_vm13, %v1538_v40 }
0x159b   :  { %v1558_v44 = vpop.f32.mrf.mxu0 }
0x159c   :  { %v1561_v53 = vadd.f32 %v1558_v44, %v1535_v56 }
0x159e   :  { %2230 = vtanh.f32 %v1561_v53  ;;  %v2109_v58 = vmul.f32 -1.442695, %v1561_v53 }
0x15a0   :  { %2232 = vpow2.f32 %v2109_v58 }
0x15a4   :  { %v2231_v12 = vpop.eup %2230 }
0x15a5   :  { %1584 = vrot.lane.b32.xlu1 %v2231_v12, %s2319_s4 }
0x15a6   :  { %v2233_v6 = vpop.eup %2232 }
0x15a7   :  { %v1565_v34 = vadd.f32 1.0, %v2233_v6 }
0x15a9   :  { %2234 = vrcp.f32 %v1565_v34  ;;  %v1577_v29 = vand.u32 2147483648, %v1565_v34  ;;  %vm1571_vm12 = vweird.f32 %v1565_v34  ;;  %v1575_v50 = vand.u32 2147483647, %v1565_v34 }
0x15ab   :  { %v1578_v46 = vor.u32 1.1754944e-38, %v1577_v29  ;;  %vm1576_vm2 = vcmp.eq.f32.partialorder %v1575_v50, 8.507059e+37 }
0x15af   :  { %v2235_v10 = vpop.eup %2234 }
0x15b0   :  { %v1567_v57 = vmul.f32 %v2235_v10, %v1565_v34  ;;  %vm1572_vm11 = vweird.f32 %v2235_v10 }
0x15b1   :  { %vm1573_vm14 = vmor %vm1571_vm12, %vm1572_vm11 }
0x15b2   :  { %v1568_v23 = vsub.f32 1.0, %v1567_v57 }
0x15b4   :  { %v1569_v7 = vmul.f32 %v2235_v10, %v1568_v23 }
0x15b6   :  { %v1570_v3 = vadd.f32 %v2235_v10, %v1569_v7 }
0x15b8   :  { %v1574_v39 = vsel %vm1573_vm14, %v2235_v10, %v1570_v3 }
0x15b9   :  { %v1579_v1 = vsel %vm1576_vm2, %v1578_v46, %v1574_v39  ;;  %vm2029_vm2 = vcmask 1041409  }
0x15ba   :  { %v1582_v18 = vmul.f32 %v1579_v1, %v1526_v15 }
0x1617   :  { %v1585_v47 = vpop.permute.xlu1 %1584 }
0x1618   :  { %v1587_v61 = vmul.f32 %v1585_v47, %v1579_v1 }
0x161a   :  { %1589 = vrot.lane.b32.xlu2 %v1587_v61, %s2320_s26 }
0x1622   :  { %857 = vperm.xlu2 %2135, %v798_v13  }
0x1674   :  { %v1590_v5 = vpop.permute.xlu2 %1589 }
0x1675   :  { %v1592_v51 = vadd.f32 %v1590_v5, %v1582_v18 }
0x1677   :  { %2236 = vtanh.f32 %v1592_v51 }
0x167c   :  { %v858_v37 = vpop.permute.xlu2 %857 }
0x167d   :  { %v2237_v22 = vpop.eup %2236  ;;  %v898_v52 = vmul.f32 %v3016_v63, %v858_v37 }
0x167e   :  { %1595 = vrot.lane.b32.xlu0 %v2237_v22, %s2320_s26 }
0x167f   :  { %v918_v62 = vadd.f32 %v3023_v25, %v898_v52 }
0x1681   :  { %935 = vst.msk [vmem:[#allocation2 + $0x14] sm:$0x3] %vm924_vm7, %v918_v62 }
0x1688   :  { %v1601_v14 = vld [vmem:[#allocation2 + $0x14] sm:$0x3] }
0x16f0   :  { %v1596_v38 = vpop.permute.xlu0 %1595 }
0x16f1   :  { %v1598_v31 = vmul.f32 %v1596_v38, %v1579_v1  ;;  %v800_v38 = vld [vmem:[%s3297_s24 + $0x18] sm:$0x3] }
0x16f3   :  { %v1599_v8 = vadd.f32 %v1598_v31, %v1533_v28  ;;  %1603 = vrot.lane.b32.xlu1 %v1598_v31, %s2324_s2 }
0x1765   :  { %v1604_v21 = vpop.permute.xlu1 %1603 }
0x1766   :  { %2110 = vmatmul.msk.f32.vlgmr.msrb.gmra.mxu1 %vm943_vm13, %v1604_v21 }
0x17e3   :  { %v1624_v49 = vpop.f32.mrf.mxu1 }
0x17e4   :  { %v1627_v32 = vadd.f32 %v1624_v49, %v1601_v14 }
0x17e6   :  { %2238 = vtanh.f32 %v1627_v32  ;;  %v2111_v42 = vmul.f32 -1.442695, %v1627_v32 }
0x17e8   :  { %2240 = vpow2.f32 %v2111_v42 }
0x17ec   :  { %v2239_v60 = vpop.eup %2238 }
0x17ed   :  { %1650 = vrot.lane.b32.xlu0 %v2239_v60, %s2319_s4 }
0x17ee   :  { %v2241_v30 = vpop.eup %2240 }
0x17ef   :  { %v1631_v41 = vadd.f32 1.0, %v2241_v30 }
0x17f1   :  { %2242 = vrcp.f32 %v1631_v41  ;;  %v1643_v35 = vand.u32 2147483648, %v1631_v41  ;;  %vm1637_vm0 = vweird.f32 %v1631_v41  ;;  %v1641_v45 = vand.u32 2147483647, %v1631_v41 }
0x17f3   :  { %v1644_v4 = vor.u32 1.1754944e-38, %v1643_v35  ;;  %vm1642_vm4 = vcmp.eq.f32.partialorder %v1641_v45, 8.507059e+37 }
0x17f7   :  { %v2243_v59 = vpop.eup %2242 }
0x17f8   :  { %v1633_v55 = vmul.f32 %v2243_v59, %v1631_v41  ;;  %vm1638_vm3 = vweird.f32 %v2243_v59 }
0x17f9   :  { %vm1639_vm15 = vmor %vm1637_vm0, %vm1638_vm3 }
0x17fa   :  { %v1634_v0 = vsub.f32 1.0, %v1633_v55 }
0x17fc   :  { %v1635_v24 = vmul.f32 %v2243_v59, %v1634_v0 }
0x17fe   :  { %v1636_v16 = vadd.f32 %v2243_v59, %v1635_v24 }
0x1800   :  { %v1640_v15 = vsel %vm1639_vm15, %v2243_v59, %v1636_v16 }
0x1801   :  { %v1645_v20 = vsel %vm1642_vm4, %v1644_v4, %v1640_v15 }
0x1802   :  { %v1648_v43 = vmul.f32 %v1645_v20, %v1592_v51 }
0x185f   :  { %v1651_v19 = vpop.permute.xlu0 %1650 }
0x1860   :  { %v1653_v26 = vmul.f32 %v1651_v19, %v1645_v20 }
0x1862   :  { %1655 = vrot.lane.b32.xlu1 %v1653_v26, %s2320_s26 }
0x186a   :  { %862 = vperm.xlu1 %2134, %v799_v2  }
0x18d4   :  { %v1656_v28 = vpop.permute.xlu1 %1655 }
0x18d5   :  { %v1658_v40 = vadd.f32 %v1656_v28, %v1648_v43 }
0x18d7   :  { %2244 = vtanh.f32 %v1658_v40 }
0x18dc   :  { %v863_v56 = vpop.permute.xlu1 %862 }
0x18dd   :  { %v2245_v44 = vpop.eup %2244  ;;  %v899_v53 = vmul.f32 %v3016_v63, %v863_v56 }
0x18de   :  { %1661 = vrot.lane.b32.xlu2 %v2245_v44, %s2320_s26 }
0x18df   :  { %v919_v12 = vadd.f32 %v3023_v25, %v899_v53 }
0x18e1   :  { %936 = vst.msk [vmem:[#allocation2 + $0x16] sm:$0x3] %vm924_vm7, %v919_v12 }
0x18e8   :  { %v1667_v57 = vld [vmem:[#allocation2 + $0x16] sm:$0x3] }
0x1938   :  { %v1662_v58 = vpop.permute.xlu2 %1661 }
0x1939   :  { %v1664_v6 = vmul.f32 %v1662_v58, %v1645_v20  ;;  %v801_v58 = vld [vmem:[%s3297_s24 + $0x1a] sm:$0x3] }
0x193b   :  { %v1665_v34 = vadd.f32 %v1664_v6, %v1599_v8  ;;  %1669 = vrot.lane.b32.xlu0 %v1664_v6, %s2324_s2 }
0x19ad   :  { %v1670_v10 = vpop.permute.xlu0 %1669 }
0x19ae   :  { %2112 = vmatmul.msk.f32.vlgmr.msra.gmra.mxu2 %vm943_vm13, %v1670_v10 }
0x1a31   :  { %v1690_v23 = vpop.f32.mrf.mxu2 }
0x1a32   :  { %v1693_v7 = vadd.f32 %v1690_v23, %v1667_v57 }
0x1a34   :  { %2246 = vtanh.f32 %v1693_v7  ;;  %v2113_v29 = vmul.f32 -1.442695, %v1693_v7 }
0x1a36   :  { %2248 = vpow2.f32 %v2113_v29 }
0x1a3a   :  { %v2247_v3 = vpop.eup %2246 }
0x1a3b   :  { %1716 = vrot.lane.b32.xlu2 %v2247_v3, %s2319_s4 }
0x1a3c   :  { %v2249_v50 = vpop.eup %2248 }
0x1a3d   :  { %v1697_v39 = vadd.f32 1.0, %v2249_v50 }
0x1a3f   :  { %2250 = vrcp.f32 %v1697_v39  ;;  %v1709_v18 = vand.u32 2147483648, %v1697_v39  ;;  %vm1703_vm1 = vweird.f32 %v1697_v39  ;;  %v1707_v5 = vand.u32 2147483647, %v1697_v39 }
0x1a41   :  { %v1710_v37 = vor.u32 1.1754944e-38, %v1709_v18  ;;  %vm1708_vm9 = vcmp.eq.f32.partialorder %v1707_v5, 8.507059e+37  ;;  %v2156_v5 = vld [vmem:[%s3284_s10] ss:$0 sm:$0xff] }
0x1a45   :  { %v2251_v46 = vpop.eup %2250 }
0x1a46   :  { %v1699_v47 = vmul.f32 %v2251_v46, %v1697_v39  ;;  %vm1704_vm5 = vweird.f32 %v2251_v46 }
0x1a47   :  { %vm1705_vm6 = vmor %vm1703_vm1, %vm1704_vm5 }
0x1a48   :  { %v1700_v1 = vsub.f32 1.0, %v1699_v47  ;;  %v2155_v47 = vld [vmem:[%s3283_s9] ss:$0 sm:$0xff] }
0x1a4a   :  { %v1701_v61 = vmul.f32 %v2251_v46, %v1700_v1  ;;  %v740_v1 = vadd.f32 %v2957_v27, %v3123_v17  ;;  %v2000_v27 = vld [vmem:[%s3288_s14 + $0x18] sm:$0xff]  ;;  %v1998_v17 = vld [vmem:[%s3288_s14 + $0x8] sm:$0xff] }
0x1a4b   :  { %2045 = vmatpush.msra.mxu0 %v2000_v27 }
0x1a4c   :  { %v1702_v13 = vadd.f32 %v2251_v46, %v1701_v61  ;;  %v743_v61 = vadd.f32 %v2959_v33, %v3125_v36 }
0x1a4e   :  { %v1706_v51 = vsel %vm1705_vm6, %v2251_v46, %v1702_v13  ;;  %v746_v46 = vadd.f32 %v2961_v11, %v3127_v48  ;;  %v737_v13 = vadd.f32 %v2955_v54, %v3121_v9  ;;  %v754_v11 = vmul.f32 %v2155_v47, %v743_v61  ;;  %v1999_v54 = vld [vmem:[%s3288_s14 + $0x10] sm:$0xff]  ;;  %v802_v61 = vld [vmem:[%s3297_s24 + $0x1c] sm:$0x3] }
0x1a4f   :  { %v1711_v52 = vsel %vm1708_vm9, %v1710_v37, %v1706_v51  ;;  %v753_v51 = vmul.f32 %v2155_v47, %v740_v1  ;;  %2046 = vmatpush.msra.mxu0 %v1999_v54 }
0x1a50   :  { %v1714_v31 = vmul.f32 %v1711_v52, %v1658_v40  ;;  %v755_v18 = vmul.f32 %v2155_v47, %v746_v46  ;;  %v752_v48 = vmul.f32 %v2155_v47, %v737_v13 }
0x1a51   :  { %2047 = vmatpush.msra.mxu0 %v1998_v17 }
0x1a52   :  { %v763_v37 = vadd.f32 %v2156_v5, %v755_v18 }
0x1a95   :  { %v1717_v22 = vpop.permute.xlu2 %1716 }
0x1a96   :  { %v1719_v62 = vmul.f32 %v1717_v22, %v1711_v52  ;;  %v761_v22 = vadd.f32 %v2156_v5, %v753_v51 }
0x1a98   :  { %1721 = vrot.lane.b32.xlu0 %v1719_v62, %s2320_s26  ;;  %v760_v62 = vadd.f32 %v2156_v5, %v752_v48  ;;  %v765_v33 = vmax.f32 %v761_v22, 0.0 }
0x1a9a   :  { %v764_v36 = vmax.f32 %v760_v62, 0.0 }
0x1aa0   :  { %867 = vperm.xlu0 %2133, %v800_v38   ;;  %v767_v38 = vmax.f32 %v763_v37, 0.0 }
0x1b0a   :  { %v1722_v8 = vpop.permute.xlu0 %1721 }
0x1b0b   :  { %v1724_v21 = vadd.f32 %v1722_v8, %v1714_v31  ;;  %v778_v31 = vsel %vm477_vm8, %v767_v38, 0.0  ;;  %v1997_v8 = vld [vmem:[%s3288_s14] sm:$0xff] }
0x1b0c   :  { %2048 = vmatpush.msra.mxu0 %v1997_v8 }
0x1b0d   :  { %2252 = vtanh.f32 %v1724_v21 }
0x1b12   :  { %v868_v14 = vpop.permute.xlu0 %867 }
0x1b13   :  { %v2253_v49 = vpop.eup %2252  ;;  %v900_v32 = vmul.f32 %v3016_v63, %v868_v14 }
0x1b14   :  { %1727 = vrot.lane.b32.xlu1 %v2253_v49, %s2320_s26 }
0x1b15   :  { %v920_v60 = vadd.f32 %v3023_v25, %v900_v32  ;;  %v768_v32 = vsel %vm477_vm8, %v764_v36, 0.0 }
0x1b17   :  { %937 = vst.msk [vmem:[#allocation2 + $0x18] sm:$0x3] %vm924_vm7, %v920_v60 }
0x1b1e   :  { %v1733_v55 = vld [vmem:[#allocation2 + $0x18] sm:$0x3] }
0x1b86   :  { %v1728_v42 = vpop.permute.xlu1 %1727 }
0x1b87   :  { %v1730_v30 = vmul.f32 %v1728_v42, %v1711_v52  ;;  %v762_v52 = vadd.f32 %v2156_v5, %v754_v11 }
0x1b89   :  { %v1731_v41 = vadd.f32 %v1730_v30, %v1665_v34  ;;  %1735 = vrot.lane.b32.xlu2 %v1730_v30, %s2324_s2  ;;  %v766_v9 = vmax.f32 %v762_v52, 0.0 }
0x1b8b   :  { %v777_v14 = vsel %vm477_vm8, %v766_v9, 0.0 }
0x1b8c   :  { %v779_v49 = vadd.f32 %v778_v31, %v777_v14 }
0x1b8e   :  { %v780_v42 = vrot.slane %v779_v49, 4 }
0x1be3   :  { %v1736_v59 = vpop.permute.xlu2 %1735 }
0x1be4   :  { %2114 = vmatmul.msk.f32.vlgmr.msra.gmra.mxu3 %vm943_vm13, %v1736_v59 }
0x1c67   :  { %v1756_v0 = vpop.f32.mrf.mxu3 }
0x1c68   :  { %v1759_v24 = vadd.f32 %v1756_v0, %v1733_v55 }
0x1c6a   :  { %2254 = vtanh.f32 %v1759_v24  ;;  %v2115_v35 = vmul.f32 -1.442695, %v1759_v24 }
0x1c6c   :  { %2256 = vpow2.f32 %v2115_v35 }
0x1c70   :  { %v2255_v16 = vpop.eup %2254 }
0x1c71   :  { %1782 = vrot.lane.b32.xlu1 %v2255_v16, %s2319_s4 }
0x1c72   :  { %v2257_v45 = vpop.eup %2256 }
0x1c73   :  { %v1763_v15 = vadd.f32 1.0, %v2257_v45 }
0x1c75   :  { %2258 = vrcp.f32 %v1763_v15  ;;  %v1775_v43 = vand.u32 2147483648, %v1763_v15  ;;  %vm1769_vm11 = vweird.f32 %v1763_v15  ;;  %v1773_v28 = vand.u32 2147483647, %v1763_v15 }
0x1c77   :  { %v1776_v56 = vor.u32 1.1754944e-38, %v1775_v43  ;;  %vm1774_vm14 = vcmp.eq.f32.partialorder %v1773_v28, 8.507059e+37 }
0x1c7b   :  { %v2259_v4 = vpop.eup %2258 }
0x1c7c   :  { %v1765_v19 = vmul.f32 %v2259_v4, %v1763_v15  ;;  %vm1770_vm10 = vweird.f32 %v2259_v4 }
0x1c7d   :  { %vm1771_vm12 = vmor %vm1769_vm11, %vm1770_vm10 }
0x1c7e   :  { %v1766_v20 = vsub.f32 1.0, %v1765_v19 }
0x1c80   :  { %v1767_v26 = vmul.f32 %v2259_v4, %v1766_v20 }
0x1c82   :  { %v1768_v2 = vadd.f32 %v2259_v4, %v1767_v26 }
0x1c84   :  { %v1772_v40 = vsel %vm1771_vm12, %v2259_v4, %v1768_v2  ;;  %vm2058_vm12 = vcmask 9216  }
0x1c85   :  { %v1777_v53 = vsel %vm1774_vm14, %v1776_v56, %v1772_v40 }
0x1c86   :  { %v1780_v6 = vmul.f32 %v1777_v53, %v1724_v21  ;;  %v769_v21 = vsel %vm477_vm8, %v765_v33, 0.0 }
0x1c87   :  { %v770_v60 = vadd.f32 %v769_v21, %v768_v32 }
0x1c89   :  { %v771_v30 = vrot.slane %v770_v60, 4 }
0x1c8b   :  { %v772_v59 = vadd.f32 %v771_v30, %v770_v60 }
0x1c8d   :  { %v773_v0 = vrot.slane %v772_v59, 2 }
0x1c8f   :  { %v774_v16 = vadd.f32 %v773_v0, %v772_v59 }
0x1c91   :  { %v775_v45 = vrot.slane %v774_v16, 1 }
0x1c93   :  { %v776_v19 = vadd.f32 %v775_v45, %v774_v16 }
0x1c95   :  { %v786_v26 = vmul.f32 0.0625, %v776_v19 }
0x1ce3   :  { %v1783_v44 = vpop.permute.xlu1 %1782 }
0x1ce4   :  { %v1785_v12 = vmul.f32 %v1783_v44, %v1777_v53 }
0x1ce6   :  { %1787 = vrot.lane.b32.xlu2 %v1785_v12, %s2320_s26 }
0x1cee   :  { %872 = vperm.xlu2 %2135, %v801_v58  }
0x1d40   :  { %v1788_v34 = vpop.permute.xlu2 %1787 }
0x1d41   :  { %v3190_v10 = vadd.f32 %v1788_v34, %v1780_v6 }
0x1d43   :  { %2260 = vtanh.f32 %v3190_v10 }
0x1d48   :  { %v873_v57 = vpop.permute.xlu2 %872 }
0x1d49   :  { %v2261_v23 = vpop.eup %2260  ;;  %v901_v7 = vmul.f32 %v3016_v63, %v873_v57 }
0x1d4a   :  { %1793 = vrot.lane.b32.xlu0 %v2261_v23, %s2320_s26 }
0x1d4b   :  { %v921_v3 = vadd.f32 %v3023_v25, %v901_v7 }
0x1d4d   :  { %938 = vst.msk [vmem:[#allocation2 + $0x1a] sm:$0x3] %vm924_vm7, %v921_v3 }
0x1d54   :  { %v1799_v43 = vld [vmem:[#allocation2 + $0x1a] sm:$0x3] }
0x1dbc   :  { %v1794_v29 = vpop.permute.xlu0 %1793 }
0x1dbd   :  { %v1796_v50 = vmul.f32 %v1794_v29, %v1777_v53 }
0x1dbf   :  { %v3197_v39 = vadd.f32 %v1796_v50, %v1731_v41  ;;  %1801 = vrot.lane.b32.xlu1 %v1796_v50, %s2324_s2  ;;  %v781_v41 = vadd.f32 %v780_v42, %v779_v49 }
0x1dc1   :  { %v782_v55 = vrot.slane %v781_v41, 2 }
0x1dc3   :  { %v783_v24 = vadd.f32 %v782_v55, %v781_v41  ;;  %v803_v41 = vld [vmem:[%s3297_s24 + $0x1e] sm:$0x3] }
0x1dc5   :  { %v784_v35 = vrot.slane %v783_v24, 1 }
0x1dc7   :  { %v785_v4 = vadd.f32 %v784_v35, %v783_v24  ;;  %v2289_v35 = vld [vmem:[%s3285_s11] ss:$0 sm:$0xff] }
0x1dc9   :  { %v787_v20 = vmul.f32 0.0625, %v785_v4 }
0x1dcb   :  { %v2030_v2 = vsel %vm2029_vm2, %v787_v20, %v786_v26 }
0x1e31   :  { %v1802_v15 = vpop.permute.xlu1 %1801 }
0x1e32   :  { %2116 = vmatmul.msk.f32.vlgmr.msrb.gmra.mxu0 %vm943_vm13, %v1802_v15  ;;  %v2290_v15 = vld [vmem:[%s3287_s13] ss:$0 sm:$0xff] }
0x1e3a   :  { %2123 = vmatmul.msk.f32.vlgmr.msra.gmra.mxu0 %vm477_vm8, %v2030_v2 }
0x1eaf   :  { %v1822_v28 = vpop.f32.mrf.mxu0 }
0x1eb0   :  { %v1825_v40 = vadd.f32 %v1822_v28, %v1799_v43 }
0x1eb2   :  { %2262 = vtanh.f32 %v1825_v40  ;;  %v2117_v44 = vmul.f32 -1.442695, %v1825_v40 }
0x1eb4   :  { %2264 = vpow2.f32 %v2117_v44 }
0x1eb8   :  { %v2263_v56 = vpop.eup %2262 }
0x1eb9   :  { %1848 = vrot.lane.b32.xlu0 %v2263_v56, %s2319_s4 }
0x1eba   :  { %v2265_v53 = vpop.eup %2264 }
0x1ebb   :  { %v1829_v12 = vadd.f32 1.0, %v2265_v53 }
0x1ebd   :  { %2266 = vrcp.f32 %v1829_v12  ;;  %v1841_v7 = vand.u32 2147483648, %v1829_v12  ;;  %vm1835_vm8 = vweird.f32 %v1829_v12  ;;  %v1839_v3 = vand.u32 2147483647, %v1829_v12 }
0x1ebf   :  { %v1842_v50 = vor.u32 1.1754944e-38, %v1841_v7  ;;  %vm1840_vm15 = vcmp.eq.f32.partialorder %v1839_v3, 8.507059e+37 }
0x1ec3   :  { %v2267_v58 = vpop.eup %2266 }
0x1ec4   :  { %v1831_v6 = vmul.f32 %v2267_v58, %v1829_v12  ;;  %vm1836_vm3 = vweird.f32 %v2267_v58 }
0x1ec5   :  { %vm1837_vm0 = vmor %vm1835_vm8, %vm1836_vm3 }
0x1ec6   :  { %v1832_v34 = vsub.f32 1.0, %v1831_v6 }
0x1ec8   :  { %v1833_v57 = vmul.f32 %v2267_v58, %v1832_v34 }
0x1eca   :  { %v1834_v23 = vadd.f32 %v2267_v58, %v1833_v57 }
0x1ecc   :  { %v1838_v29 = vsel %vm1837_vm0, %v2267_v58, %v1834_v23 }
0x1ecd   :  { %v1843_v47 = vsel %vm1840_vm15, %v1842_v50, %v1838_v29 }
0x1ece   :  { %v1846_v13 = vmul.f32 %v1843_v47, %v3190_v10 }
0x1f2b   :  { %v1849_v46 = vpop.permute.xlu0 %1848 }
0x1f2c   :  { %v1851_v1 = vmul.f32 %v1849_v46, %v1843_v47 }
0x1f2e   :  { %1853 = vrot.lane.b32.xlu1 %v1851_v1, %s2320_s26 }
0x1f36   :  { %877 = vperm.xlu1 %2134, %v802_v61  }
0x1fa0   :  { %v1854_v18 = vpop.permute.xlu1 %1853 }
0x1fa1   :  { %v1856_v5 = vadd.f32 %v1854_v18, %v1846_v13 }
0x1fa3   :  { %2268 = vtanh.f32 %v1856_v5 }
0x1fa8   :  { %v878_v51 = vpop.permute.xlu1 %877 }
0x1fa9   :  { %v2269_v11 = vpop.eup %2268  ;;  %v902_v48 = vmul.f32 %v3016_v63, %v878_v51  ;;  %v2001_v51 = vld [vmem:[%s3289_s15] sm:$0xff] }
0x1faa   :  { %1859 = vrot.lane.b32.xlu2 %v2269_v11, %s2320_s26  ;;  %2022 = vmatpush.msrb.mxu3 %v2001_v51 }
0x1fab   :  { %v922_v37 = vadd.f32 %v3023_v25, %v902_v48 }
0x1fad   :  { %939 = vst.msk [vmem:[#allocation2 + $0x1c] sm:$0x3] %vm924_vm7, %v922_v37 }
0x1fb4   :  { %v1865_v38 = vld [vmem:[#allocation2 + $0x1c] sm:$0x3] }
0x2004   :  { %v1860_v22 = vpop.permute.xlu2 %1859 }
0x2005   :  { %v1862_v52 = vmul.f32 %v1860_v22, %v1843_v47 }
0x2007   :  { %v1863_v62 = vadd.f32 %v1862_v52, %v3197_v39  ;;  %1867 = vrot.lane.b32.xlu0 %v1862_v52, %s2324_s2 }
0x2079   :  { %v1868_v10 = vpop.permute.xlu0 %1867 }
0x207a   :  { %2118 = vmatmul.msk.f32.vlgmr.msra.gmra.mxu1 %vm943_vm13, %v1868_v10  ;;  %v2050_v10 = vpop.f32.mrf.mxu0 }
0x20f7   :  { %v1888_v27 = vpop.f32.mrf.mxu1 }
0x20f8   :  { %v1891_v54 = vadd.f32 %v1888_v27, %v1865_v38 }
0x20fa   :  { %2270 = vtanh.f32 %v1891_v54  ;;  %v2119_v33 = vmul.f32 -1.442695, %v1891_v54 }
0x20fc   :  { %2272 = vpow2.f32 %v2119_v33 }
0x2100   :  { %v2271_v63 = vpop.eup %2270 }
0x2101   :  { %1914 = vrot.lane.b32.xlu2 %v2271_v63, %s2319_s4 }
0x2102   :  { %v2273_v25 = vpop.eup %2272 }
0x2103   :  { %v1895_v9 = vadd.f32 1.0, %v2273_v25 }
0x2105   :  { %2274 = vrcp.f32 %v1895_v9  ;;  %v1907_v21 = vand.u32 2147483648, %v1895_v9  ;;  %vm1901_vm5 = vweird.f32 %v1895_v9  ;;  %v1905_v14 = vand.u32 2147483647, %v1895_v9 }
0x2107   :  { %v1908_v32 = vor.u32 1.1754944e-38, %v1907_v21  ;;  %vm1906_vm6 = vcmp.eq.f32.partialorder %v1905_v14, 8.507059e+37 }
0x210b   :  { %v2275_v17 = vpop.eup %2274 }
0x210c   :  { %v1897_v36 = vmul.f32 %v2275_v17, %v1895_v9  ;;  %vm1902_vm4 = vweird.f32 %v2275_v17 }
0x210d   :  { %vm1903_vm1 = vmor %vm1901_vm5, %vm1902_vm4 }
0x210e   :  { %v1898_v39 = vsub.f32 1.0, %v1897_v36 }
0x2110   :  { %v1899_v31 = vmul.f32 %v2275_v17, %v1898_v39 }
0x2112   :  { %v1900_v8 = vadd.f32 %v2275_v17, %v1899_v31 }
0x2114   :  { %v1904_v49 = vsel %vm1903_vm1, %v2275_v17, %v1900_v8 }
0x2115   :  { %v1909_v42 = vsel %vm1906_vm6, %v1908_v32, %v1904_v49 }
0x2116   :  { %v1912_v59 = vmul.f32 %v1909_v42, %v1856_v5 }
0x215b   :  { %v1915_v60 = vpop.permute.xlu2 %1914 }
0x215c   :  { %v1917_v30 = vmul.f32 %v1915_v60, %v1909_v42 }
0x215e   :  { %1919 = vrot.lane.b32.xlu0 %v1917_v30, %s2320_s26 }
0x2166   :  { %882 = vperm.xlu0 %2133, %v803_v41  }
0x21d0   :  { %v1920_v55 = vpop.permute.xlu0 %1919 }
0x21d1   :  { %v1922_v0 = vadd.f32 %v1920_v55, %v1912_v59 }
0x21d3   :  { %2276 = vtanh.f32 %v1922_v0 }
0x21d8   :  { %v883_v24 = vpop.permute.xlu0 %882 }
0x21d9   :  { %v2277_v16 = vpop.eup %2276  ;;  %v903_v45 = vmul.f32 %v2289_v35, %v883_v24 }
0x21da   :  { %1925 = vrot.lane.b32.xlu1 %v2277_v16, %s2320_s26 }
0x21db   :  { %v923_v4 = vadd.f32 %v2290_v15, %v903_v45 }
0x21dd   :  { %940 = vst.msk [vmem:[#allocation2 + $0x1e] sm:$0x3] %vm924_vm7, %v923_v4 }
0x21e4   :  { %v1931_v43 = vld [vmem:[#allocation2 + $0x1e] sm:$0x3] }
0x224c   :  { %v1926_v19 = vpop.permute.xlu1 %1925 }
0x224d   :  { %v1928_v20 = vmul.f32 %v1926_v19, %v1909_v42 }
0x224f   :  { %v1929_v26 = vadd.f32 %v1928_v20, %v1863_v62  ;;  %1933 = vrot.lane.b32.xlu2 %v1928_v20, %s2324_s2  ;;  %v2157_v62 = vld [vmem:[%s3290_s16] ss:$0 sm:$0xff] }
0x22a9   :  { %v1934_v2 = vpop.permute.xlu2 %1933 }
0x22aa   :  { %2120 = vmatmul.msk.f32.vlgmr.msrb.gmra.mxu2 %vm943_vm13, %v1934_v2 }
0x232d   :  { %v1954_v28 = vpop.f32.mrf.mxu2 }
0x232e   :  { %v1957_v40 = vadd.f32 %v1954_v28, %v1931_v43 }
0x2330   :  { %2278 = vtanh.f32 %v1957_v40  ;;  %v2121_v44 = vmul.f32 -1.442695, %v1957_v40 }
0x2332   :  { %2280 = vpow2.f32 %v2121_v44 }
0x2336   :  { %v2279_v56 = vpop.eup %2278 }
0x2337   :  { %1980 = vrot.lane.b32.xlu1 %v2279_v56, %s2319_s4 }
0x2338   :  { %v2281_v53 = vpop.eup %2280 }
0x2339   :  { %v1961_v12 = vadd.f32 1.0, %v2281_v53 }
0x233b   :  { %2282 = vrcp.f32 %v1961_v12  ;;  %v1973_v7 = vand.u32 2147483648, %v1961_v12  ;;  %vm1967_vm9 = vweird.f32 %v1961_v12  ;;  %v1971_v3 = vand.u32 2147483647, %v1961_v12 }
0x233d   :  { %v1974_v50 = vor.u32 1.1754944e-38, %v1973_v7  ;;  %vm1972_vm11 = vcmp.eq.f32.partialorder %v1971_v3, 8.507059e+37 }
0x2341   :  { %v2283_v58 = vpop.eup %2282 }
0x2342   :  { %v1963_v6 = vmul.f32 %v2283_v58, %v1961_v12  ;;  %vm1968_vm7 = vweird.f32 %v2283_v58 }
0x2343   :  { %vm1969_vm10 = vmor %vm1967_vm9, %vm1968_vm7 }
0x2344   :  { %v1964_v34 = vsub.f32 1.0, %v1963_v6 }
0x2346   :  { %v1965_v57 = vmul.f32 %v2283_v58, %v1964_v34 }
0x2348   :  { %v1966_v23 = vadd.f32 %v2283_v58, %v1965_v57 }
0x234a   :  { %v1970_v29 = vsel %vm1969_vm10, %v2283_v58, %v1966_v23 }
0x234b   :  { %v1975_v47 = vsel %vm1972_vm11, %v1974_v50, %v1970_v29 }
0x234c   :  { %v1978_v61 = vmul.f32 %v1975_v47, %v1922_v0 }
0x23a9   :  { %v1981_v46 = vpop.permute.xlu1 %1980 }
0x23aa   :  { %v1983_v1 = vmul.f32 %v1981_v46, %v1975_v47 }
0x23ac   :  { %1985 = vrot.lane.b32.xlu2 %v1983_v1, %s2320_s26 }
0x2406   :  { %v1986_v13 = vpop.permute.xlu2 %1985 }
0x2407   :  { %v1988_v18 = vadd.f32 %v1986_v13, %v1978_v61 }
0x2409   :  { %2284 = vtanh.f32 %v1988_v18 }
0x240f   :  { %v2285_v5 = vpop.eup %2284 }
0x2410   :  { %1991 = vrot.lane.b32.xlu0 %v2285_v5, %s2320_s26  ;;  %s2325_s26 = smov [#allocation3]  }
0x2411   :  { %s2065_s27 = sshll.u32 %s2325_s26, 4  ;;  %s2066_s27 = int_to_ptr.vmem [resolvable:$true] %s2065_s27 }
0x2482   :  { %v1992_v11 = vpop.permute.xlu0 %1991 }
0x2483   :  { %v1994_v48 = vmul.f32 %v1992_v11, %v1975_v47 }
0x2485   :  { %v1995_v37 = vadd.f32 %v1994_v48, %v1929_v26 }
0x2487   :  { %v1996_v22 = vmul.f32 0.0625, %v1995_v37 }
0x2489   :  { %2003 = vrot.lane.b32.xlu1 %v1996_v22, %s2324_s2 }
0x24fb   :  { %v2004_v52 = vpop.permute.xlu1 %2003 }
0x24fc   :  { %2122 = vmatmul.msk.f32.vlgmr.msrb.gmra.mxu3 %vm943_vm13, %v2004_v52 }
0x257f   :  { %v2024_v38 = vpop.f32.mrf.mxu3 }
0x2580   :  { %v2051_v27 = vadd.f32 %v2050_v10, %v2024_v38 }
0x2582   :  { %v2057_v54 = vadd.f32 %v2157_v62, %v2051_v27 }
0x2584   :  { %2059 = vst.msk [vmem:[#allocation3] sm:$0x3] %vm2058_vm12, %v2057_v54 }
0x2585   :  { %2070 = dma.vmem_to_hbm [thread:$0]  %s2066_s27, 32, %s2068_s28, [#allocation4]  }
0x2586   :  { %2315 = dma.done.wait [#allocation4], 32  }
0x2587   :  { %2316 = vsyncadd [#allocation4], 4294967264 }
0x2588   :  { %2075 = vsyncpa [#allocation4], 1 }

</bundles_post_ra>
